<compile_context>
chip_gen: v6e
topology: v6e:2x2x1
jax: 0.10.0
libtpu: 0.0.40
codegen_flags: <defaults>
</compile_context>

<pallas_src>
import math

import jax
import jax.numpy as jnp
from jax import lax
from jax.experimental import pallas as pl
from jax.experimental.pallas import tpu as pltpu

C_MID = 256   # hidden channel count fixed by the module definition
BN_EPS = 1e-5


def _outconv_kernel(x_ref, w1_ref, s1_ref, b1_ref, w2_ref, s2_ref, b2_ref,
                    w3_ref, b3_ref, out_ref):
    # x_ref : (1, TH+2, W, 9*Cin) f32  im2col'd conv1 input rows for this row block,
    #          with a 1-row halo on each side (out-of-image halo rows are dummy and
    #          masked to zero below -> equivalent to conv2's zero padding).
    # w1_ref: (9*Cin, 256) f32         conv1 weight, (kh, kw, cin)-major
    # s1/b1 : (1, 256) f32             folded BatchNorm1 scale / bias
    # w2_ref: (9, 256, 256) bf16       conv2 weight, tap-major (kh*3 + kw)
    # s2/b2 : (1, 256) f32             folded BatchNorm2 scale / bias
    # w3_ref: (256, out_ch) f32        1x1 conv weight
    # b3_ref: (1, out_ch) f32          1x1 conv bias
    # out_ref: (1, TH*W, out_ch) f32
    _, th2, w_dim, k1 = x_ref.shape
    th = th2 - 2
    thw = th * w_dim
    r = pl.program_id(1)
    n_r = pl.num_programs(1)

    # ---- conv1 (3x3, pad=1) as ONE matmul + BN1 + ReLU (Dropout(0.5) = identity) ----
    xcol = x_ref[0].reshape(th2 * w_dim, k1)
    y1 = jnp.dot(xcol, w1_ref[...], preferred_element_type=jnp.float32)
    y1 = jnp.maximum(y1 * s1_ref[0] + b1_ref[0], 0.0)

    # Zero the halo rows that lie outside the image (they represent conv2's zero
    # padding, NOT conv1 applied to padding -- BN bias makes those differ).
    fi = lax.broadcasted_iota(jnp.int32, (th2 * w_dim, C_MID), 0)
    pad_top = (fi < w_dim) & (r == 0)
    pad_bot = (fi >= (th + 1) * w_dim) & (r == n_r - 1)
    y1 = jnp.where(pad_top | pad_bot, 0.0, y1)
    y1r = y1.astype(jnp.bfloat16).reshape(th2, w_dim, C_MID)   # bf16 MXU feed

    # ---- conv2 (3x3, pad=1) + BN2 + ReLU (Dropout(0.1) = identity) ----
    # 9 bf16 MXU matmuls; f32 accumulation stays in a local value (written once).
    zcol = jnp.zeros((th, 1, C_MID), jnp.bfloat16)
    acc = None
    for dy in range(3):
        rows = y1r[dy:dy + th]                     # (TH, W, 256) leading-dim slice
        shifted = (
            jnp.concatenate([zcol, rows[:, :w_dim - 1, :]], axis=1),  # col w-1
            rows,                                                     # col w
            jnp.concatenate([rows[:, 1:, :], zcol], axis=1),          # col w+1
        )
        for dx in range(3):
            t = jnp.dot(shifted[dx].reshape(thw, C_MID), w2_ref[3 * dy + dx],
                        preferred_element_type=jnp.float32)
            acc = t if acc is None else acc + t
    y2 = jnp.maximum(acc * s2_ref[0] + b2_ref[0], 0.0)

    # ---- conv3 (1x1, with bias), f32 (negligible FLOPs) ----
    # TODO(synk): out_ch is tiny (8) so this store is lane-masked; a lane-dense
    # (W*out_ch) output packing is only worth it for large out_ch / resolution.
    out = jnp.dot(y2, w3_ref[...], preferred_element_type=jnp.float32) + b3_ref[0]
    out_ref[...] = out.reshape(1, thw, -1).astype(out_ref.dtype)


def _pick_row_tile(h, w, target_rows=128):
    """Largest divisor TH of h with TH*w <= target_rows (at least 1)."""
    best = 1
    for cand in range(1, h + 1):
        if h % cand == 0 and cand * w <= target_rows:
            best = cand
    return best


@jax.jit
def outconv_forward(x_nchw, w1_hwio, s1, b1, w2_hwio, s2, b2, w3_io, b3):
    """x_nchw: (B, in_ch, H, W) f32 -> (B, out_ch, H, W) f32 (eval-mode outconv)."""
    x = jnp.transpose(x_nchw, (0, 2, 3, 1))               # NCHW -> NHWC
    B, H, W, cin = x.shape
    out_ch = w3_io.shape[-1]
    k1 = 9 * cin
    th = _pick_row_tile(H, W)
    n_r = H // th

    # conv1 im2col: channel block (kh*3+kw) holds the input shifted by (kh-1, kw-1).
    xp = jnp.pad(x, ((0, 0), (1, 1), (1, 1), (0, 0)))
    xcol = jnp.concatenate(
        [xp[:, dy:dy + H, dx:dx + W, :] for dy in range(3) for dx in range(3)],
        axis=-1)                                          # (B, H, W, 9*Cin)
    # one dummy halo row on top/bottom (masked to zero in-kernel), then
    # overlapping row blocks of TH+2 rows each (1-row recomputed halo per block).
    xcol = jnp.pad(xcol, ((0, 0), (1, 1), (0, 0), (0, 0)))
    xblk = jnp.stack([xcol[:, i * th:i * th + th + 2] for i in range(n_r)], axis=1)
    xblk = xblk.reshape(B * n_r, th + 2, W, k1)

    w1_k = w1_hwio.reshape(k1, C_MID)
    w2_k = w2_hwio.reshape(9, C_MID, C_MID).astype(jnp.bfloat16)  # bf16 MXU weights
    s1_k, b1_k = s1.reshape(1, C_MID), b1.reshape(1, C_MID)
    s2_k, b2_k = s2.reshape(1, C_MID), b2.reshape(1, C_MID)
    b3_k = b3.reshape(1, out_ch)

    out = pl.pallas_call(
        _outconv_kernel,
        out_shape=jax.ShapeDtypeStruct((B, H * W, out_ch), jnp.float32),
        grid_spec=pltpu.PrefetchScalarGridSpec(
            num_scalar_prefetch=0,
            grid=(B, n_r),
            in_specs=[
                pl.BlockSpec((1, th + 2, W, k1),
                             lambda bb, rr: (bb * n_r + rr, 0, 0, 0)),
                pl.BlockSpec((k1, C_MID), lambda bb, rr: (0, 0)),
                pl.BlockSpec((1, C_MID), lambda bb, rr: (0, 0)),
                pl.BlockSpec((1, C_MID), lambda bb, rr: (0, 0)),
                pl.BlockSpec((9, C_MID, C_MID), lambda bb, rr: (0, 0, 0)),
                pl.BlockSpec((1, C_MID), lambda bb, rr: (0, 0)),
                pl.BlockSpec((1, C_MID), lambda bb, rr: (0, 0)),
                pl.BlockSpec((C_MID, out_ch), lambda bb, rr: (0, 0)),
                pl.BlockSpec((1, out_ch), lambda bb, rr: (0, 0)),
            ],
            out_specs=pl.BlockSpec((1, th * W, out_ch),
                                   lambda bb, rr: (bb, rr, 0)),
        ),
        compiler_params=pltpu.CompilerParams(
            dimension_semantics=("parallel", "parallel"),
            vmem_limit_bytes=32 << 20,   # actual need is ~4 MB; stays under v7x's 64 MiB
        ),
    )(xblk, w1_k, s1_k, b1_k, w2_k, s2_k, b2_k, w3_io, b3_k)

    out = out.reshape(B, H, W, out_ch)
    return jnp.transpose(out, (0, 3, 1, 2))                # NHWC -> NCHW


def _fold_bn(gamma, beta, mean, var):
    scale = gamma / jnp.sqrt(var + BN_EPS)
    bias = beta - mean * scale
    return scale, bias


def init_params(key, in_ch, out_ch):
    ks = jax.random.split(key, 12)
    # conv weights stored HWIO (reference form)
    w1_hwio = jax.random.normal(ks[0], (3, 3, in_ch, C_MID), jnp.float32) / math.sqrt(9 * in_ch)
    w2_hwio = jax.random.normal(ks[1], (3, 3, C_MID, C_MID), jnp.float32) / math.sqrt(9 * C_MID)
    w3_io = jax.random.normal(ks[2], (C_MID, out_ch), jnp.float32) / math.sqrt(C_MID)
    b3 = 0.1 * jax.random.normal(ks[3], (out_ch,), jnp.float32)
    # BatchNorm running stats + affine params (deterministic synthetic)
    g1 = 1.0 + 0.1 * jax.random.normal(ks[4], (C_MID,), jnp.float32)
    be1 = 0.1 * jax.random.normal(ks[5], (C_MID,), jnp.float32)
    m1 = 0.1 * jax.random.normal(ks[6], (C_MID,), jnp.float32)
    v1 = 0.5 + jax.random.uniform(ks[7], (C_MID,), jnp.float32)
    g2 = 1.0 + 0.1 * jax.random.normal(ks[8], (C_MID,), jnp.float32)
    be2 = 0.1 * jax.random.normal(ks[9], (C_MID,), jnp.float32)
    m2 = 0.1 * jax.random.normal(ks[10], (C_MID,), jnp.float32)
    v2 = 0.5 + jax.random.uniform(ks[11], (C_MID,), jnp.float32)
    s1, bb1 = _fold_bn(g1, be1, m1, v1)
    s2, bb2 = _fold_bn(g2, be2, m2, v2)
    return w1_hwio, s1, bb1, w2_hwio, s2, bb2, w3_io, b3


def ref_forward(x_nchw, w1_hwio, s1, b1, w2_hwio, s2, b2, w3, b3):
    x = jnp.transpose(x_nchw, (0, 2, 3, 1))
    dn = ('NHWC', 'HWIO', 'NHWC')
    y = lax.conv_general_dilated(x, w1_hwio, (1, 1), 'SAME', dimension_numbers=dn)
    y = jnp.maximum(y * s1 + b1, 0.0)
    y = lax.conv_general_dilated(y, w2_hwio, (1, 1), 'SAME', dimension_numbers=dn)
    y = jnp.maximum(y * s2 + b2, 0.0)
    y = jnp.einsum('nhwc,co->nhwo', y, w3) + b3
    return jnp.transpose(y, (0, 3, 1, 2))


if __name__ == "__main__":
    B, in_ch, H, W = 2, 4, 16, 16
    out_ch = 8

    key = jax.random.PRNGKey(0)
    kx, kp = jax.random.split(key)
    x = jax.random.normal(kx, (B, in_ch, H, W), jnp.float32)

    params = init_params(kp, in_ch, out_ch)

    out = jax.block_until_ready(outconv_forward(x, *params))
    ref = jax.block_until_ready(ref_forward(x, *params))

    assert out.shape == (B, out_ch, H, W), out.shape
    # conv2 runs with bf16 MXU inputs (f32 accumulation) -> slightly relaxed tol
    # vs the pure-f32 XLA reference.
    err = float(jnp.max(jnp.abs(out - ref)))
    assert jnp.allclose(out, ref, rtol=3e-2, atol=3e-2), err

    # TODO(synk): Dropout is identity here (eval mode); training-mode RNG masks
    # would use pltpu.prng_seed / pltpu.stateful_bernoulli if ever needed.
    print("KERNEL_OK")
</pallas_src>

<mosaic_0001>
module attributes {stable_mosaic.version = 11 : i64} {
  func.func @_outconv_kernel(%arg0: i32, %arg1: i32, %arg2: memref<1x10x16x36xf32, #tpu.memory_space<vmem>>, %arg3: memref<36x256xf32, #tpu.memory_space<vmem>>, %arg4: memref<1x256xf32, #tpu.memory_space<vmem>>, %arg5: memref<1x256xf32, #tpu.memory_space<vmem>>, %arg6: memref<9x256x256xbf16, #tpu.memory_space<vmem>>, %arg7: memref<1x256xf32, #tpu.memory_space<vmem>>, %arg8: memref<1x256xf32, #tpu.memory_space<vmem>>, %arg9: memref<256x8xf32, #tpu.memory_space<vmem>>, %arg10: memref<1x8xf32, #tpu.memory_space<vmem>>, %arg11: memref<1x128x8xf32, #tpu.memory_space<vmem>>) attributes {dimension_semantics = [#tpu.dimension_semantics<parallel>, #tpu.dimension_semantics<parallel>], iteration_bounds = array<i64: 2, 2>, scalar_prefetch = 0 : i64, scratch_operands = 0 : i64, tpu.core_type = #tpu.core_type<tc>, window_params = [{transform_indices = @transform_0, window_bounds = array<i64: 1, 10, 16, 36>}, {pipeline_mode = #tpu.pipeline_mode<synchronous>, transform_indices = @transform_1, window_bounds = array<i64: 36, 256>}, {pipeline_mode = #tpu.pipeline_mode<synchronous>, transform_indices = @transform_2, window_bounds = array<i64: 1, 256>}, {pipeline_mode = #tpu.pipeline_mode<synchronous>, transform_indices = @transform_3, window_bounds = array<i64: 1, 256>}, {pipeline_mode = #tpu.pipeline_mode<synchronous>, transform_indices = @transform_4, window_bounds = array<i64: 9, 256, 256>}, {pipeline_mode = #tpu.pipeline_mode<synchronous>, transform_indices = @transform_5, window_bounds = array<i64: 1, 256>}, {pipeline_mode = #tpu.pipeline_mode<synchronous>, transform_indices = @transform_6, window_bounds = array<i64: 1, 256>}, {pipeline_mode = #tpu.pipeline_mode<synchronous>, transform_indices = @transform_7, window_bounds = array<i64: 256, 8>}, {pipeline_mode = #tpu.pipeline_mode<synchronous>, transform_indices = @transform_8, window_bounds = array<i64: 1, 8>}, {transform_indices = @transform_9, window_bounds = array<i64: 1, 128, 8>}]} {
    %c0 = arith.constant 0 : index
    %c0_0 = arith.constant 0 : index
    %c0_1 = arith.constant 0 : index
    %c0_2 = arith.constant 0 : index
    %0 = vector.load %arg2[%c0, %c0_0, %c0_1, %c0_2] : memref<1x10x16x36xf32, #tpu.memory_space<vmem>>, vector<1x10x16x36xf32>
    %1 = vector.shape_cast %0 : vector<1x10x16x36xf32> to vector<10x16x36xf32>
    %2 = vector.shape_cast %1 : vector<10x16x36xf32> to vector<160x36xf32>
    %c0_3 = arith.constant 0 : index
    %c0_4 = arith.constant 0 : index
    %3 = vector.load %arg3[%c0_3, %c0_4] : memref<36x256xf32, #tpu.memory_space<vmem>>, vector<36x256xf32>
    %cst = arith.constant dense<0.000000e+00> : vector<160x256xf32>
    %4 = tpu.matmul %2, %3, %cst {dimension_numbers = #tpu.dot_dimension_numbers<[1], [0], [0], [1], [0, 0, 1, 1], [], []>} : vector<160x36xf32>, vector<36x256xf32>, vector<160x256xf32> -> vector<160x256xf32>
    %c0_5 = arith.constant 0 : index
    %c0_6 = arith.constant 0 : index
    %5 = vector.load %arg4[%c0_5, %c0_6] : memref<1x256xf32, #tpu.memory_space<vmem>>, vector<1x256xf32>
    %6 = vector.shape_cast %5 : vector<1x256xf32> to vector<256xf32>
    %7 = vector.shape_cast %6 : vector<256xf32> to vector<1x256xf32>
    %8 = vector.broadcast %7 : vector<1x256xf32> to vector<160x256xf32>
    %9 = arith.mulf %4, %8 : vector<160x256xf32>
    %c0_7 = arith.constant 0 : index
    %c0_8 = arith.constant 0 : index
    %10 = vector.load %arg5[%c0_7, %c0_8] : memref<1x256xf32, #tpu.memory_space<vmem>>, vector<1x256xf32>
    %11 = vector.shape_cast %10 : vector<1x256xf32> to vector<256xf32>
    %12 = vector.shape_cast %11 : vector<256xf32> to vector<1x256xf32>
    %13 = vector.broadcast %12 : vector<1x256xf32> to vector<160x256xf32>
    %14 = arith.addf %9, %13 : vector<160x256xf32>
    %cst_9 = arith.constant 0.000000e+00 : f32
    %15 = vector.broadcast %cst_9 : f32 to vector<160x256xf32>
    %16 = arith.maximumf %14, %15 : vector<160x256xf32>
    %17 = tpu.iota {dimensions = array<i32: 0>} : vector<160x256xi32>
    %c16_i32 = arith.constant 16 : i32
    %18 = vector.broadcast %c16_i32 : i32 to vector<160x256xi32>
    %19 = arith.cmpi slt, %17, %18 : vector<160x256xi32>
    %c0_i32 = arith.constant 0 : i32
    %20 = arith.cmpi eq, %arg1, %c0_i32 : i32
    %21 = vector.broadcast %20 : i1 to vector<160x256xi1>
    %22 = arith.andi %19, %21 : vector<160x256xi1>
    %c144_i32 = arith.constant 144 : i32
    %23 = vector.broadcast %c144_i32 : i32 to vector<160x256xi32>
    %24 = arith.cmpi sge, %17, %23 : vector<160x256xi32>
    %c1_i32 = arith.constant 1 : i32
    %25 = arith.cmpi eq, %arg1, %c1_i32 : i32
    %26 = vector.broadcast %25 : i1 to vector<160x256xi1>
    %27 = arith.andi %24, %26 : vector<160x256xi1>
    %28 = arith.ori %22, %27 : vector<160x256xi1>
    %cst_10 = arith.constant 0.000000e+00 : f32
    %29 = vector.broadcast %cst_10 : f32 to vector<160x256xf32>
    %30 = arith.select %28, %29, %16 : vector<160x256xi1>, vector<160x256xf32>
    %31 = arith.truncf %30 : vector<160x256xf32> to vector<160x256xbf16>
    %32 = vector.shape_cast %31 : vector<160x256xbf16> to vector<10x16x256xbf16>
    %cst_11 = arith.constant 0.000000e+00 : bf16
    %33 = vector.broadcast %cst_11 : bf16 to vector<8x1x256xbf16>
    %34 = vector.extract_strided_slice %32 {offsets = [0, 0, 0], sizes = [8, 16, 256], strides = [1, 1, 1]} : vector<10x16x256xbf16> to vector<8x16x256xbf16>
    %35 = vector.extract_strided_slice %34 {offsets = [0, 0, 0], sizes = [8, 15, 256], strides = [1, 1, 1]} : vector<8x16x256xbf16> to vector<8x15x256xbf16>
    %36 = tpu.concatenate %33, %35 in 1 : vector<8x1x256xbf16>, vector<8x15x256xbf16> -> vector<8x16x256xbf16>
    %37 = vector.extract_strided_slice %34 {offsets = [0, 1, 0], sizes = [8, 15, 256], strides = [1, 1, 1]} : vector<8x16x256xbf16> to vector<8x15x256xbf16>
    %38 = tpu.concatenate %37, %33 in 1 : vector<8x15x256xbf16>, vector<8x1x256xbf16> -> vector<8x16x256xbf16>
    %39 = vector.shape_cast %36 : vector<8x16x256xbf16> to vector<128x256xbf16>
    %c0_12 = arith.constant 0 : index
    %c0_13 = arith.constant 0 : index
    %c0_14 = arith.constant 0 : index
    %40 = vector.load %arg6[%c0_12, %c0_13, %c0_14] : memref<9x256x256xbf16, #tpu.memory_space<vmem>>, vector<1x256x256xbf16>
    %41 = vector.shape_cast %40 : vector<1x256x256xbf16> to vector<256x256xbf16>
    %cst_15 = arith.constant dense<0.000000e+00> : vector<128x256xf32>
    %42 = tpu.matmul %39, %41, %cst_15 {dimension_numbers = #tpu.dot_dimension_numbers<[1], [0], [0], [1], [0, 0, 1, 1], [], []>} : vector<128x256xbf16>, vector<256x256xbf16>, vector<128x256xf32> -> vector<128x256xf32>
    %43 = vector.shape_cast %34 : vector<8x16x256xbf16> to vector<128x256xbf16>
    %c1 = arith.constant 1 : index
    %c0_16 = arith.constant 0 : index
    %c0_17 = arith.constant 0 : index
    %44 = vector.load %arg6[%c1, %c0_16, %c0_17] : memref<9x256x256xbf16, #tpu.memory_space<vmem>>, vector<1x256x256xbf16>
    %45 = vector.shape_cast %44 : vector<1x256x256xbf16> to vector<256x256xbf16>
    %cst_18 = arith.constant dense<0.000000e+00> : vector<128x256xf32>
    %46 = tpu.matmul %43, %45, %cst_18 {dimension_numbers = #tpu.dot_dimension_numbers<[1], [0], [0], [1], [0, 0, 1, 1], [], []>} : vector<128x256xbf16>, vector<256x256xbf16>, vector<128x256xf32> -> vector<128x256xf32>
    %47 = arith.addf %42, %46 : vector<128x256xf32>
    %48 = vector.shape_cast %38 : vector<8x16x256xbf16> to vector<128x256xbf16>
    %c2 = arith.constant 2 : index
    %c0_19 = arith.constant 0 : index
    %c0_20 = arith.constant 0 : index
    %49 = vector.load %arg6[%c2, %c0_19, %c0_20] : memref<9x256x256xbf16, #tpu.memory_space<vmem>>, vector<1x256x256xbf16>
    %50 = vector.shape_cast %49 : vector<1x256x256xbf16> to vector<256x256xbf16>
    %cst_21 = arith.constant dense<0.000000e+00> : vector<128x256xf32>
    %51 = tpu.matmul %48, %50, %cst_21 {dimension_numbers = #tpu.dot_dimension_numbers<[1], [0], [0], [1], [0, 0, 1, 1], [], []>} : vector<128x256xbf16>, vector<256x256xbf16>, vector<128x256xf32> -> vector<128x256xf32>
    %52 = arith.addf %47, %51 : vector<128x256xf32>
    %53 = vector.extract_strided_slice %32 {offsets = [1, 0, 0], sizes = [8, 16, 256], strides = [1, 1, 1]} : vector<10x16x256xbf16> to vector<8x16x256xbf16>
    %54 = vector.extract_strided_slice %53 {offsets = [0, 0, 0], sizes = [8, 15, 256], strides = [1, 1, 1]} : vector<8x16x256xbf16> to vector<8x15x256xbf16>
    %55 = tpu.concatenate %33, %54 in 1 : vector<8x1x256xbf16>, vector<8x15x256xbf16> -> vector<8x16x256xbf16>
    %56 = vector.extract_strided_slice %53 {offsets = [0, 1, 0], sizes = [8, 15, 256], strides = [1, 1, 1]} : vector<8x16x256xbf16> to vector<8x15x256xbf16>
    %57 = tpu.concatenate %56, %33 in 1 : vector<8x15x256xbf16>, vector<8x1x256xbf16> -> vector<8x16x256xbf16>
    %58 = vector.shape_cast %55 : vector<8x16x256xbf16> to vector<128x256xbf16>
    %c3 = arith.constant 3 : index
    %c0_22 = arith.constant 0 : index
    %c0_23 = arith.constant 0 : index
    %59 = vector.load %arg6[%c3, %c0_22, %c0_23] : memref<9x256x256xbf16, #tpu.memory_space<vmem>>, vector<1x256x256xbf16>
    %60 = vector.shape_cast %59 : vector<1x256x256xbf16> to vector<256x256xbf16>
    %cst_24 = arith.constant dense<0.000000e+00> : vector<128x256xf32>
    %61 = tpu.matmul %58, %60, %cst_24 {dimension_numbers = #tpu.dot_dimension_numbers<[1], [0], [0], [1], [0, 0, 1, 1], [], []>} : vector<128x256xbf16>, vector<256x256xbf16>, vector<128x256xf32> -> vector<128x256xf32>
    %62 = arith.addf %52, %61 : vector<128x256xf32>
    %63 = vector.shape_cast %53 : vector<8x16x256xbf16> to vector<128x256xbf16>
    %c4 = arith.constant 4 : index
    %c0_25 = arith.constant 0 : index
    %c0_26 = arith.constant 0 : index
    %64 = vector.load %arg6[%c4, %c0_25, %c0_26] : memref<9x256x256xbf16, #tpu.memory_space<vmem>>, vector<1x256x256xbf16>
    %65 = vector.shape_cast %64 : vector<1x256x256xbf16> to vector<256x256xbf16>
    %cst_27 = arith.constant dense<0.000000e+00> : vector<128x256xf32>
    %66 = tpu.matmul %63, %65, %cst_27 {dimension_numbers = #tpu.dot_dimension_numbers<[1], [0], [0], [1], [0, 0, 1, 1], [], []>} : vector<128x256xbf16>, vector<256x256xbf16>, vector<128x256xf32> -> vector<128x256xf32>
    %67 = arith.addf %62, %66 : vector<128x256xf32>
    %68 = vector.shape_cast %57 : vector<8x16x256xbf16> to vector<128x256xbf16>
    %c5 = arith.constant 5 : index
    %c0_28 = arith.constant 0 : index
    %c0_29 = arith.constant 0 : index
    %69 = vector.load %arg6[%c5, %c0_28, %c0_29] : memref<9x256x256xbf16, #tpu.memory_space<vmem>>, vector<1x256x256xbf16>
    %70 = vector.shape_cast %69 : vector<1x256x256xbf16> to vector<256x256xbf16>
    %cst_30 = arith.constant dense<0.000000e+00> : vector<128x256xf32>
    %71 = tpu.matmul %68, %70, %cst_30 {dimension_numbers = #tpu.dot_dimension_numbers<[1], [0], [0], [1], [0, 0, 1, 1], [], []>} : vector<128x256xbf16>, vector<256x256xbf16>, vector<128x256xf32> -> vector<128x256xf32>
    %72 = arith.addf %67, %71 : vector<128x256xf32>
    %73 = vector.extract_strided_slice %32 {offsets = [2, 0, 0], sizes = [8, 16, 256], strides = [1, 1, 1]} : vector<10x16x256xbf16> to vector<8x16x256xbf16>
    %74 = vector.extract_strided_slice %73 {offsets = [0, 0, 0], sizes = [8, 15, 256], strides = [1, 1, 1]} : vector<8x16x256xbf16> to vector<8x15x256xbf16>
    %75 = tpu.concatenate %33, %74 in 1 : vector<8x1x256xbf16>, vector<8x15x256xbf16> -> vector<8x16x256xbf16>
    %76 = vector.extract_strided_slice %73 {offsets = [0, 1, 0], sizes = [8, 15, 256], strides = [1, 1, 1]} : vector<8x16x256xbf16> to vector<8x15x256xbf16>
    %77 = tpu.concatenate %76, %33 in 1 : vector<8x15x256xbf16>, vector<8x1x256xbf16> -> vector<8x16x256xbf16>
    %78 = vector.shape_cast %75 : vector<8x16x256xbf16> to vector<128x256xbf16>
    %c6 = arith.constant 6 : index
    %c0_31 = arith.constant 0 : index
    %c0_32 = arith.constant 0 : index
    %79 = vector.load %arg6[%c6, %c0_31, %c0_32] : memref<9x256x256xbf16, #tpu.memory_space<vmem>>, vector<1x256x256xbf16>
    %80 = vector.shape_cast %79 : vector<1x256x256xbf16> to vector<256x256xbf16>
    %cst_33 = arith.constant dense<0.000000e+00> : vector<128x256xf32>
    %81 = tpu.matmul %78, %80, %cst_33 {dimension_numbers = #tpu.dot_dimension_numbers<[1], [0], [0], [1], [0, 0, 1, 1], [], []>} : vector<128x256xbf16>, vector<256x256xbf16>, vector<128x256xf32> -> vector<128x256xf32>
    %82 = arith.addf %72, %81 : vector<128x256xf32>
    %83 = vector.shape_cast %73 : vector<8x16x256xbf16> to vector<128x256xbf16>
    %c7 = arith.constant 7 : index
    %c0_34 = arith.constant 0 : index
    %c0_35 = arith.constant 0 : index
    %84 = vector.load %arg6[%c7, %c0_34, %c0_35] : memref<9x256x256xbf16, #tpu.memory_space<vmem>>, vector<1x256x256xbf16>
    %85 = vector.shape_cast %84 : vector<1x256x256xbf16> to vector<256x256xbf16>
    %cst_36 = arith.constant dense<0.000000e+00> : vector<128x256xf32>
    %86 = tpu.matmul %83, %85, %cst_36 {dimension_numbers = #tpu.dot_dimension_numbers<[1], [0], [0], [1], [0, 0, 1, 1], [], []>} : vector<128x256xbf16>, vector<256x256xbf16>, vector<128x256xf32> -> vector<128x256xf32>
    %87 = arith.addf %82, %86 : vector<128x256xf32>
    %88 = vector.shape_cast %77 : vector<8x16x256xbf16> to vector<128x256xbf16>
    %c8 = arith.constant 8 : index
    %c0_37 = arith.constant 0 : index
    %c0_38 = arith.constant 0 : index
    %89 = vector.load %arg6[%c8, %c0_37, %c0_38] : memref<9x256x256xbf16, #tpu.memory_space<vmem>>, vector<1x256x256xbf16>
    %90 = vector.shape_cast %89 : vector<1x256x256xbf16> to vector<256x256xbf16>
    %cst_39 = arith.constant dense<0.000000e+00> : vector<128x256xf32>
    %91 = tpu.matmul %88, %90, %cst_39 {dimension_numbers = #tpu.dot_dimension_numbers<[1], [0], [0], [1], [0, 0, 1, 1], [], []>} : vector<128x256xbf16>, vector<256x256xbf16>, vector<128x256xf32> -> vector<128x256xf32>
    %92 = arith.addf %87, %91 : vector<128x256xf32>
    %c0_40 = arith.constant 0 : index
    %c0_41 = arith.constant 0 : index
    %93 = vector.load %arg7[%c0_40, %c0_41] : memref<1x256xf32, #tpu.memory_space<vmem>>, vector<1x256xf32>
    %94 = vector.shape_cast %93 : vector<1x256xf32> to vector<256xf32>
    %95 = vector.shape_cast %94 : vector<256xf32> to vector<1x256xf32>
    %96 = vector.broadcast %95 : vector<1x256xf32> to vector<128x256xf32>
    %97 = arith.mulf %92, %96 : vector<128x256xf32>
    %c0_42 = arith.constant 0 : index
    %c0_43 = arith.constant 0 : index
    %98 = vector.load %arg8[%c0_42, %c0_43] : memref<1x256xf32, #tpu.memory_space<vmem>>, vector<1x256xf32>
    %99 = vector.shape_cast %98 : vector<1x256xf32> to vector<256xf32>
    %100 = vector.shape_cast %99 : vector<256xf32> to vector<1x256xf32>
    %101 = vector.broadcast %100 : vector<1x256xf32> to vector<128x256xf32>
    %102 = arith.addf %97, %101 : vector<128x256xf32>
    %cst_44 = arith.constant 0.000000e+00 : f32
    %103 = vector.broadcast %cst_44 : f32 to vector<128x256xf32>
    %104 = arith.maximumf %102, %103 : vector<128x256xf32>
    %c0_45 = arith.constant 0 : index
    %c0_46 = arith.constant 0 : index
    %105 = vector.load %arg9[%c0_45, %c0_46] : memref<256x8xf32, #tpu.memory_space<vmem>>, vector<256x8xf32>
    %cst_47 = arith.constant dense<0.000000e+00> : vector<128x8xf32>
    %106 = tpu.matmul %104, %105, %cst_47 {dimension_numbers = #tpu.dot_dimension_numbers<[1], [0], [0], [1], [0, 0, 1, 1], [], []>} : vector<128x256xf32>, vector<256x8xf32>, vector<128x8xf32> -> vector<128x8xf32>
    %c0_48 = arith.constant 0 : index
    %c0_49 = arith.constant 0 : index
    %107 = vector.load %arg10[%c0_48, %c0_49] : memref<1x8xf32, #tpu.memory_space<vmem>>, vector<1x8xf32>
    %108 = vector.shape_cast %107 : vector<1x8xf32> to vector<8xf32>
    %109 = vector.shape_cast %108 : vector<8xf32> to vector<1x8xf32>
    %110 = vector.broadcast %109 : vector<1x8xf32> to vector<128x8xf32>
    %111 = arith.addf %106, %110 : vector<128x8xf32>
    %112 = vector.shape_cast %111 : vector<128x8xf32> to vector<1x128x8xf32>
    %c0_50 = arith.constant 0 : index
    %c0_51 = arith.constant 0 : index
    %c0_52 = arith.constant 0 : index
    %113 = vector.load %arg11[%c0_50, %c0_51, %c0_52] : memref<1x128x8xf32, #tpu.memory_space<vmem>>, vector<1x128x8xf32>
    tpu.vector_store %arg11[%c0_50, %c0_51, %c0_52], %112 {strides = array<i32>} : memref<1x128x8xf32, #tpu.memory_space<vmem>>, vector<1x128x8xf32>,
    return
  }
  func.func @transform_0(%arg0: i32, %arg1: i32) -> (i32, i32, i32, i32) {
    %c2_i32 = arith.constant 2 : i32
    %0 = arith.muli %arg0, %c2_i32 : i32
    %1 = arith.addi %0, %arg1 : i32
    %c0_i32 = arith.constant 0 : i32
    %c0_i32_0 = arith.constant 0 : i32
    %c0_i32_1 = arith.constant 0 : i32
    %c0_i32_2 = arith.constant 0 : i32
    return %1, %c0_i32, %c0_i32_0, %c0_i32_1 : i32, i32, i32, i32
  }
  func.func @transform_1(%arg0: i32, %arg1: i32) -> (i32, i32) {
    %c0_i32 = arith.constant 0 : i32
    %c0_i32_0 = arith.constant 0 : i32
    %c0_i32_1 = arith.constant 0 : i32
    return %c0_i32, %c0_i32_0 : i32, i32
  }
  func.func @transform_2(%arg0: i32, %arg1: i32) -> (i32, i32) {
    %c0_i32 = arith.constant 0 : i32
    %c0_i32_0 = arith.constant 0 : i32
    %c0_i32_1 = arith.constant 0 : i32
    return %c0_i32, %c0_i32_0 : i32, i32
  }
  func.func @transform_3(%arg0: i32, %arg1: i32) -> (i32, i32) {
    %c0_i32 = arith.constant 0 : i32
    %c0_i32_0 = arith.constant 0 : i32
    %c0_i32_1 = arith.constant 0 : i32
    return %c0_i32, %c0_i32_0 : i32, i32
  }
  func.func @transform_4(%arg0: i32, %arg1: i32) -> (i32, i32, i32) {
    %c0_i32 = arith.constant 0 : i32
    %c0_i32_0 = arith.constant 0 : i32
    %c0_i32_1 = arith.constant 0 : i32
    %c0_i32_2 = arith.constant 0 : i32
    return %c0_i32, %c0_i32_0, %c0_i32_1 : i32, i32, i32
  }
  func.func @transform_5(%arg0: i32, %arg1: i32) -> (i32, i32) {
    %c0_i32 = arith.constant 0 : i32
    %c0_i32_0 = arith.constant 0 : i32
    %c0_i32_1 = arith.constant 0 : i32
    return %c0_i32, %c0_i32_0 : i32, i32
  }
  func.func @transform_6(%arg0: i32, %arg1: i32) -> (i32, i32) {
    %c0_i32 = arith.constant 0 : i32
    %c0_i32_0 = arith.constant 0 : i32
    %c0_i32_1 = arith.constant 0 : i32
    return %c0_i32, %c0_i32_0 : i32, i32
  }
  func.func @transform_7(%arg0: i32, %arg1: i32) -> (i32, i32) {
    %c0_i32 = arith.constant 0 : i32
    %c0_i32_0 = arith.constant 0 : i32
    %c0_i32_1 = arith.constant 0 : i32
    return %c0_i32, %c0_i32_0 : i32, i32
  }
  func.func @transform_8(%arg0: i32, %arg1: i32) -> (i32, i32) {
    %c0_i32 = arith.constant 0 : i32
    %c0_i32_0 = arith.constant 0 : i32
    %c0_i32_1 = arith.constant 0 : i32
    return %c0_i32, %c0_i32_0 : i32, i32
  }
  func.func @transform_9(%arg0: i32, %arg1: i32) -> (i32, i32, i32) {
    %c0_i32 = arith.constant 0 : i32
    %c0_i32_0 = arith.constant 0 : i32
    return %arg0, %arg1, %c0_i32 : i32, i32, i32
  }
}

</mosaic_0001>

<bundles_post_ra>
// kernel: outconv_forward.1
= control target key start
LH: loop header
LB: loop body
LE: loop exit
PB: predicated region body
PF: predicated region fallthrough
CT: control target
= control target key end

     0   :  { %s5891_s30 = smov 0   ;;  %s5893_s10 = smov 0   ;;  %s8407_s0 = inlined_call_operand.vmem [shape: f32[4,10,16,36], index: 0, kind: input, shape index: {}]   ;;  %s8408_s1 = inlined_call_operand.vmem [shape: f32[36,256], index: 1, kind: input, shape index: {}]   ;;  %s8409_s2 = inlined_call_operand.vmem [shape: f32[1,256], index: 2, kind: input, shape index: {}]   ;;  %s8410_s3 = inlined_call_operand.vmem [shape: f32[1,256], index: 3, kind: input, shape index: {}]   ;;  %s8411_s4 = inlined_call_operand.vmem [shape: bf16[9,256,256], index: 4, kind: input, shape index: {}]   ;;  %s8412_s5 = inlined_call_operand.vmem [shape: f32[1,256], index: 5, kind: input, shape index: {}]   ;;  %s8413_s6 = inlined_call_operand.vmem [shape: f32[1,256], index: 6, kind: input, shape index: {}]   ;;  %s8414_s7 = inlined_call_operand.vmem [shape: f32[256,8], index: 7, kind: input, shape index: {}]   ;;  %s8415_s8 = inlined_call_operand.vmem [shape: f32[1,8], index: 8, kind: input, shape index: {}]   ;;  %s8416_s9 = inlined_call_operand.vmem [shape: f32[2,256,8], index: 9, kind: output, shape index: {}]  }
   0x1   :  { %s5895_s11 = smov 0   ;;  %s5897_s12 = smov 0  }
   0x2   :  { %s5899_s13 = smov 0  }
   0x3 LB: > { %s28_s14 = sadd.s32 1, %s5830_s11  ;;  %s31_s15 = sadd.s32 1, %s5834_s12  ;;  %s5838_s13 = sphi %s5899_s13, %s19_s13   ;;  %s5834_s12 = sphi %s5897_s12, %s8564_s12   ;;  %s5830_s11 = sphi %s5895_s11, %s8563_s11   ;;  %s5826_s10 = sphi %s5893_s10, %s8562_s10   ;;  %s5822_s30 = sphi %s5891_s30, %s8561_s30  }
   0x4   : > { %p29_p0 = scmp.ge.s32.totalorder %s28_s14, 2  ;;  %p4641_p1 = scmp.ge.s32.totalorder %s5838_s13, 1 }
   0x5   : > { %p309_p2 = scmp.lt.s32.totalorder %s5838_s13, 5 }
   0x6   : > { %s8566_s14 = smov (%p29_p0, %s28_s14), 0  ;;  %s8568_s15 = smov (!%p29_p0, %s31_s15), %s5834_s12 }
   0x7   : > { %p310_p3 = pnand %p4641_p1, %p309_p2  ;;  %p33_p4 = scmp.ge.s32.totalorder %s8568_s15, 2 }
   0x9   : > { %s8570_s15 = smov (%p33_p4, %s8568_s15), 0  ;;  %313 = sbr.rel (%p310_p3) target bundleno = 953 (0x3b9), region = 56 }
   0xe   : > { %v400_v0 = vld [vmem:[%s8408_s1 + $0x48] sm:$0xf]  ;;  %vm462_vm0 = vcmask 1043456   ;;  %v399_v1 = vld [vmem:[%s8408_s1 + $0x40] sm:$0xf]  ;;  %v398_v2 = vld [vmem:[%s8408_s1 + $0x38] sm:$0xff] }
   0xf   : > { %4647 = vmatprep.subr.msk.mxu0 %vm462_vm0, %v400_v0  ;;  %v397_v3 = vld [vmem:[%s8408_s1 + $0x30] sm:$0xff]  ;;  %s4642_s24 = sshll.u32 %s5826_s10, 1  ;;  %5316 = vmatprep.subr.msk.mxu1 %vm462_vm0, %v400_v0  ;;  %v396_v4 = vld [vmem:[%s8408_s1 + $0x28] sm:$0xff]  ;;  %v5840_v5 = vmov 0.0   ;;  %v395_v6 = vld [vmem:[%s8408_s1 + $0x20] sm:$0xff]  ;;  %vm401_vm1 = vcmask 293888  }
  0x10   : > { %4648 = vmatpush1.msk.msra.mxu0 %vm462_vm0, %v399_v1  ;;  %533 = vmatprep.mubr.f32.mxu0 %v5840_v5  ;;  %s352_s27 = sadd.s32 %s5822_s30, %s4642_s24  ;;  %v394_v7 = vld [vmem:[%s8408_s1 + $0x18] sm:$0xff]  ;;  %v393_v8 = vld [vmem:[%s8408_s1 + $0x10] sm:$0xff]  ;;  %v392_v9 = vld [vmem:[%s8408_s1 + $0x8] sm:$0xff]  ;;  %p839_p6 = scmp.eq.s32.totalorder %s5822_s30, 0  ;;  %vm1115_vm5 = vcmask 1040384   ;;  %vm1182_vm8 = vcmask 1047552  }
  0x11   : > { %493 = vmatprep.subr.mxu0 %v398_v2  ;;  %p353_p5 = scmp.lt.s32.totalorder %s352_s27, 3  ;;  %5321 = vmatpush1.msk.msra.mxu1 %vm462_vm0, %v399_v1  ;;  %v391_v10 = vld [vmem:[%s8408_s1] sm:$0xff]  ;;  %v5370_v11 = vld [vmem:[%s8411_s4 + $0x174] ss:$8 sps:$4 sm:$0xff]   ;;  %v5377_v14 = vld [vmem:[%s8411_s4 + $0x70] ss:$8 sps:$4 sm:$0xff]  }
  0x12   : > { %494 = vmatpush1.msra.mxu0 %v397_v3  ;;  %5317 = vmatprep.subr.mxu1 %v398_v2  ;;  %v5379_v12 = vld [vmem:[%s8411_s4 + $0x74] ss:$8 sps:$4 sm:$0xff]   ;;  %v5368_v16 = vld [vmem:[%s8411_s4 + $0x170] ss:$8 sps:$4 sm:$0xff]   ;;  %v5373_v17 = vld [vmem:[%s8411_s4 + $0x164] ss:$8 sps:$4 sm:$0xff]  }
  0x13   : > { %495 = vmatprep.subr.mxu0 %v396_v4  ;;  %s8572_s27 = smov (!%p353_p5, %s352_s27), 3  ;;  %5322 = vmatpush1.msra.mxu1 %v397_v3  ;;  %v5371_v21 = vld [vmem:[%s8411_s4 + $0x160] ss:$8 sps:$4 sm:$0xff]   ;;  %v5385_v23 = vld [vmem:[%s8411_s4 + $0x64] ss:$8 sps:$4 sm:$0xff]   ;;  %p883_p7 = scmp.eq.s32.totalorder %s5822_s30, 1 }
  0x14   : > { %496 = vmatpush1.msra.mxu0 %v395_v6  ;;  %5318 = vmatprep.subr.mxu1 %v396_v4  ;;  %s5326_s24 = smul.u32 160, %s8572_s27  ;;  %v5383_v22 = vld [vmem:[%s8411_s4 + $0x60] ss:$8 sps:$4 sm:$0xff]   ;;  %v5376_v24 = vld [vmem:[%s8411_s4 + $0x154] ss:$8 sps:$4 sm:$0xff]   ;;  %s4644_s29 = sshll.u32 %s5822_s30, 4 }
  0x15   : > { %497 = vmatprep.subr.mxu0 %v394_v7  ;;  %5323 = vmatpush1.msra.mxu1 %v395_v6  ;;  %v5374_v25 = vld [vmem:[%s8411_s4 + $0x150] ss:$8 sps:$4 sm:$0xff]   ;;  %v5391_v26 = vld [vmem:[%s8411_s4 + $0x54] ss:$8 sps:$4 sm:$0xff]   ;;  %v5382_v29 = vld [vmem:[%s8411_s4 + $0x144] ss:$8 sps:$4 sm:$0xff]  }
  0x16   : > { %498 = vmatpush1.msra.mxu0 %v393_v8  ;;  %5319 = vmatprep.subr.mxu1 %v394_v7  ;;  %s5961_s28 = scalar_lea.vmem %s8407_s0, %s5326_s24  ;;  %v5389_v28 = vld [vmem:[%s8411_s4 + $0x50] ss:$8 sps:$4 sm:$0xff]   ;;  %v5397_v30 = vld [vmem:[%s8411_s4 + $0x44] ss:$8 sps:$4 sm:$0xff]   ;;  %v5380_v31 = vld [vmem:[%s8411_s4 + $0x140] ss:$8 sps:$4 sm:$0xff]  }
  0x17   : > { %499 = vmatprep.subr.mxu0 %v392_v9  ;;  %5324 = vmatpush1.msra.mxu1 %v393_v8  ;;  %v371_v13 = vld [vmem:[%s5961_s28] sm:$0xff]  ;;  %v372_v15 = vld [vmem:[%s5961_s28 + $0x8] sm:$0xff]  ;;  %v373_v18 = vld [vmem:[%s5961_s28 + $0x10] sm:$0xff]  ;;  %s840_s27 = scalar_select %p839_p6, 1, 0  ;;  %vm4534_vm14 = vcmask 64512  }
  0x18   : > { %500 = vmatpush1.msra.mxu0 %v391_v10  ;;  %5320 = vmatprep.subr.mxu1 %v392_v9  ;;  %v387_v19 = vld [vmem:[%s5961_s28 + $0x80] sm:$0xff]  ;;  %v388_v20 = vld [vmem:[%s5961_s28 + $0x88] sm:$0xff]  ;;  %v374_v27 = vld [vmem:[%s5961_s28 + $0x18] sm:$0xff]  ;;  %vm1116_vm6 = vsmask.f32 256  ;;  %p361_p8 = scmp.lt.s32.totalorder %s5826_s10, 1 }
  0x19   : > { %4649 = vmatmul.mubr.msk.f32.vlgmr.msra.gmra.mxu0 %vm401_vm1, %v371_v13  ;;  %5325 = vmatpush1.msra.mxu1 %v391_v10  ;;  %v375_v32 = vld [vmem:[%s5961_s28 + $0x20] sm:$0xff]  ;;  %v5388_v34 = vld [vmem:[%s8411_s4 + $0x134] ss:$8 sps:$4 sm:$0xff]   ;;  %v376_v36 = vld [vmem:[%s5961_s28 + $0x28] sm:$0xff]  ;;  %vm1183_vm9 = vsmask.f32 7424 }
  0x1a   : > { %539 = vmatprep.mubr.f32.mxu0 %v5840_v5  ;;  %629 = vmatprep.mubr.f32.mxu1 %v5840_v5  ;;  %v5395_v33 = vld [vmem:[%s8411_s4 + $0x40] ss:$8 sps:$4 sm:$0xff]   ;;  %v5403_v35 = vld [vmem:[%s8411_s4 + $0x34] ss:$8 sps:$4 sm:$0xff]   ;;  %v5386_v37 = vld [vmem:[%s8411_s4 + $0x130] ss:$8 sps:$4 sm:$0xff]  }
  0x1b   : > { %1426 = vmatprep.subr.bf16.mxu1 %v5370_v11  ;;  %1699 = vmatprep.subr.bf16.mxu0 %v5379_v12  ;;  %v5401_v38 = vld [vmem:[%s8411_s4 + $0x30] ss:$8 sps:$4 sm:$0xff]   ;;  %v5394_v39 = vld [vmem:[%s8411_s4 + $0x124] ss:$8 sps:$4 sm:$0xff]   ;;  %v5392_v42 = vld [vmem:[%s8411_s4 + $0x120] ss:$8 sps:$4 sm:$0xff]  }
  0x1c   : > { %1700 = vmatpush1.bf16.msra.mxu0 %v5377_v14  ;;  %4665 = vmatmul.mubr.msk.f32.vlgmr.msra.gmra.mxu1 %vm401_vm1, %v387_v19  ;;  %v5409_v40 = vld [vmem:[%s8411_s4 + $0x24] ss:$8 sps:$4 sm:$0xff]   ;;  %v377_v41 = vld [vmem:[%s5961_s28 + $0x30] sm:$0xff]  ;;  %v5407_v43 = vld [vmem:[%s8411_s4 + $0x20] ss:$8 sps:$4 sm:$0xff]   ;;  %p363_p9 = scmp.lt.s32.totalorder %s4644_s29, 31 }
  0x1d   : > { %4650 = vmatmul.mubr.msk.f32.gmra.mxu0 %vm401_vm1, %v372_v15  ;;  %635 = vmatprep.mubr.f32.mxu1 %v5840_v5  ;;  %v5400_v44 = vld [vmem:[%s8411_s4 + $0x114] ss:$8 sps:$4 sm:$0xff]   ;;  %v5398_v47 = vld [vmem:[%s8411_s4 + $0x110] ss:$8 sps:$4 sm:$0xff]   ;;  %v379_v49 = vld [vmem:[%s5961_s28 + $0x40] sm:$0xff]  ;;  %s8574_s10 = smov (!%p361_p8, %s5826_s10), 1 }
  0x1e   : > { %545 = vmatprep.mubr.f32.mxu0 %v5840_v5  ;;  %1427 = vmatpush1.bf16.msra.mxu1 %v5368_v16  ;;  %v5415_v45 = vld [vmem:[%s8411_s4 + $0x14] ss:$8 sps:$4 sm:$0xff]   ;;  %v5413_v48 = vld [vmem:[%s8411_s4 + $0x10] ss:$8 sps:$4 sm:$0xff]   ;;  %v5406_v50 = vld [vmem:[%s8411_s4 + $0x104] ss:$8 sps:$4 sm:$0xff]  }
  0x1f   : > { %1428 = vmatprep.subr.bf16.mxu1 %v5373_v17  ;;  %1701 = vmatprep.subr.bf16.mxu0 %v5385_v23  ;;  %v378_v46 = vld [vmem:[%s5961_s28 + $0x38] sm:$0xff]  ;;  %v5421_v51 = vld [vmem:[%s8411_s4 + $0x4] ss:$8 sps:$4 sm:$0xff]   ;;  %v5404_v52 = vld [vmem:[%s8411_s4 + $0x100] ss:$8 sps:$4 sm:$0xff]   ;;  %s8576_s29 = smov (!%p363_p9, %s4644_s29), 31 }
  0x20   : > { %4666 = vmatmul.mubr.msk.f32.gmra.mxu1 %vm401_vm1, %v388_v20  ;;  %1702 = vmatpush1.bf16.msra.mxu0 %v5383_v22  ;;  %v5419_v53 = vld [vmem:[%s8411_s4] ss:$8 sps:$4 sm:$0xff]   ;;  %v5412_v54 = vld [vmem:[%s8411_s4 + $0x1f4] ss:$8 sps:$4 sm:$0xff]   ;;  %v5410_v57 = vld [vmem:[%s8411_s4 + $0x1f0] ss:$8 sps:$4 sm:$0xff]  }
  0x21   : > { %4651 = vmatmul.mubr.msk.f32.gmra.mxu0 %vm401_vm1, %v373_v18  ;;  %1703 = vmatprep.subr.bf16.mxu0 %v5391_v26  ;;  %v5427_v55 = vld [vmem:[%s8411_s4 + $0xf4] ss:$8 sps:$4 sm:$0xff]   ;;  %v380_v56 = vld [vmem:[%s5961_s28 + $0x48] sm:$0xff]  ;;  %v5425_v58 = vld [vmem:[%s8411_s4 + $0xf0] ss:$8 sps:$4 sm:$0xff]   ;;  %s4645_s16 = sshll.u32 %s8574_s10, 5 }
  0x22   : > { %551 = vmatprep.mubr.f32.mxu0 %v5840_v5  ;;  %1429 = vmatpush1.bf16.msra.mxu1 %v5371_v21  ;;  %v5418_v59 = vld [vmem:[%s8411_s4 + $0x1e4] ss:$8 sps:$4 sm:$0xff]   ;;  %v381_v61 = vld [vmem:[%s5961_s28 + $0x50] sm:$0xff]  ;;  %v5416_v62 = vld [vmem:[%s8411_s4 + $0x1e0] ss:$8 sps:$4 sm:$0xff]   ;;  %s366_s17 = sadd.s32 %s4645_s16, %s8576_s29 }
  0x23   : > { %1430 = vmatprep.subr.bf16.mxu1 %v5376_v24  ;;  %641 = vmatprep.mubr.f32.mxu1 %v5840_v5  ;;  %v5433_v60 = vld [vmem:[%s8411_s4 + $0xe4] ss:$8 sps:$4 sm:$0xff]   ;;  %v5431_v63 = vld [vmem:[%s8411_s4 + $0xe0] ss:$8 sps:$4 sm:$0xff]   ;;  %v5424_v0 = vld [vmem:[%s8411_s4 + $0x1d4] ss:$8 sps:$4 sm:$0xff]  }
  0x24   : > { %1704 = vmatpush1.bf16.msra.mxu0 %v5389_v28  ;;  %v382_v1 = vld [vmem:[%s5961_s28 + $0x58] sm:$0xff]  ;;  %v5430_v3 = vld [vmem:[%s8411_s4 + $0x1c4] ss:$8 sps:$4 sm:$0xff]   ;;  %v5428_v6 = vld [vmem:[%s8411_s4 + $0x1c0] ss:$8 sps:$4 sm:$0xff]   ;;  %s4646_s18 = sshll.u32 %s366_s17, 3 }
  0x25   : > { %4652 = vmatmul.mubr.msk.f32.gmra.mxu0 %vm401_vm1, %v374_v27  ;;  %1705 = vmatprep.subr.bf16.mxu0 %v5397_v30  ;;  %v5422_v2 = vld [vmem:[%s8411_s4 + $0x1d0] ss:$8 sps:$4 sm:$0xff]   ;;  %v383_v4 = vld [vmem:[%s5961_s28 + $0x60] sm:$0xff]  ;;  %v5436_v7 = vld [vmem:[%s8411_s4 + $0x1b4] ss:$8 sps:$4 sm:$0xff]   ;;  %s8342_s21 = scalar_lea.vmem %s8416_s9, %s4646_s18 }
  0x26   : > { %557 = vmatprep.mubr.f32.mxu0 %v5840_v5  ;;  %1431 = vmatpush1.bf16.msra.mxu1 %v5374_v25  ;;  %v384_v8 = vld [vmem:[%s5961_s28 + $0x68] sm:$0xff]  ;;  %v5434_v9 = vld [vmem:[%s8411_s4 + $0x1b0] ss:$8 sps:$4 sm:$0xff]   ;;  %v5439_v12 = vld [vmem:[%s8411_s4 + $0xd4] ss:$8 sps:$4 sm:$0xff]  }
  0x27   : > { %1432 = vmatprep.subr.bf16.mxu1 %v5382_v29  ;;  %v385_v10 = vld [vmem:[%s5961_s28 + $0x70] sm:$0xff]  ;;  %v386_v11 = vld [vmem:[%s5961_s28 + $0x78] sm:$0xff]  ;;  %v5442_v15 = vld [vmem:[%s8411_s4 + $0x1a4] ss:$8 sps:$4 sm:$0xff]  }
  0x28   : > { %1706 = vmatpush1.bf16.msra.mxu0 %v5395_v33  ;;  %v389_v13 = vld [vmem:[%s5961_s28 + $0x90] sm:$0xff]  ;;  %v5445_v16 = vld [vmem:[%s8411_s4 + $0xc4] ss:$8 sps:$4 sm:$0xff]   ;;  %v5440_v17 = vld [vmem:[%s8411_s4 + $0x1a0] ss:$8 sps:$4 sm:$0xff]   ;;  %v656_v33 = vlaneseq }
  0x29   : > { %4653 = vmatmul.mubr.msk.f32.gmra.mxu0 %vm401_vm1, %v375_v32  ;;  %1707 = vmatprep.subr.bf16.mxu0 %v5403_v35  ;;  %v5437_v14 = vld [vmem:[%s8411_s4 + $0xd0] ss:$8 sps:$4 sm:$0xff]   ;;  %v5448_v19 = vld [vmem:[%s8411_s4 + $0x194] ss:$8 sps:$4 sm:$0xff]   ;;  %v5454_v23 = vld [vmem:[%s8411_s4 + $0x184] ss:$8 sps:$4 sm:$0xff]  }
  0x2a   : > { %563 = vmatprep.mubr.f32.mxu0 %v5840_v5  ;;  %1433 = vmatpush1.bf16.msra.mxu1 %v5380_v31  ;;  %v390_v18 = vld [vmem:[%s5961_s28 + $0x98] sm:$0xff]  ;;  %v5457_v24 = vld [vmem:[%s8411_s4 + $0xa4] ss:$8 sps:$4 sm:$0xff]   ;;  %v5452_v25 = vld [vmem:[%s8411_s4 + $0x180] ss:$8 sps:$4 sm:$0xff]  }
  0x2b   : > { %1434 = vmatprep.subr.bf16.mxu1 %v5388_v34  ;;  %4667 = vmatmul.mubr.msk.f32.gmra.mxu1 %vm401_vm1, %v389_v13  ;;  %v5451_v20 = vld [vmem:[%s8411_s4 + $0xb4] ss:$8 sps:$4 sm:$0xff]   ;;  %v5446_v21 = vld [vmem:[%s8411_s4 + $0x190] ss:$8 sps:$4 sm:$0xff]   ;;  %v5455_v26 = vld [vmem:[%s8411_s4 + $0xa0] ss:$8 sps:$4 sm:$0xff]  }
  0x2c   : > { %1708 = vmatpush1.bf16.msra.mxu0 %v5401_v38  ;;  %647 = vmatprep.mubr.f32.mxu1 %v5840_v5  ;;  %v5449_v22 = vld [vmem:[%s8411_s4 + $0xb0] ss:$8 sps:$4 sm:$0xff]   ;;  %v5460_v27 = vld [vmem:[%s8411_s4 + $0x274] ss:$8 sps:$4 sm:$0xff]   ;;  %v5469_v30 = vld [vmem:[%s8411_s4 + $0x84] ss:$8 sps:$4 sm:$0xff]  }
  0x2d   : > { %4654 = vmatmul.mubr.msk.f32.gmra.mxu0 %vm401_vm1, %v376_v36  ;;  %1709 = vmatprep.subr.bf16.mxu0 %v5409_v40  ;;  %v5463_v28 = vld [vmem:[%s8411_s4 + $0x94] ss:$8 sps:$4 sm:$0xff]   ;;  %v5461_v29 = vld [vmem:[%s8411_s4 + $0x90] ss:$8 sps:$4 sm:$0xff]   ;;  %v5467_v31 = vld [vmem:[%s8411_s4 + $0x80] ss:$8 sps:$4 sm:$0xff]  }
  0x2e   : > { %569 = vmatprep.mubr.f32.mxu0 %v5840_v5  ;;  %1435 = vmatpush1.bf16.msra.mxu1 %v5386_v37  ;;  %v5475_v32 = vld [vmem:[%s8411_s4 + $0x374] ss:$8 sps:$4 sm:$0xff]   ;;  %v657_v34 = vshrl.u32 %v656_v33, 7  ;;  %v654_v36 = vld [vmem:[%s8409_s2] sm:$0x3]  ;;  %vm6316_vm7 = vmand %vm1115_vm5, %vm1116_vm6 }
  0x2f   : > { %1436 = vmatprep.subr.bf16.mxu1 %v5394_v39  ;;  %4668 = vmatmul.mubr.msk.f32.gmra.mxu1 %vm401_vm1, %v390_v18  ;;  %v706_v38 = vld [vmem:[%s8410_s3] sm:$0x3]  ;;  %v5466_v18 = vld [vmem:[%s8411_s4 + $0x264] ss:$8 sps:$4 sm:$0xff]   ;;  %v5472_v33 = vld [vmem:[%s8411_s4 + $0x254] ss:$8 sps:$4 sm:$0xff]  }
  0x30   : > { %1710 = vmatpush1.bf16.msra.mxu0 %v5407_v43  ;;  %v6220_v35 = vsub.s32 0, %v657_v34  ;;  %v6225_v37 = vsub.s32 1, %v657_v34  ;;  %vm6707_vm10 = vmand %vm1182_vm8, %vm1183_vm9  ;;  %s884_s28 = scalar_select %p883_p7, 1, 0 }
  0x31   : > { %4655 = vmatmul.mubr.msk.f32.gmra.mxu0 %vm401_vm1, %v377_v41  ;;  %1711 = vmatprep.subr.bf16.mxu0 %v5415_v45 }
  0x32   : > { %575 = vmatprep.mubr.f32.mxu0 %v5840_v5  ;;  %1437 = vmatpush1.bf16.msra.mxu1 %v5392_v42  ;;  %8450 = vst [vmem:[#allocation2_spill] sm:$0xff] %v6220_v35  ;;  %8451 = vst [vmem:[#allocation3_spill] sm:$0xff] %v6225_v37  ;;  %v6231_v39 = vrot.slane %v654_v36, %v6220_v35  ;;  %v6235_v40 = vrot.slane %v706_v38, %v6220_v35 }
  0x33   : > { %1438 = vmatprep.subr.bf16.mxu1 %v5400_v44  ;;  %v6238_v41 = vrot.slane %v654_v36, %v6225_v37  ;;  %v6242_v44 = vrot.slane %v706_v38, %v6225_v37 }
  0x34   : > { %1712 = vmatpush1.bf16.msra.mxu0 %v5413_v48 }
  0x35   : > { %4656 = vmatmul.mubr.msk.f32.gmra.mxu0 %vm401_vm1, %v378_v46  ;;  %1713 = vmatprep.subr.bf16.mxu0 %v5421_v51 }
  0x36   : > { %581 = vmatprep.mubr.f32.mxu0 %v5840_v5  ;;  %1439 = vmatpush1.bf16.msra.mxu1 %v5398_v47 }
  0x37   : > { %1440 = vmatprep.subr.bf16.mxu1 %v5406_v50 }
  0x38   : > { %1714 = vmatpush1.bf16.msra.mxu0 %v5419_v53 }
  0x39   : > { %4657 = vmatmul.mubr.msk.f32.gmra.mxu0 %vm401_vm1, %v379_v49  ;;  %1715 = vmatprep.subr.bf16.mxu0 %v5427_v55  ;;  %v841_v49 = vstv %s840_s27 }
  0x3a   : > { %587 = vmatprep.mubr.f32.mxu0 %v5840_v5  ;;  %1441 = vmatpush1.bf16.msra.mxu1 %v5404_v52  ;;  %vm6250_vm2 = vcmp.eq.s32.totalorder %v841_v49, 1 }
  0x3b   : > { %1442 = vmatprep.subr.bf16.mxu1 %v5412_v54  ;;  %vm4733_vm3 = vmneg %vm6250_vm2 }
  0x3c   : > { %1716 = vmatpush2.bf16.msra.mxu0 %v5425_v58  ;;  %vm6266_vm4 = vmpackc.low %vm4733_vm3, %vm4733_vm3 }
  0x3d   : > { %4658 = vmatmul.mubr.msk.f32.gmra.mxu0 %vm401_vm1, %v380_v56  ;;  %1717 = vmatprep.subr.bf16.mxu0 %v5433_v60  ;;  %v5481_v56 = vld [vmem:[%s8411_s4 + $0x364] ss:$8 sps:$4 sm:$0xff]  }
  0x3e   : > { %593 = vmatprep.mubr.f32.mxu0 %v5840_v5  ;;  %1443 = vmatpush2.bf16.msra.mxu1 %v5410_v57 }
  0x3f   : > { %1444 = vmatprep.subr.bf16.mxu1 %v5418_v59 }
  0x40   : > { %1718 = vmatpush2.bf16.msra.mxu0 %v5431_v63 }
  0x41   : > { %4659 = vmatmul.mubr.msk.f32.gmra.mxu0 %vm401_vm1, %v381_v61  ;;  %1719 = vmatprep.subr.bf16.mxu0 %v5439_v12  ;;  %v5458_v12 = vld [vmem:[%s8411_s4 + $0x270] ss:$8 sps:$4 sm:$0xff]  }
  0x42   : > { %599 = vmatprep.mubr.f32.mxu0 %v5840_v5  ;;  %1445 = vmatpush2.bf16.msra.mxu1 %v5416_v62 }
  0x43   : > { %1446 = vmatprep.subr.bf16.mxu1 %v5424_v0 }
  0x44   : > { %1720 = vmatpush2.bf16.msra.mxu0 %v5437_v14 }
  0x45   : > { %4660 = vmatmul.mubr.msk.f32.gmra.mxu0 %vm401_vm1, %v382_v1  ;;  %1721 = vmatprep.subr.bf16.mxu0 %v5445_v16 }
  0x46   : > { %605 = vmatprep.mubr.f32.mxu0 %v5840_v5  ;;  %1447 = vmatpush2.bf16.msra.mxu1 %v5422_v2 }
  0x47   : > { %1448 = vmatprep.subr.bf16.mxu1 %v5430_v3 }
  0x49   : > { %4661 = vmatmul.mubr.msk.f32.gmra.mxu0 %vm401_vm1, %v383_v4 }
  0x4a   : > { %611 = vmatprep.mubr.f32.mxu0 %v5840_v5  ;;  %1449 = vmatpush2.bf16.msra.mxu1 %v5428_v6 }
  0x4b   : > { %1450 = vmatprep.subr.bf16.mxu1 %v5436_v7  ;;  %v5476_v7 = vld [vmem:[%s8411_s4 + $0x240] ss:$8 sps:$4 sm:$0xff]  }
  0x4d   : > { %4662 = vmatmul.mubr.msk.f32.gmra.mxu0 %vm401_vm1, %v384_v8 }
  0x4e   : > { %617 = vmatprep.mubr.f32.mxu0 %v5840_v5  ;;  %1451 = vmatpush2.bf16.msra.mxu1 %v5434_v9 }
  0x4f   : > { %1452 = vmatprep.subr.bf16.mxu1 %v5442_v15 }
  0x51   : > { %4663 = vmatmul.mubr.msk.f32.gmra.mxu0 %vm401_vm1, %v385_v10 }
  0x52   : > { %623 = vmatprep.mubr.f32.mxu0 %v5840_v5  ;;  %v5443_v5 = vld [vmem:[%s8411_s4 + $0xc0] ss:$8 sps:$4 sm:$0xff]   ;;  %1453 = vmatpush2.bf16.msra.mxu1 %v5440_v17 }
  0x53   : > { %1722 = vmatpush2.bf16.msra.mxu0 %v5443_v5  ;;  %1454 = vmatprep.subr.bf16.mxu1 %v5448_v19 }
  0x54   : > { %1723 = vmatprep.subr.bf16.mxu0 %v5451_v20 }
  0x55   : > { %4664 = vmatmul.mubr.msk.f32.gmra.mxu0 %vm401_vm1, %v386_v11 }
  0x56   : > { %1455 = vmatpush2.bf16.msra.mxu1 %v5446_v21 }
  0x57   : > { %1724 = vmatpush2.bf16.msra.mxu0 %v5449_v22  ;;  %1456 = vmatprep.subr.bf16.mxu1 %v5454_v23 }
  0x58   : > { %1725 = vmatprep.subr.bf16.mxu0 %v5457_v24 }
  0x5a   : > { %1457 = vmatpush2.bf16.msra.mxu1 %v5452_v25 }
  0x5b   : > { %1726 = vmatpush2.bf16.msra.mxu0 %v5455_v26  ;;  %2005 = vmatprep.subr.bf16.mxu1 %v5460_v27 }
  0x5c   : > { %1727 = vmatprep.subr.bf16.mxu0 %v5463_v28  ;;  %v5464_v28 = vld [vmem:[%s8411_s4 + $0x260] ss:$8 sps:$4 sm:$0xff]  }
  0x5f   : > { %1728 = vmatpush2.bf16.msra.mxu0 %v5461_v29 }
  0x60   : > { %1729 = vmatprep.subr.bf16.mxu0 %v5469_v30 }
  0x63   : > { %1730 = vmatpush2.bf16.msra.mxu0 %v5467_v31 }
  0x64   : > { %2369 = vmatprep.subr.bf16.mxu0 %v5475_v32 }
  0xd9   : > { %v535_v42 = vpop.f32.mrf.mxu0 }
  0xda   : > { %v666_v43 = vmul.f32 %v6231_v39, %v535_v42 }
  0xdb   : > { %v537_v45 = vpop.f32.mrf.mxu0 }
  0xdc   : > { %v718_v46 = vadd.f32 %v6235_v40, %v666_v43  ;;  %v667_v47 = vmul.f32 %v6238_v41, %v537_v45 }
  0xdd   : > { %v541_v48 = vpop.f32.mrf.mxu0 }
  0xde   : > { %v719_v50 = vadd.f32 %v6242_v44, %v667_v47  ;;  %v668_v51 = vmul.f32 %v6231_v39, %v541_v48  ;;  %v758_v53 = vmax.f32 %v718_v46, 0.0  ;;  %v5797_v47 = vld [vmem:[%s8411_s4 + $0x880] ss:$8 sps:$4 sm:$0xff]  }
  0xdf   : > { %v543_v52 = vpop.f32.mrf.mxu0 }
  0xe0   : > { %v720_v54 = vadd.f32 %v6235_v40, %v668_v51  ;;  %v669_v55 = vmul.f32 %v6238_v41, %v543_v52  ;;  %v759_v58 = vmax.f32 %v719_v50, 0.0  ;;  %v927_v63 = vsel %vm6250_vm2, 0.0, %v758_v53  ;;  %v5470_v50 = vld [vmem:[%s8411_s4 + $0x250] ss:$8 sps:$4 sm:$0xff]  }
  0xe1   : > { %v547_v57 = vpop.f32.mrf.mxu0  ;;  %v5473_v51 = vld [vmem:[%s8411_s4 + $0x370] ss:$8 sps:$4 sm:$0xff]  }
  0xe2   : > { %v760_v59 = vmax.f32 %v720_v54, 0.0  ;;  %v721_v60 = vadd.f32 %v6242_v44, %v669_v55  ;;  %v670_v61 = vmul.f32 %v6231_v39, %v547_v57  ;;  %v928_v8 = vsel %vm6250_vm2, 0.0, %v759_v58  ;;  %v5478_v55 = vld [vmem:[%s8411_s4 + $0x244] ss:$8 sps:$4 sm:$0xff]  }
  0xe3   : > { %v549_v62 = vpop.f32.mrf.mxu0 }
  0xe4   : > { %v929_v0 = vsel %vm6250_vm2, 0.0, %v760_v59  ;;  %v761_v1 = vmax.f32 %v721_v60, 0.0  ;;  %v722_v3 = vadd.f32 %v6235_v40, %v670_v61  ;;  %v671_v4 = vmul.f32 %v6238_v41, %v549_v62 }
  0xe5   : > { %v6262_v2 = vpack.c.bf16 %v929_v0, %v927_v63  ;;  %v553_v6 = vpop.f32.mrf.mxu0  ;;  %v4741_v14 = vpack.c.bf16 %v760_v59, %v758_v53 }
  0xe6   : > { %v930_v9 = vsel %vm6250_vm2, 0.0, %v761_v1  ;;  %v4736_v10 = vpack.c.bf16 %v761_v1, %v759_v58  ;;  %v672_v11 = vmul.f32 %v6231_v39, %v553_v6  ;;  %v723_v16 = vadd.f32 %v6242_v44, %v671_v4 }
  0xe7   : > { %v988_v13 = vshrl.u32 %v6262_v2, 16  ;;  %v6279_v15 = vpack.c.bf16 %v930_v9, %v928_v8  ;;  %v555_v17 = vpop.f32.mrf.mxu0  ;;  %v762_v20 = vmax.f32 %v722_v3, 0.0  ;;  %v991_v24 = vshll.u32 %v6262_v2, 16  ;;  %v5479_v8 = vld [vmem:[%s8411_s4 + $0x360] ss:$8 sps:$4 sm:$0xff]  }
  0xe8   : > { %v724_v5 = vadd.f32 %v6235_v40, %v672_v11  ;;  %v673_v19 = vmul.f32 %v6238_v41, %v555_v17  ;;  %4737 = vmatprep.mubr.msk.bf16.mxu1 %vm6266_vm4, %v4736_v10  ;;  %v763_v29 = vmax.f32 %v723_v16, 0.0  ;;  %v5487_v16 = vld [vmem:[%s8411_s4 + $0x354] ss:$8 sps:$4 sm:$0xff]  }
  0xe9   : > { %v559_v21 = vpop.f32.mrf.mxu0  ;;  %4742 = vmatmul.mubr.msk.bf16.vlgmr.msra.gmra.mxu1 %vm6266_vm4, %v4741_v14  ;;  %v995_v22 = vshrl.u32 %v6279_v15, 16  ;;  %v990_v23 = vrot.slane %v988_v13, 7  ;;  %v998_v32 = vshll.u32 %v6279_v15, 16  ;;  %v5484_v14 = vld [vmem:[%s8411_s4 + $0x234] ss:$8 sps:$4 sm:$0xff]  }
  0xea   : > { %v764_v25 = vmax.f32 %v724_v5, 0.0  ;;  %v725_v26 = vadd.f32 %v6242_v44, %v673_v19  ;;  %v674_v27 = vmul.f32 %v6231_v39, %v559_v21  ;;  %2006 = vmatpush1.bf16.msra.mxu1 %v5458_v12  ;;  %v5545_v15 = vld [vmem:[%s8411_s4 + $0x3b0] ss:$8 sps:$4 sm:$0xff]  }
  0xeb   : > { %v561_v30 = vpop.f32.mrf.mxu0  ;;  %2007 = vmatprep.subr.bf16.mxu1 %v5466_v18  ;;  %v997_v31 = vrot.slane %v995_v22, 7  ;;  %v993_v42 = vor.u32 %v991_v24, %v990_v23 }
  0xec   : > { %v6306_v34 = vpack.c.bf16 %v764_v25, %v762_v20  ;;  %v765_v36 = vmax.f32 %v725_v26, 0.0  ;;  %v675_v38 = vmul.f32 %v6238_v41, %v561_v30  ;;  %v726_v43 = vadd.f32 %v6235_v40, %v674_v27  ;;  %v5482_v27 = vld [vmem:[%s8411_s4 + $0x230] ss:$8 sps:$4 sm:$0xff]  }
  0xed   : > { %v565_v45 = vpop.f32.mrf.mxu0  ;;  %v1000_v46 = vor.u32 %v998_v32, %v997_v31  ;;  %v1118_v60 = vsel %vm6316_vm7, 0, %v993_v42 }
  0xee   : > { %v6320_v48 = vpack.c.bf16 %v765_v36, %v763_v29  ;;  %v676_v49 = vmul.f32 %v6231_v39, %v565_v45  ;;  %2008 = vmatpush1.bf16.msra.mxu1 %v5464_v28  ;;  %v727_v52 = vadd.f32 %v6242_v44, %v675_v38  ;;  %v1002_v57 = vshrl.u32 %v6306_v34, 16  ;;  %v5485_v28 = vld [vmem:[%s8411_s4 + $0x350] ss:$8 sps:$4 sm:$0xff]   ;;  %v5493_v36 = vld [vmem:[%s8411_s4 + $0x344] ss:$8 sps:$4 sm:$0xff]  }
  0xef   : > { %v567_v53 = vpop.f32.mrf.mxu0  ;;  %v1119_v54 = vsel %vm6316_vm7, 0, %v1000_v46  ;;  %2009 = vmatprep.subr.bf16.mxu1 %v5472_v33  ;;  %v766_v62 = vmax.f32 %v726_v43, 0.0  ;;  %v1005_v1 = vshll.u32 %v6306_v34, 16  ;;  %v5490_v33 = vld [vmem:[%s8411_s4 + $0x224] ss:$8 sps:$4 sm:$0xff]  }
  0xf0   : > { %v728_v58 = vadd.f32 %v6235_v40, %v676_v49  ;;  %v677_v59 = vmul.f32 %v6238_v41, %v567_v53  ;;  %1468 = vmatprep.mubr.bf16.mxu1 %v6320_v48  ;;  %1731 = vmatprep.mubr.bf16.mxu0 %v1119_v54  ;;  %v1009_v61 = vshrl.u32 %v6320_v48, 16  ;;  %v1004_v0 = vrot.slane %v1002_v57, 7 }
  0xf1   : > { %v571_v63 = vpop.f32.mrf.mxu0  ;;  %1469 = vmatmul.mubr.bf16.gmra.mxu1 %v6306_v34  ;;  %1732 = vmatmul.mubr.bf16.vlgmr.msra.gmra.mxu0 %v1118_v60  ;;  %v767_v10 = vmax.f32 %v727_v52, 0.0  ;;  %v1012_v12 = vshll.u32 %v6320_v48, 16 }
  0xf2   : > { %v768_v3 = vmax.f32 %v728_v58, 0.0  ;;  %v729_v4 = vadd.f32 %v6242_v44, %v677_v59  ;;  %v678_v6 = vmul.f32 %v6231_v39, %v571_v63  ;;  %2010 = vmatpush1.bf16.msra.mxu1 %v5470_v50  ;;  %2370 = vmatpush1.bf16.msra.mxu0 %v5473_v51  ;;  %v1011_v9 = vrot.slane %v1009_v61, 7  ;;  %v5491_v58 = vld [vmem:[%s8411_s4 + $0x340] ss:$8 sps:$4 sm:$0xff]  }
  0xf3   : > { %v573_v11 = vpop.f32.mrf.mxu0  ;;  %2011 = vmatprep.subr.bf16.mxu1 %v5478_v55  ;;  %2371 = vmatprep.subr.bf16.mxu0 %v5481_v56  ;;  %v1007_v19 = vor.u32 %v1005_v1, %v1004_v0  ;;  %v5488_v56 = vld [vmem:[%s8411_s4 + $0x220] ss:$8 sps:$4 sm:$0xff]   ;;  %v5496_v0 = vld [vmem:[%s8411_s4 + $0x214] ss:$8 sps:$4 sm:$0xff]  }
  0xf4   : > { %v6366_v17 = vpack.c.bf16 %v768_v3, %v766_v62  ;;  %v769_v18 = vmax.f32 %v729_v4, 0.0  ;;  %v679_v5 = vmul.f32 %v6238_v41, %v573_v11  ;;  %v730_v20 = vadd.f32 %v6235_v40, %v678_v6  ;;  %v5499_v3 = vld [vmem:[%s8411_s4 + $0x334] ss:$8 sps:$4 sm:$0xff]  }
  0xf5   : > { %v577_v21 = vpop.f32.mrf.mxu0  ;;  %v1014_v23 = vor.u32 %v1012_v12, %v1011_v9  ;;  %v6401_v45 = vsel %vm6316_vm7, 0, %v1007_v19 }
  0xf6   : > { %v6374_v25 = vpack.c.bf16 %v769_v18, %v767_v10  ;;  %v680_v26 = vmul.f32 %v6231_v39, %v577_v21  ;;  %2012 = vmatpush1.bf16.msra.mxu1 %v5476_v7  ;;  %2372 = vmatpush1.bf16.msra.mxu0 %v5479_v8  ;;  %v731_v29 = vadd.f32 %v6242_v44, %v679_v5  ;;  %v8426_v38 = vshrl.u32 %v6366_v17, 16  ;;  %v5494_v18 = vld [vmem:[%s8411_s4 + $0x210] ss:$8 sps:$4 sm:$0xff]  }
  0xf7   : > { %v579_v30 = vpop.f32.mrf.mxu0  ;;  %v6386_v31 = vsel %vm6316_vm7, 0, %v1014_v23  ;;  %2013 = vmatprep.subr.bf16.mxu1 %v5484_v14  ;;  %2373 = vmatprep.subr.bf16.mxu0 %v5487_v16  ;;  %v770_v49 = vmax.f32 %v730_v20, 0.0  ;;  %v8431_v52 = vshll.u32 %v6366_v17, 16  ;;  %v5497_v5 = vld [vmem:[%s8411_s4 + $0x330] ss:$8 sps:$4 sm:$0xff]  }
  0xf8   : > { %v732_v42 = vadd.f32 %v6235_v40, %v680_v26  ;;  %v681_v43 = vmul.f32 %v6238_v41, %v579_v30  ;;  %1741 = vmatprep.mubr.bf16.mxu0 %v6386_v31  ;;  %1478 = vmatprep.mubr.bf16.mxu1 %v6374_v25  ;;  %v1023_v46 = vshrl.u32 %v6374_v25, 16  ;;  %v1018_v51 = vrot.slane %v8426_v38, 7  ;;  %v5502_v23 = vld [vmem:[%s8411_s4 + $0x204] ss:$8 sps:$4 sm:$0xff]  }
  0xf9   : > { %v583_v50 = vpop.f32.mrf.mxu0  ;;  %1479 = vmatmul.mubr.bf16.gmra.mxu1 %v6366_v17  ;;  %1742 = vmatmul.mubr.bf16.gmra.mxu0 %v6401_v45  ;;  %v771_v60 = vmax.f32 %v731_v29, 0.0  ;;  %v1026_v63 = vshll.u32 %v6374_v25, 16  ;;  %v5505_v26 = vld [vmem:[%s8411_s4 + $0x324] ss:$8 sps:$4 sm:$0xff]  }
  0xfa   : > { %v772_v53 = vmax.f32 %v732_v42, 0.0  ;;  %v733_v54 = vadd.f32 %v6242_v44, %v681_v43  ;;  %v682_v55 = vmul.f32 %v6231_v39, %v583_v50  ;;  %2014 = vmatpush1.bf16.msra.mxu1 %v5482_v27  ;;  %2374 = vmatpush1.bf16.msra.mxu0 %v5485_v28  ;;  %v1025_v59 = vrot.slane %v1023_v46, 7 }
  0xfb   : > { %v585_v62 = vpop.f32.mrf.mxu0  ;;  %2015 = vmatprep.subr.bf16.mxu1 %v5490_v33  ;;  %2375 = vmatprep.subr.bf16.mxu0 %v5493_v36  ;;  %v1021_v8 = vor.u32 %v8431_v52, %v1018_v51 }
  0xfc   : > { %v6426_v4 = vpack.c.bf16 %v772_v53, %v770_v49  ;;  %v773_v6 = vmax.f32 %v733_v54, 0.0  ;;  %v683_v7 = vmul.f32 %v6238_v41, %v585_v62  ;;  %v734_v9 = vadd.f32 %v6235_v40, %v682_v55  ;;  %v5500_v54 = vld [vmem:[%s8411_s4 + $0x200] ss:$8 sps:$4 sm:$0xff]   ;;  %v5508_v62 = vld [vmem:[%s8411_s4 + $0x2f4] ss:$8 sps:$4 sm:$0xff]  }
  0xfd   : > { %v589_v10 = vpop.f32.mrf.mxu0  ;;  %v1028_v11 = vor.u32 %v1026_v63, %v1025_v59  ;;  %v6461_v30 = vsel %vm6316_vm7, 0, %v1021_v8  ;;  %v5503_v55 = vld [vmem:[%s8411_s4 + $0x320] ss:$8 sps:$4 sm:$0xff]  }
  0xfe   : > { %v6434_v14 = vpack.c.bf16 %v773_v6, %v771_v60  ;;  %v684_v16 = vmul.f32 %v6231_v39, %v589_v10  ;;  %2016 = vmatpush1.bf16.msra.mxu1 %v5488_v56  ;;  %2376 = vmatpush1.bf16.msra.mxu0 %v5491_v58  ;;  %v735_v19 = vadd.f32 %v6242_v44, %v683_v7  ;;  %v8421_v27 = vshrl.u32 %v6426_v4, 16 }
  0xff   : > { %v591_v20 = vpop.f32.mrf.mxu0  ;;  %v6446_v21 = vsel %vm6316_vm7, 0, %v1028_v11  ;;  %2017 = vmatprep.subr.bf16.mxu1 %v5496_v0  ;;  %2377 = vmatprep.subr.bf16.mxu0 %v5499_v3  ;;  %v774_v36 = vmax.f32 %v734_v9, 0.0  ;;  %v8424_v49 = vshll.u32 %v6426_v4, 16  ;;  %v5511_v0 = vld [vmem:[%s8411_s4 + $0x314] ss:$8 sps:$4 sm:$0xff]  }
 0x100   : > { %v736_v28 = vadd.f32 %v6235_v40, %v684_v16  ;;  %v685_v29 = vmul.f32 %v6238_v41, %v591_v20  ;;  %1751 = vmatprep.mubr.bf16.mxu0 %v6446_v21  ;;  %1488 = vmatprep.mubr.bf16.mxu1 %v6434_v14  ;;  %v8425_v33 = vshrl.u32 %v6434_v14, 16  ;;  %v1032_v43 = vrot.slane %v8421_v27, 7 }
 0x101   : > { %v595_v42 = vpop.f32.mrf.mxu0  ;;  %1489 = vmatmul.mubr.bf16.gmra.mxu1 %v6426_v4  ;;  %1752 = vmatmul.mubr.bf16.gmra.mxu0 %v6461_v30  ;;  %v775_v58 = vmax.f32 %v735_v19, 0.0  ;;  %v8429_v60 = vshll.u32 %v6434_v14, 16  ;;  %v5509_v19 = vld [vmem:[%s8411_s4 + $0x310] ss:$8 sps:$4 sm:$0xff]  }
 0x102   : > { %v776_v50 = vmax.f32 %v736_v28, 0.0  ;;  %v737_v51 = vadd.f32 %v6242_v44, %v685_v29  ;;  %v686_v53 = vmul.f32 %v6231_v39, %v595_v42  ;;  %2018 = vmatpush1.bf16.msra.mxu1 %v5494_v18  ;;  %2378 = vmatpush1.bf16.msra.mxu0 %v5497_v5  ;;  %v1039_v56 = vrot.slane %v8425_v33, 7  ;;  %v5506_v5 = vld [vmem:[%s8411_s4 + $0x2f0] ss:$8 sps:$4 sm:$0xff]   ;;  %v5514_v28 = vld [vmem:[%s8411_s4 + $0x2e4] ss:$8 sps:$4 sm:$0xff]  }
 0x103   : > { %v597_v59 = vpop.f32.mrf.mxu0  ;;  %2019 = vmatprep.subr.bf16.mxu1 %v5502_v23  ;;  %2379 = vmatprep.subr.bf16.mxu0 %v5505_v26  ;;  %v1035_v8 = vor.u32 %v8424_v49, %v1032_v43  ;;  %v5517_v29 = vld [vmem:[%s8411_s4 + $0x304] ss:$8 sps:$4 sm:$0xff]  }
 0x104   : > { %v6486_v3 = vpack.c.bf16 %v776_v50, %v774_v36  ;;  %v777_v6 = vmax.f32 %v737_v51, 0.0  ;;  %v687_v7 = vmul.f32 %v6238_v41, %v597_v59  ;;  %v738_v9 = vadd.f32 %v6235_v40, %v686_v53 }
 0x105   : > { %v601_v10 = vpop.f32.mrf.mxu0  ;;  %v1042_v11 = vor.u32 %v8429_v60, %v1039_v56  ;;  %v6521_v50 = vsel %vm6316_vm7, 0, %v1035_v8 }
 0x106   : > { %v6494_v16 = vpack.c.bf16 %v777_v6, %v775_v58  ;;  %v688_v18 = vmul.f32 %v6231_v39, %v601_v10  ;;  %2020 = vmatpush1.bf16.msra.mxu1 %v5500_v54  ;;  %2380 = vmatpush1.bf16.msra.mxu0 %v5503_v55  ;;  %v739_v20 = vadd.f32 %v6242_v44, %v687_v7  ;;  %v8417_v36 = vshrl.u32 %v6486_v3, 16  ;;  %v5515_v6 = vld [vmem:[%s8411_s4 + $0x300] ss:$8 sps:$4 sm:$0xff]  }
 0x107   : > { %v603_v23 = vpop.f32.mrf.mxu0  ;;  %v6506_v26 = vsel %vm6316_vm7, 0, %v1042_v11  ;;  %2021 = vmatprep.subr.bf16.mxu1 %v5508_v62  ;;  %2381 = vmatprep.subr.bf16.mxu0 %v5511_v0  ;;  %v778_v53 = vmax.f32 %v738_v9, 0.0  ;;  %v8418_v56 = vshll.u32 %v6486_v3, 16  ;;  %v5512_v0 = vld [vmem:[%s8411_s4 + $0x2e0] ss:$8 sps:$4 sm:$0xff]  }
 0x108   : > { %v740_v42 = vadd.f32 %v6235_v40, %v688_v18  ;;  %v689_v43 = vmul.f32 %v6238_v41, %v603_v23  ;;  %1761 = vmatprep.mubr.bf16.mxu0 %v6506_v26  ;;  %1498 = vmatprep.mubr.bf16.mxu1 %v6494_v16  ;;  %v8420_v51 = vshrl.u32 %v6494_v16, 16  ;;  %v1046_v55 = vrot.slane %v8417_v36, 7  ;;  %v5520_v11 = vld [vmem:[%s8411_s4 + $0x2d4] ss:$8 sps:$4 sm:$0xff]  }
 0x109   : > { %v607_v54 = vpop.f32.mrf.mxu0  ;;  %1499 = vmatmul.mubr.bf16.gmra.mxu1 %v6486_v3  ;;  %1762 = vmatmul.mubr.bf16.gmra.mxu0 %v6521_v50  ;;  %v779_v8 = vmax.f32 %v739_v20, 0.0  ;;  %v8422_v10 = vshll.u32 %v6494_v16, 16  ;;  %v5523_v18 = vld [vmem:[%s8411_s4 + $0x3f4] ss:$8 sps:$4 sm:$0xff]  }
 0x10a   : > { %v780_v58 = vmax.f32 %v740_v42, 0.0  ;;  %v741_v59 = vadd.f32 %v6242_v44, %v689_v43  ;;  %v690_v62 = vmul.f32 %v6231_v39, %v607_v54  ;;  %2022 = vmatpush2.bf16.msra.mxu1 %v5506_v5  ;;  %2382 = vmatpush1.bf16.msra.mxu0 %v5509_v19  ;;  %v1053_v7 = vrot.slane %v8420_v51, 7 }
 0x10b   : > { %v609_v9 = vpop.f32.mrf.mxu0  ;;  %2023 = vmatprep.subr.bf16.mxu1 %v5514_v28  ;;  %2383 = vmatprep.subr.bf16.mxu0 %v5517_v29  ;;  %v1049_v20 = vor.u32 %v8418_v56, %v1046_v55  ;;  %v5521_v55 = vld [vmem:[%s8411_s4 + $0x3f0] ss:$8 sps:$4 sm:$0xff]  }
 0x10c   : > { %v6546_v5 = vpack.c.bf16 %v780_v58, %v778_v53  ;;  %v781_v19 = vmax.f32 %v741_v59, 0.0  ;;  %v691_v23 = vmul.f32 %v6238_v41, %v609_v9  ;;  %v742_v28 = vadd.f32 %v6235_v40, %v690_v62  ;;  %v5518_v53 = vld [vmem:[%s8411_s4 + $0x2d0] ss:$8 sps:$4 sm:$0xff]   ;;  %v631_v58 = vpop.f32.mrf.mxu1 }
 0x10d   : > { %v613_v29 = vpop.f32.mrf.mxu0  ;;  %v1056_v42 = vor.u32 %v8422_v10, %v1053_v7 }
 0x10e   : > { %v6554_v43 = vpack.c.bf16 %v781_v19, %v779_v8  ;;  %v692_v54 = vmul.f32 %v6231_v39, %v613_v29  ;;  %2024 = vmatpush2.bf16.msra.mxu1 %v5512_v0  ;;  %2384 = vmatpush1.bf16.msra.mxu0 %v5515_v6  ;;  %v743_v59 = vadd.f32 %v6242_v44, %v691_v23  ;;  %v5526_v0 = vld [vmem:[%s8411_s4 + $0x2c4] ss:$8 sps:$4 sm:$0xff]   ;;  %v8419_v8 = vshrl.u32 %v6546_v5, 16  ;;  %v6599_v51 = vpop.f32.mrf.mxu1 }
 0x10f   : > { %v615_v62 = vpop.f32.mrf.mxu0  ;;  %v6566_v7 = vsel %vm6316_vm7, 0, %v1056_v42  ;;  %2025 = vmatprep.subr.bf16.mxu1 %v5520_v11  ;;  %2385 = vmatprep.subr.bf16.mxu0 %v5523_v18  ;;  %v5529_v6 = vld [vmem:[%s8411_s4 + $0x3e4] ss:$8 sps:$4 sm:$0xff]   ;;  %v6581_v11 = vsel %vm6316_vm7, 0, %v1049_v20  ;;  %v782_v23 = vmax.f32 %v742_v28, 0.0 }
 0x110   : > { %v744_v9 = vadd.f32 %v6235_v40, %v692_v54  ;;  %v693_v19 = vmul.f32 %v6238_v41, %v615_v62  ;;  %1771 = vmatprep.mubr.bf16.mxu0 %v6566_v7  ;;  %1508 = vmatprep.mubr.bf16.mxu1 %v6554_v43  ;;  %v8423_v18 = vshrl.u32 %v6554_v43, 16  ;;  %v1060_v42 = vrot.slane %v8419_v8, 7  ;;  %v5524_v20 = vld [vmem:[%s8411_s4 + $0x2c0] ss:$8 sps:$4 sm:$0xff]  }
 0x111   : > { %v619_v29 = vpop.f32.mrf.mxu0  ;;  %1509 = vmatmul.mubr.bf16.gmra.mxu1 %v6546_v5  ;;  %1772 = vmatmul.mubr.bf16.gmra.mxu0 %v6581_v11  ;;  %v8427_v54 = vshll.u32 %v6546_v5, 16  ;;  %v5527_v28 = vld [vmem:[%s8411_s4 + $0x3e0] ss:$8 sps:$4 sm:$0xff]  }
 0x112   : > { %v784_v62 = vmax.f32 %v744_v9, 0.0  ;;  %v745_v36 = vadd.f32 %v6242_v44, %v693_v19  ;;  %v694_v56 = vmul.f32 %v6231_v39, %v619_v29  ;;  %2026 = vmatpush2.bf16.msra.mxu1 %v5518_v53  ;;  %2386 = vmatpush2.bf16.msra.mxu0 %v5521_v55  ;;  %v1067_v8 = vrot.slane %v8423_v18, 7  ;;  %v5532_v55 = vld [vmem:[%s8411_s4 + $0x2b4] ss:$8 sps:$4 sm:$0xff]  }
 0x113   : > { %v783_v9 = vmax.f32 %v743_v59, 0.0  ;;  %v621_v27 = vpop.f32.mrf.mxu0  ;;  %2027 = vmatprep.subr.bf16.mxu1 %v5526_v0  ;;  %2387 = vmatprep.subr.bf16.mxu0 %v5529_v6  ;;  %v8428_v53 = vshll.u32 %v6554_v43, 16  ;;  %v5535_v19 = vld [vmem:[%s8411_s4 + $0x3d4] ss:$8 sps:$4 sm:$0xff]   ;;  %v1063_v59 = vor.u32 %v8427_v54, %v1060_v42 }
 0x114   : > { %v6608_v29 = vpack.c.bf16 %v784_v62, %v782_v23  ;;  %v785_v10 = vmax.f32 %v745_v36, 0.0  ;;  %v695_v18 = vmul.f32 %v6238_v41, %v621_v27  ;;  %v746_v0 = vadd.f32 %v6235_v40, %v694_v56  ;;  %v5530_v36 = vld [vmem:[%s8411_s4 + $0x2b0] ss:$8 sps:$4 sm:$0xff]   ;;  %v637_v23 = vpop.f32.mrf.mxu1  ;;  %v5538_v62 = vld [vmem:[%s8411_s4 + $0x2a4] ss:$8 sps:$4 sm:$0xff]  }
 0x115   : > { %v625_v6 = vpop.f32.mrf.mxu0  ;;  %v1070_v49 = vor.u32 %v8428_v53, %v1067_v8  ;;  %v5533_v27 = vld [vmem:[%s8411_s4 + $0x3d0] ss:$8 sps:$4 sm:$0xff]   ;;  %v698_v56 = vmul.f32 %v6231_v39, %v631_v58 }
 0x116   : > { %v6616_v33 = vpack.c.bf16 %v785_v10, %v783_v9  ;;  %v696_v38 = vmul.f32 %v6231_v39, %v625_v6  ;;  %2028 = vmatpush2.bf16.msra.mxu1 %v5524_v20  ;;  %2388 = vmatpush2.bf16.msra.mxu0 %v5527_v28  ;;  %v747_v42 = vadd.f32 %v6242_v44, %v695_v18  ;;  %v5541_v20 = vld [vmem:[%s8411_s4 + $0x3c4] ss:$8 sps:$4 sm:$0xff]   ;;  %v8430_v58 = vshrl.u32 %v6608_v29, 16 }
 0x117   : > { %v627_v8 = vpop.f32.mrf.mxu0  ;;  %v6629_v10 = vsel %vm6316_vm7, 0, %v1070_v49  ;;  %2029 = vmatprep.subr.bf16.mxu1 %v5532_v55  ;;  %2389 = vmatprep.subr.bf16.mxu0 %v5535_v19  ;;  %v700_v28 = vmul.f32 %v6231_v39, %v637_v23  ;;  %v6645_v49 = vsel %vm6316_vm7, 0, %v1063_v59  ;;  %v786_v19 = vmax.f32 %v746_v0, 0.0  ;;  %v5539_v0 = vld [vmem:[%s8411_s4 + $0x3c0] ss:$8 sps:$4 sm:$0xff]  }
 0x118   : > { %v748_v18 = vadd.f32 %v6235_v40, %v696_v38  ;;  %v697_v9 = vmul.f32 %v6238_v41, %v627_v8  ;;  %1781 = vmatprep.mubr.bf16.mxu0 %v6629_v10  ;;  %1518 = vmatprep.mubr.bf16.mxu1 %v6616_v33  ;;  %v8432_v55 = vshrl.u32 %v6616_v33, 16  ;;  %v5536_v38 = vld [vmem:[%s8411_s4 + $0x2a0] ss:$8 sps:$4 sm:$0xff]   ;;  %v1074_v6 = vrot.slane %v8430_v58, 7 }
 0x119   : > { %1519 = vmatmul.mubr.bf16.gmra.mxu1 %v6608_v29  ;;  %1782 = vmatmul.mubr.bf16.gmra.mxu0 %v6645_v49  ;;  %v1075_v23 = vshll.u32 %v6608_v29, 16  ;;  %v1136_v59 = vrot.slane %v998_v32, 1  ;;  %v1082_v60 = vshll.u32 %v6616_v33, 16  ;;  %v787_v58 = vmax.f32 %v747_v42, 0.0  ;;  %v5544_v32 = vld [vmem:[%s8411_s4 + $0x294] ss:$8 sps:$4 sm:$0xff]  }
 0x11a   : > { %v788_v8 = vmax.f32 %v748_v18, 0.0  ;;  %v749_v54 = vadd.f32 %v6242_v44, %v697_v9  ;;  %2030 = vmatpush2.bf16.msra.mxu1 %v5530_v36  ;;  %2390 = vmatpush2.bf16.msra.mxu0 %v5533_v27  ;;  %v1081_v53 = vrot.slane %v8432_v55, 7  ;;  %v750_v18 = vadd.f32 %v6235_v40, %v698_v56  ;;  %v5547_v42 = vld [vmem:[%s8411_s4 + $0x3b4] ss:$8 sps:$4 sm:$0xff]  }
 0x11b   : > { %2031 = vmatprep.subr.bf16.mxu1 %v5538_v62  ;;  %2391 = vmatprep.subr.bf16.mxu0 %v5541_v20  ;;  %v752_v36 = vadd.f32 %v6235_v40, %v700_v28  ;;  %v1077_v55 = vor.u32 %v1075_v23, %v1074_v6  ;;  %v1137_v62 = vor.u32 %v1136_v59, %v995_v22  ;;  %v5550_v22 = vld [vmem:[%s8411_s4 + $0x284] ss:$8 sps:$4 sm:$0xff]  }
 0x11c   : > { %v6670_v27 = vpack.c.bf16 %v788_v8, %v786_v19  ;;  %v789_v9 = vmax.f32 %v749_v54, 0.0  ;;  %v1084_v52 = vor.u32 %v1082_v60, %v1081_v53  ;;  %v5542_v53 = vld [vmem:[%s8411_s4 + $0x290] ss:$8 sps:$4 sm:$0xff]   ;;  %v8458_v19 = vmov 0 }
 0x11d   : > { %v6703_v28 = vsel %vm6316_vm7, 0, %v1077_v55  ;;  %v8459_v19 = vsel %vm6707_vm10, 4294967295, %v8458_v19  ;;  %v792_v59 = vmax.f32 %v752_v36, 0.0  ;;  %v1186_v55 = vsel %vm6707_vm10, %v1137_v62, 0  ;;  %v5556_v62 = vld [vmem:[%s8411_s4 + $0x474] ss:$8 sps:$4 sm:$0xff]  }
 0x11e   : > { %v6681_v56 = vpack.c.bf16 %v789_v9, %v787_v58  ;;  %2032 = vmatpush2.bf16.msra.mxu1 %v5536_v38  ;;  %2392 = vmatpush2.bf16.msra.mxu0 %v5539_v0  ;;  %v6685_v54 = vsel %vm6316_vm7, 0, %v1084_v52  ;;  %v8435_v20 = vshrl.u32 %v6670_v27, 16  ;;  %v1134_v52 = vrot.slane %v991_v24, 1  ;;  %8460 = vst [vmem:[#allocation4_spill] sm:$0xff] %v8459_v19  ;;  %v5553_v38 = vld [vmem:[%s8411_s4 + $0x3a4] ss:$8 sps:$4 sm:$0xff]  }
 0x11f   : > { %1791 = vmatprep.mubr.bf16.mxu0 %v6685_v54  ;;  %2033 = vmatprep.subr.bf16.mxu1 %v5544_v32  ;;  %v790_v58 = vmax.f32 %v750_v18, 0.0  ;;  %v1140_v8 = vrot.slane %v1012_v12, 1  ;;  %v5548_v0 = vld [vmem:[%s8411_s4 + $0x280] ss:$8 sps:$4 sm:$0xff]   ;;  %v8436_v36 = vshll.u32 %v6670_v27, 16 }
 0x120   : > { %1528 = vmatprep.mubr.bf16.mxu1 %v6681_v56  ;;  %2393 = vmatprep.subr.bf16.mxu0 %v5547_v42  ;;  %v1093_v24 = vshrl.u32 %v6681_v56, 16  ;;  %v1088_v6 = vrot.slane %v8435_v20, 7  ;;  %v1096_v18 = vshll.u32 %v6681_v56, 16  ;;  %v5551_v9 = vld [vmem:[%s8411_s4 + $0x3a0] ss:$8 sps:$4 sm:$0xff]   ;;  %v1135_v12 = vor.u32 %v1134_v52, %v988_v13 }
 0x121   : > { %1529 = vmatmul.mubr.bf16.gmra.mxu1 %v6670_v27  ;;  %1792 = vmatmul.mubr.bf16.gmra.mxu0 %v6703_v28  ;;  %v1141_v2 = vor.u32 %v1140_v8, %v1009_v61  ;;  %v5554_v52 = vld [vmem:[%s8411_s4 + $0x470] ss:$8 sps:$4 sm:$0xff]   ;;  %v1138_v8 = vrot.slane %v1005_v1, 1  ;;  %v1144_v1 = vrot.slane %v1026_v63, 1 }
 0x122   : > { %2034 = vmatpush2.bf16.msra.mxu1 %v5542_v53  ;;  %2037 = vmatprep.mubr.bf16.mxu1 %v1186_v55  ;;  %v1095_v32 = vrot.slane %v1093_v24, 7  ;;  %v1091_v53 = vor.u32 %v8436_v36, %v1088_v6  ;;  %v5557_v61 = vld [vmem:[%s8411_s4 + $0x390] ss:$8 sps:$4 sm:$0xff]   ;;  %v5562_v6 = vld [vmem:[%s8411_s4 + $0x464] ss:$8 sps:$4 sm:$0xff]  }
 0x123   : > { %2394 = vmatpush2.bf16.msra.mxu0 %v5545_v15  ;;  %2035 = vmatprep.subr.bf16.mxu1 %v5550_v22  ;;  %v5559_v15 = vld [vmem:[%s8411_s4 + $0x394] ss:$8 sps:$4 sm:$0xff]   ;;  %v6745_v22 = vpack.c.bf16 %v792_v59, %v790_v58  ;;  %v1185_v58 = vsel %vm6707_vm10, %v1135_v12, 0  ;;  %v5565_v55 = vld [vmem:[%s8411_s4 + $0x384] ss:$8 sps:$4 sm:$0xff]   ;;  %v1139_v63 = vor.u32 %v1138_v8, %v1002_v57 }
 0x124   : > { %2395 = vmatprep.subr.bf16.mxu0 %v5553_v38  ;;  %v1098_v42 = vor.u32 %v1096_v18, %v1095_v32  ;;  %v6768_v59 = vsel %vm6316_vm7, 0, %v1091_v53  ;;  %v5560_v12 = vld [vmem:[%s8411_s4 + $0x460] ss:$8 sps:$4 sm:$0xff]   ;;  %v5568_v53 = vld [vmem:[%s8411_s4 + $0x454] ss:$8 sps:$4 sm:$0xff]  }
 0x125   : > { %v8433_v38 = vshll.u32 %v6745_v22, 16  ;;  %v5569_v57 = vld [vmem:[%s8411_s4 + $0x570] ss:$8 sps:$4 sm:$0xff]   ;;  %v5572_v8 = vld [vmem:[%s8411_s4 + $0x440] ss:$8 sps:$4 sm:$0xff]  }
 0x126   : > { %2036 = vmatpush2.bf16.msra.mxu1 %v5548_v0  ;;  %v6751_v13 = vsel %vm6316_vm7, 0, %v1098_v42  ;;  %v8434_v0 = vshrl.u32 %v6745_v22, 16 }
 0x127   : > { %2396 = vmatpush2.bf16.msra.mxu0 %v5551_v9  ;;  %1801 = vmatprep.mubr.bf16.mxu0 %v6751_v13  ;;  %v2168_v32 = vrot.slane %v8433_v38, 1  ;;  %v6781_v9 = vsel %vm6707_vm10, %v1141_v2, 0  ;;  %v1145_v2 = vor.u32 %v1144_v1, %v1023_v46  ;;  %v5577_v46 = vld [vmem:[%s8411_s4 + $0x564] ss:$8 sps:$4 sm:$0xff]   ;;  %v5575_v1 = vld [vmem:[%s8411_s4 + $0x560] ss:$8 sps:$4 sm:$0xff]   ;;  %v699_v38 = vmul.f32 %v6238_v41, %v6599_v51 }
 0x128   : > { %2707 = vmatprep.subr.bf16.mxu1 %v5556_v62  ;;  %2397 = vmatprep.subr.bf16.mxu0 %v5559_v15  ;;  %v5563_v62 = vld [vmem:[%s8411_s4 + $0x380] ss:$8 sps:$4 sm:$0xff]   ;;  %v5571_v15 = vld [vmem:[%s8411_s4 + $0x574] ss:$8 sps:$4 sm:$0xff]   ;;  %v5605_v51 = vld [vmem:[%s8411_s4 + $0x510] ss:$8 sps:$4 sm:$0xff]  }
 0x129   : > { %1802 = vmatmul.mubr.bf16.gmra.mxu0 %v6768_v59  ;;  %2038 = vmatmul.mubr.bf16.vlgmr.msra.gmra.mxu1 %v1185_v58  ;;  %v6791_v42 = vor.u32 %v2168_v32, %v8434_v0  ;;  %v5574_v58 = vld [vmem:[%s8411_s4 + $0x444] ss:$8 sps:$4 sm:$0xff]   ;;  %v8462_v32 = vshll.u32 %v6434_v14, 16 }
 0x12a   : > { %2708 = vmatpush1.bf16.msra.mxu1 %v5554_v52  ;;  %2047 = vmatprep.mubr.bf16.mxu1 %v6781_v9  ;;  %v6812_v52 = vsel %vm6707_vm10, %v1139_v63, 0  ;;  %v5583_v63 = vld [vmem:[%s8411_s4 + $0x554] ss:$8 sps:$4 sm:$0xff]  }
 0x12b   : > { %2398 = vmatpush2.bf16.msra.mxu0 %v5557_v61  ;;  %2401 = vmatprep.mubr.bf16.mxu0 %v6386_v31  ;;  %v5566_v31 = vld [vmem:[%s8411_s4 + $0x450] ss:$8 sps:$4 sm:$0xff]   ;;  %v8461_v61 = vshll.u32 %v6366_v17, 16 }
 0x12c   : > { %2709 = vmatprep.subr.bf16.mxu1 %v5562_v6  ;;  %2399 = vmatprep.subr.bf16.mxu0 %v5565_v55  ;;  %v6829_v55 = vsel %vm6707_vm10, %v1145_v2, 0 }
 0x12d   : > { %v1142_v6 = vrot.slane %v8461_v61, 1  ;;  %v5586_v61 = vld [vmem:[%s8411_s4 + $0x424] ss:$8 sps:$4 sm:$0xff]  }
 0x12e   : > { %2710 = vmatpush1.bf16.msra.mxu1 %v5560_v12  ;;  %v1148_v12 = vrot.slane %v8462_v32, 1 }
 0x12f   : > { %2400 = vmatpush2.bf16.msra.mxu0 %v5563_v62  ;;  %2711 = vmatprep.subr.bf16.mxu1 %v5568_v53  ;;  %v8463_v62 = vshrl.u32 %v6366_v17, 16 }
 0x130   : > { %3045 = vmatprep.subr.bf16.mxu0 %v5571_v15  ;;  %v5578_v15 = vld [vmem:[%s8411_s4 + $0x430] ss:$8 sps:$4 sm:$0xff]  }
 0x131   : > { %2048 = vmatmul.mubr.bf16.gmra.mxu1 %v6812_v52  ;;  %v1143_v53 = vor.u32 %v1142_v6, %v8463_v62  ;;  %v8465_v6 = vshll.u32 %v6426_v4, 16  ;;  %v5592_v62 = vld [vmem:[%s8411_s4 + $0x414] ss:$8 sps:$4 sm:$0xff]  }
 0x132   : > { %2402 = vmatmul.mubr.bf16.vlgmr.msra.gmra.mxu0 %v6401_v45  ;;  %2712 = vmatpush1.bf16.msra.mxu1 %v5566_v31  ;;  %v5580_v45 = vld [vmem:[%s8411_s4 + $0x434] ss:$8 sps:$4 sm:$0xff]   ;;  %v8464_v31 = vshrl.u32 %v6434_v14, 16 }
 0x133   : > { %2057 = vmatprep.mubr.bf16.mxu1 %v6829_v55  ;;  %2411 = vmatprep.mubr.bf16.mxu0 %v6446_v21 }
 0x134   : > { %3046 = vmatpush1.bf16.msra.mxu0 %v5569_v57  ;;  %2713 = vmatprep.subr.bf16.mxu1 %v5574_v58  ;;  %v1149_v2 = vor.u32 %v1148_v12, %v8464_v31  ;;  %v6856_v57 = vsel %vm6707_vm10, %v1143_v53, 0  ;;  %v5581_v58 = vld [vmem:[%s8411_s4 + $0x550] ss:$8 sps:$4 sm:$0xff]   ;;  %v5584_v12 = vld [vmem:[%s8411_s4 + $0x420] ss:$8 sps:$4 sm:$0xff]  }
 0x135   : > { %3047 = vmatprep.subr.bf16.mxu0 %v5577_v46  ;;  %v1146_v46 = vrot.slane %v8465_v6, 1  ;;  %v5587_v53 = vld [vmem:[%s8411_s4 + $0x540] ss:$8 sps:$4 sm:$0xff]   ;;  %v5595_v31 = vld [vmem:[%s8411_s4 + $0x534] ss:$8 sps:$4 sm:$0xff]  }
 0x136   : > { %2714 = vmatpush1.bf16.msra.mxu1 %v5572_v8  ;;  %v5589_v8 = vld [vmem:[%s8411_s4 + $0x544] ss:$8 sps:$4 sm:$0xff]   ;;  %v6873_v32 = vsel %vm6707_vm10, %v1149_v2, 0  ;;  %v5590_v2 = vld [vmem:[%s8411_s4 + $0x410] ss:$8 sps:$4 sm:$0xff]  }
 0x137   : > { %2715 = vmatprep.subr.bf16.mxu1 %v5580_v45  ;;  %v8466_v45 = vshll.u32 %v6494_v16, 16 }
 0x138   : > { %3048 = vmatpush1.bf16.msra.mxu0 %v5575_v1 }
 0x139   : > { %2058 = vmatmul.mubr.bf16.gmra.mxu1 %v6856_v57  ;;  %3049 = vmatprep.subr.bf16.mxu0 %v5583_v63  ;;  %v1152_v1 = vrot.slane %v8466_v45, 1  ;;  %v8467_v63 = vshrl.u32 %v6426_v4, 16 }
 0x13a   : > { %2412 = vmatmul.mubr.bf16.gmra.mxu0 %v6461_v30  ;;  %2716 = vmatpush1.bf16.msra.mxu1 %v5578_v15 }
 0x13b   : > { %2067 = vmatprep.mubr.bf16.mxu1 %v6873_v32  ;;  %2421 = vmatprep.mubr.bf16.mxu0 %v6506_v26  ;;  %v1147_v15 = vor.u32 %v1146_v46, %v8467_v63  ;;  %v5593_v46 = vld [vmem:[%s8411_s4 + $0x530] ss:$8 sps:$4 sm:$0xff]   ;;  %v8470_v63 = vshll.u32 %v6554_v43, 16 }
 0x13c   : > { %3050 = vmatpush1.bf16.msra.mxu0 %v5581_v58  ;;  %2717 = vmatprep.subr.bf16.mxu1 %v5586_v61  ;;  %v8468_v58 = vshrl.u32 %v6494_v16, 16 }
 0x13d   : > { %3051 = vmatprep.subr.bf16.mxu0 %v5589_v8  ;;  %v6900_v6 = vsel %vm6707_vm10, %v1147_v15, 0  ;;  %v5598_v8 = vld [vmem:[%s8411_s4 + $0x404] ss:$8 sps:$4 sm:$0xff]   ;;  %v1156_v15 = vrot.slane %v8470_v63, 1  ;;  %v5607_v63 = vld [vmem:[%s8411_s4 + $0x514] ss:$8 sps:$4 sm:$0xff]  }
 0x13e   : > { %2718 = vmatpush1.bf16.msra.mxu1 %v5584_v12  ;;  %v1153_v61 = vor.u32 %v1152_v1, %v8468_v58  ;;  %v8469_v12 = vshll.u32 %v6486_v3, 16  ;;  %v5601_v1 = vld [vmem:[%s8411_s4 + $0x524] ss:$8 sps:$4 sm:$0xff]   ;;  %v639_v58 = vpop.f32.mrf.mxu1 }
 0x13f   : > { %2719 = vmatprep.subr.bf16.mxu1 %v5592_v62  ;;  %v701_v0 = vmul.f32 %v6238_v41, %v639_v58 }
 0x140   : > { %3052 = vmatpush1.bf16.msra.mxu0 %v5587_v53  ;;  %v1150_v45 = vrot.slane %v8469_v12, 1  ;;  %v6917_v62 = vsel %vm6707_vm10, %v1153_v61, 0  ;;  %v5596_v53 = vld [vmem:[%s8411_s4 + $0x400] ss:$8 sps:$4 sm:$0xff]   ;;  %v8471_v61 = vshrl.u32 %v6486_v3, 16 }
 0x141   : > { %2068 = vmatmul.mubr.bf16.gmra.mxu1 %v6900_v6  ;;  %3053 = vmatprep.subr.bf16.mxu0 %v5595_v31  ;;  %v5604_v31 = vld [vmem:[%s8411_s4 + $0x4f4] ss:$8 sps:$4 sm:$0xff]  }
 0x142   : > { %2422 = vmatmul.mubr.bf16.gmra.mxu0 %v6521_v50  ;;  %2720 = vmatpush1.bf16.msra.mxu1 %v5590_v2  ;;  %v5599_v2 = vld [vmem:[%s8411_s4 + $0x520] ss:$8 sps:$4 sm:$0xff]   ;;  %v1151_v12 = vor.u32 %v1150_v45, %v8471_v61 }
 0x143   : > { %2077 = vmatprep.mubr.bf16.mxu1 %v6917_v62  ;;  %2431 = vmatprep.mubr.bf16.mxu0 %v6566_v7 }
 0x144   : > { %3054 = vmatpush1.bf16.msra.mxu0 %v5593_v46  ;;  %2721 = vmatprep.subr.bf16.mxu1 %v5598_v8  ;;  %v5602_v46 = vld [vmem:[%s8411_s4 + $0x4f0] ss:$8 sps:$4 sm:$0xff]   ;;  %v8472_v8 = vshrl.u32 %v6554_v43, 16  ;;  %v6947_v45 = vsel %vm6707_vm10, %v1151_v12, 0  ;;  %v5608_v12 = vld [vmem:[%s8411_s4 + $0x4e0] ss:$8 sps:$4 sm:$0xff]  }
 0x145   : > { %3055 = vmatprep.subr.bf16.mxu0 %v5601_v1  ;;  %v5610_v1 = vld [vmem:[%s8411_s4 + $0x4e4] ss:$8 sps:$4 sm:$0xff]  }
 0x146   : > { %2722 = vmatpush1.bf16.msra.mxu1 %v5596_v53  ;;  %v1157_v20 = vor.u32 %v1156_v15, %v8472_v8  ;;  %v8473_v53 = vshll.u32 %v6546_v5, 16  ;;  %v5613_v15 = vld [vmem:[%s8411_s4 + $0x504] ss:$8 sps:$4 sm:$0xff]  }
 0x147   : > { %2723 = vmatprep.subr.bf16.mxu1 %v5604_v31  ;;  %v751_v31 = vadd.f32 %v6242_v44, %v699_v38  ;;  %v5616_v38 = vld [vmem:[%s8411_s4 + $0x4d4] ss:$8 sps:$4 sm:$0xff]  }
 0x148   : > { %3056 = vmatpush1.bf16.msra.mxu0 %v5599_v2  ;;  %v1154_v58 = vrot.slane %v8473_v53, 1  ;;  %v753_v2 = vadd.f32 %v6242_v44, %v701_v0  ;;  %v6966_v61 = vsel %vm6707_vm10, %v1157_v20, 0  ;;  %v5611_v20 = vld [vmem:[%s8411_s4 + $0x500] ss:$8 sps:$4 sm:$0xff]   ;;  %v8474_v0 = vshrl.u32 %v6546_v5, 16 }
 0x149   : > { %2078 = vmatmul.mubr.bf16.gmra.mxu1 %v6947_v45  ;;  %3057 = vmatprep.subr.bf16.mxu0 %v5607_v63  ;;  %v1160_v63 = vrot.slane %v1082_v60, 1  ;;  %v5619_v60 = vld [vmem:[%s8411_s4 + $0x5f4] ss:$8 sps:$4 sm:$0xff]   ;;  %v791_v8 = vmax.f32 %v751_v31, 0.0  ;;  %v5622_v31 = vld [vmem:[%s8411_s4 + $0x4c4] ss:$8 sps:$4 sm:$0xff]  }
 0x14a   : > { %2432 = vmatmul.mubr.bf16.gmra.mxu0 %v6581_v11  ;;  %2724 = vmatpush2.bf16.msra.mxu1 %v5602_v46  ;;  %v1155_v46 = vor.u32 %v1154_v58, %v8474_v0  ;;  %v793_v53 = vmax.f32 %v753_v2, 0.0  ;;  %v1158_v2 = vrot.slane %v1075_v23, 1  ;;  %v5620_v23 = vld [vmem:[%s8411_s4 + $0x4c0] ss:$8 sps:$4 sm:$0xff]   ;;  %v5628_v0 = vld [vmem:[%s8411_s4 + $0x4b4] ss:$8 sps:$4 sm:$0xff]  }
 0x14b   : > { %2087 = vmatprep.mubr.bf16.mxu1 %v6966_v61  ;;  %2441 = vmatprep.mubr.bf16.mxu0 %v6629_v10 }
 0x14c   : > { %3058 = vmatpush1.bf16.msra.mxu0 %v5605_v51  ;;  %2725 = vmatprep.subr.bf16.mxu1 %v5610_v1  ;;  %v5614_v51 = vld [vmem:[%s8411_s4 + $0x4d0] ss:$8 sps:$4 sm:$0xff]   ;;  %v8475_v1 = vshrl.u32 %v6616_v33, 16  ;;  %v6993_v58 = vsel %vm6707_vm10, %v1155_v46, 0  ;;  %v8476_v46 = vshrl.u32 %v6608_v29, 16 }
 0x14d   : > { %3059 = vmatprep.subr.bf16.mxu0 %v5613_v15  ;;  %v5617_v15 = vld [vmem:[%s8411_s4 + $0x5f0] ss:$8 sps:$4 sm:$0xff]  }
 0x14e   : > { %2726 = vmatpush2.bf16.msra.mxu1 %v5608_v12  ;;  %v1161_v36 = vor.u32 %v1160_v63, %v8475_v1  ;;  %v5625_v12 = vld [vmem:[%s8411_s4 + $0x5e4] ss:$8 sps:$4 sm:$0xff]   ;;  %v7007_v63 = vpack.c.bf16 %v793_v53, %v791_v8  ;;  %v5626_v53 = vld [vmem:[%s8411_s4 + $0x4b0] ss:$8 sps:$4 sm:$0xff]  }
 0x14f   : > { %2727 = vmatprep.subr.bf16.mxu1 %v5616_v38 }
 0x150   : > { %3060 = vmatpush1.bf16.msra.mxu0 %v5611_v20  ;;  %v7012_v38 = vsel %vm6707_vm10, %v1161_v36, 0  ;;  %v1164_v20 = vrot.slane %v1096_v18, 1  ;;  %v5623_v36 = vld [vmem:[%s8411_s4 + $0x5e0] ss:$8 sps:$4 sm:$0xff]   ;;  %v5631_v18 = vld [vmem:[%s8411_s4 + $0x5d4] ss:$8 sps:$4 sm:$0xff]  }
 0x151   : > { %2088 = vmatmul.mubr.bf16.gmra.mxu1 %v6993_v58  ;;  %3061 = vmatprep.subr.bf16.mxu0 %v5619_v60  ;;  %v1159_v60 = vor.u32 %v1158_v2, %v8476_v46  ;;  %v2158_v8 = vshrl.u32 %v7007_v63, 16  ;;  %v8477_v2 = vshll.u32 %v6670_v27, 16  ;;  %v5640_v46 = vld [vmem:[%s8411_s4 + $0x494] ss:$8 sps:$4 sm:$0xff]  }
 0x152   : > { %2442 = vmatmul.mubr.bf16.gmra.mxu0 %v6645_v49  ;;  %2728 = vmatpush2.bf16.msra.mxu1 %v5614_v51  ;;  %v1165_v51 = vor.u32 %v1164_v20, %v1093_v24  ;;  %v5637_v24 = vld [vmem:[%s8411_s4 + $0x5c4] ss:$8 sps:$4 sm:$0xff]   ;;  %v2161_v20 = vshll.u32 %v7007_v63, 16 }
 0x153   : > { %2097 = vmatprep.mubr.bf16.mxu1 %v7012_v38  ;;  %2451 = vmatprep.mubr.bf16.mxu0 %v6685_v54  ;;  %v7040_v1 = vsel %vm6707_vm10, %v1159_v60, 0  ;;  %v5635_v60 = vld [vmem:[%s8411_s4 + $0x5c0] ss:$8 sps:$4 sm:$0xff]  }
 0x154   : > { %3062 = vmatpush2.bf16.msra.mxu0 %v5617_v15  ;;  %2729 = vmatprep.subr.bf16.mxu1 %v5622_v31  ;;  %v5629_v15 = vld [vmem:[%s8411_s4 + $0x5d0] ss:$8 sps:$4 sm:$0xff]   ;;  %v5634_v31 = vld [vmem:[%s8411_s4 + $0x4a4] ss:$8 sps:$4 sm:$0xff]  }
 0x155   : > { %3063 = vmatprep.subr.bf16.mxu0 %v5625_v12  ;;  %v1162_v12 = vrot.slane %v8477_v2, 1 }
 0x156   : > { %2730 = vmatpush2.bf16.msra.mxu1 %v5620_v23  ;;  %v2160_v23 = vrot.slane %v2158_v8, 7 }
 0x157   : > { %2731 = vmatprep.subr.bf16.mxu1 %v5628_v0  ;;  %v7060_v0 = vsel %vm6707_vm10, %v1165_v51, 0  ;;  %v5643_v51 = vld [vmem:[%s8411_s4 + $0x5b4] ss:$8 sps:$4 sm:$0xff]  }
 0x158   : > { %3064 = vmatpush2.bf16.msra.mxu0 %v5623_v36  ;;  %v5632_v36 = vld [vmem:[%s8411_s4 + $0x4a0] ss:$8 sps:$4 sm:$0xff]   ;;  %v2163_v2 = vor.u32 %v2161_v20, %v2160_v23  ;;  %v5641_v23 = vld [vmem:[%s8411_s4 + $0x5b0] ss:$8 sps:$4 sm:$0xff]  }
 0x159   : > { %2098 = vmatmul.mubr.bf16.gmra.mxu1 %v7040_v1  ;;  %3065 = vmatprep.subr.bf16.mxu0 %v5631_v18  ;;  %v8478_v18 = vshrl.u32 %v6670_v27, 16 }
 0x15a   : > { %2452 = vmatmul.mubr.bf16.gmra.mxu0 %v6703_v28  ;;  %2732 = vmatpush2.bf16.msra.mxu1 %v5626_v53 }
 0x15b   : > { %2107 = vmatprep.mubr.bf16.mxu1 %v7060_v0  ;;  %2461 = vmatprep.mubr.bf16.mxu0 %v6751_v13  ;;  %v1163_v53 = vor.u32 %v1162_v12, %v8478_v18  ;;  %v8479_v12 = vshrl.u32 %v6745_v22, 16 }
 0x15c   : > { %3066 = vmatpush2.bf16.msra.mxu0 %v5629_v15  ;;  %2733 = vmatprep.subr.bf16.mxu1 %v5634_v31  ;;  %v5638_v15 = vld [vmem:[%s8411_s4 + $0x490] ss:$8 sps:$4 sm:$0xff]   ;;  %v5646_v31 = vld [vmem:[%s8411_s4 + $0x484] ss:$8 sps:$4 sm:$0xff]  }
 0x15d   : > { %3067 = vmatprep.subr.bf16.mxu0 %v5637_v24  ;;  %v2153_v24 = vrot.slane %v8479_v12, 7  ;;  %v7090_v18 = vsel %vm6707_vm10, %v1163_v53, 0  ;;  %v5652_v53 = vld [vmem:[%s8411_s4 + $0x674] ss:$8 sps:$4 sm:$0xff]  }
 0x15e   : > { %2734 = vmatpush2.bf16.msra.mxu1 %v5632_v36  ;;  %v5649_v36 = vld [vmem:[%s8411_s4 + $0x5a4] ss:$8 sps:$4 sm:$0xff]  }
 0x15f   : > { %2735 = vmatprep.subr.bf16.mxu1 %v5640_v46  ;;  %v7101_v46 = vsel %vm6316_vm7, 0, %v2163_v2  ;;  %v5647_v2 = vld [vmem:[%s8411_s4 + $0x5a0] ss:$8 sps:$4 sm:$0xff]  }
 0x160   : > { %3068 = vmatpush2.bf16.msra.mxu0 %v5635_v60  ;;  %v5644_v60 = vld [vmem:[%s8411_s4 + $0x480] ss:$8 sps:$4 sm:$0xff]  }
 0x161   : > { %2108 = vmatmul.mubr.bf16.gmra.mxu1 %v7090_v18  ;;  %3069 = vmatprep.subr.bf16.mxu0 %v5643_v51  ;;  %v8480_v51 = vshll.u32 %v6745_v22, 16 }
 0x162   : > { %2462 = vmatmul.mubr.bf16.gmra.mxu0 %v6768_v59  ;;  %2736 = vmatpush2.bf16.msra.mxu1 %v5638_v15  ;;  %v5650_v15 = vld [vmem:[%s8411_s4 + $0x670] ss:$8 sps:$4 sm:$0xff]  }
 0x163   : > { %2739 = vmatprep.mubr.bf16.mxu1 %v6320_v48  ;;  %2737 = vmatprep.subr.bf16.mxu1 %v5646_v31  ;;  %v2156_v12 = vor.u32 %v8480_v51, %v2153_v24  ;;  %v5655_v48 = vld [vmem:[%s8411_s4 + $0x594] ss:$8 sps:$4 sm:$0xff]   ;;  %v5653_v24 = vld [vmem:[%s8411_s4 + $0x590] ss:$8 sps:$4 sm:$0xff]  }
 0x164   : > { %3070 = vmatpush2.bf16.msra.mxu0 %v5641_v23  ;;  %2471 = vmatprep.mubr.bf16.mxu0 %v7101_v46  ;;  %v5658_v23 = vld [vmem:[%s8411_s4 + $0x664] ss:$8 sps:$4 sm:$0xff]   ;;  %v5667_v51 = vld [vmem:[%s8411_s4 + $0x774] ss:$8 sps:$4 sm:$0xff]  }
 0x165   : > { %3071 = vmatprep.subr.bf16.mxu0 %v5649_v36  ;;  %v7125_v31 = vsel %vm6316_vm7, 0, %v2156_v12  ;;  %v5661_v36 = vld [vmem:[%s8411_s4 + $0x584] ss:$8 sps:$4 sm:$0xff]  }
 0x166   : > { %2738 = vmatpush2.bf16.msra.mxu1 %v5644_v60  ;;  %v5656_v60 = vld [vmem:[%s8411_s4 + $0x660] ss:$8 sps:$4 sm:$0xff]   ;;  %v5670_v12 = vld [vmem:[%s8411_s4 + $0x644] ss:$8 sps:$4 sm:$0xff]  }
 0x167   : > { %3409 = vmatprep.subr.bf16.mxu1 %v5652_v53  ;;  %v5659_v53 = vld [vmem:[%s8411_s4 + $0x580] ss:$8 sps:$4 sm:$0xff]  }
 0x168   : > { %3072 = vmatpush2.bf16.msra.mxu0 %v5647_v2  ;;  %v5665_v2 = vld [vmem:[%s8411_s4 + $0x770] ss:$8 sps:$4 sm:$0xff]  }
 0x169   : > { %2740 = vmatmul.mubr.bf16.vlgmr.msra.gmra.mxu1 %v6306_v34  ;;  %3073 = vmatprep.subr.bf16.mxu0 %v5655_v48  ;;  %v5664_v34 = vld [vmem:[%s8411_s4 + $0x654] ss:$8 sps:$4 sm:$0xff]   ;;  %v5673_v48 = vld [vmem:[%s8411_s4 + $0x764] ss:$8 sps:$4 sm:$0xff]  }
 0x16a   : > { %2472 = vmatmul.mubr.bf16.gmra.mxu0 %v7125_v31  ;;  %3410 = vmatpush1.bf16.msra.mxu1 %v5650_v15  ;;  %v5668_v15 = vld [vmem:[%s8411_s4 + $0x640] ss:$8 sps:$4 sm:$0xff]  }
 0x16b   : > { %2749 = vmatprep.mubr.bf16.mxu1 %v6374_v25  ;;  %3077 = vmatprep.mubr.bf16.mxu0 %v6781_v9  ;;  %v5662_v9 = vld [vmem:[%s8411_s4 + $0x650] ss:$8 sps:$4 sm:$0xff]  }
 0x16c   : > { %3074 = vmatpush2.bf16.msra.mxu0 %v5653_v24  ;;  %3411 = vmatprep.subr.bf16.mxu1 %v5658_v23  ;;  %v5676_v24 = vld [vmem:[%s8411_s4 + $0x634] ss:$8 sps:$4 sm:$0xff]   ;;  %v5671_v23 = vld [vmem:[%s8411_s4 + $0x760] ss:$8 sps:$4 sm:$0xff]  }
 0x16d   : > { %3075 = vmatprep.subr.bf16.mxu0 %v5661_v36  ;;  %v5679_v36 = vld [vmem:[%s8411_s4 + $0x754] ss:$8 sps:$4 sm:$0xff]  }
 0x16e   : > { %3412 = vmatpush1.bf16.msra.mxu1 %v5656_v60  ;;  %v5682_v60 = vld [vmem:[%s8411_s4 + $0x624] ss:$8 sps:$4 sm:$0xff]  }
 0x16f   : > { %3413 = vmatprep.subr.bf16.mxu1 %v5664_v34  ;;  %v5677_v34 = vld [vmem:[%s8411_s4 + $0x750] ss:$8 sps:$4 sm:$0xff]  }
 0x170   : > { %3076 = vmatpush2.bf16.msra.mxu0 %v5659_v53  ;;  %v5685_v53 = vld [vmem:[%s8411_s4 + $0x744] ss:$8 sps:$4 sm:$0xff]  }
 0x171   : > { %2750 = vmatmul.mubr.bf16.gmra.mxu1 %v6366_v17  ;;  %3747 = vmatprep.subr.bf16.mxu0 %v5667_v51  ;;  %v5680_v51 = vld [vmem:[%s8411_s4 + $0x620] ss:$8 sps:$4 sm:$0xff]  }
 0x172   : > { %3414 = vmatpush1.bf16.msra.mxu1 %v5662_v9  ;;  %2759 = vmatprep.mubr.bf16.mxu1 %v6434_v14  ;;  %v5688_v9 = vld [vmem:[%s8411_s4 + $0x614] ss:$8 sps:$4 sm:$0xff]  }
 0x173   : > { %3078 = vmatmul.mubr.bf16.vlgmr.msra.gmra.mxu0 %v6812_v52  ;;  %3415 = vmatprep.subr.bf16.mxu1 %v5670_v12  ;;  %v5674_v52 = vld [vmem:[%s8411_s4 + $0x630] ss:$8 sps:$4 sm:$0xff]   ;;  %v5683_v12 = vld [vmem:[%s8411_s4 + $0x740] ss:$8 sps:$4 sm:$0xff]  }
 0x174   : > { %3087 = vmatprep.mubr.bf16.mxu0 %v6829_v55  ;;  %3748 = vmatpush1.bf16.msra.mxu0 %v5665_v2  ;;  %v5691_v2 = vld [vmem:[%s8411_s4 + $0x734] ss:$8 sps:$4 sm:$0xff]  }
 0x175   : > { %3749 = vmatprep.subr.bf16.mxu0 %v5673_v48  ;;  %v5686_v48 = vld [vmem:[%s8411_s4 + $0x610] ss:$8 sps:$4 sm:$0xff]  }
 0x176   : > { %3416 = vmatpush1.bf16.msra.mxu1 %v5668_v15  ;;  %v5694_v15 = vld [vmem:[%s8411_s4 + $0x604] ss:$8 sps:$4 sm:$0xff]  }
 0x177   : > { %3417 = vmatprep.subr.bf16.mxu1 %v5676_v24  ;;  %v5689_v24 = vld [vmem:[%s8411_s4 + $0x730] ss:$8 sps:$4 sm:$0xff]  }
 0x178   : > { %3750 = vmatpush1.bf16.msra.mxu0 %v5671_v23  ;;  %v5697_v23 = vld [vmem:[%s8411_s4 + $0x724] ss:$8 sps:$4 sm:$0xff]  }
 0x179   : > { %2760 = vmatmul.mubr.bf16.gmra.mxu1 %v6426_v4  ;;  %3751 = vmatprep.subr.bf16.mxu0 %v5679_v36  ;;  %v5692_v36 = vld [vmem:[%s8411_s4 + $0x600] ss:$8 sps:$4 sm:$0xff]  }
 0x17a   : > { %3418 = vmatpush1.bf16.msra.mxu1 %v5674_v52  ;;  %2769 = vmatprep.mubr.bf16.mxu1 %v6494_v16  ;;  %v5700_v52 = vld [vmem:[%s8411_s4 + $0x6f4] ss:$8 sps:$4 sm:$0xff]  }
 0x17b   : > { %3088 = vmatmul.mubr.bf16.gmra.mxu0 %v6856_v57  ;;  %3419 = vmatprep.subr.bf16.mxu1 %v5682_v60  ;;  %v5695_v60 = vld [vmem:[%s8411_s4 + $0x720] ss:$8 sps:$4 sm:$0xff]  }
 0x17c   : > { %3097 = vmatprep.mubr.bf16.mxu0 %v6873_v32  ;;  %3752 = vmatpush1.bf16.msra.mxu0 %v5677_v34  ;;  %v5703_v34 = vld [vmem:[%s8411_s4 + $0x714] ss:$8 sps:$4 sm:$0xff]  }
 0x17d   : > { %3753 = vmatprep.subr.bf16.mxu0 %v5685_v53  ;;  %v5698_v53 = vld [vmem:[%s8411_s4 + $0x6f0] ss:$8 sps:$4 sm:$0xff]  }
 0x17e   : > { %3420 = vmatpush1.bf16.msra.mxu1 %v5680_v51  ;;  %v5706_v51 = vld [vmem:[%s8411_s4 + $0x6e4] ss:$8 sps:$4 sm:$0xff]  }
 0x17f   : > { %3421 = vmatprep.subr.bf16.mxu1 %v5688_v9  ;;  %v5701_v9 = vld [vmem:[%s8411_s4 + $0x710] ss:$8 sps:$4 sm:$0xff]  }
 0x180   : > { %3754 = vmatpush1.bf16.msra.mxu0 %v5683_v12  ;;  %v5709_v12 = vld [vmem:[%s8411_s4 + $0x704] ss:$8 sps:$4 sm:$0xff]  }
 0x181   : > { %2770 = vmatmul.mubr.bf16.gmra.mxu1 %v6486_v3  ;;  %3755 = vmatprep.subr.bf16.mxu0 %v5691_v2  ;;  %v5704_v2 = vld [vmem:[%s8411_s4 + $0x6e0] ss:$8 sps:$4 sm:$0xff]  }
 0x182   : > { %3422 = vmatpush1.bf16.msra.mxu1 %v5686_v48  ;;  %2779 = vmatprep.mubr.bf16.mxu1 %v6554_v43  ;;  %v5712_v48 = vld [vmem:[%s8411_s4 + $0x6d4] ss:$8 sps:$4 sm:$0xff]  }
 0x183   : > { %3098 = vmatmul.mubr.bf16.gmra.mxu0 %v6900_v6  ;;  %3423 = vmatprep.subr.bf16.mxu1 %v5694_v15  ;;  %v5707_v15 = vld [vmem:[%s8411_s4 + $0x700] ss:$8 sps:$4 sm:$0xff]  }
 0x184   : > { %3107 = vmatprep.mubr.bf16.mxu0 %v6917_v62  ;;  %3756 = vmatpush1.bf16.msra.mxu0 %v5689_v24  ;;  %v5715_v24 = vld [vmem:[%s8411_s4 + $0x7f4] ss:$8 sps:$4 sm:$0xff]  }
 0x185   : > { %3757 = vmatprep.subr.bf16.mxu0 %v5697_v23  ;;  %v5710_v23 = vld [vmem:[%s8411_s4 + $0x6d0] ss:$8 sps:$4 sm:$0xff]  }
 0x186   : > { %3424 = vmatpush1.bf16.msra.mxu1 %v5692_v36  ;;  %v5718_v36 = vld [vmem:[%s8411_s4 + $0x6c4] ss:$8 sps:$4 sm:$0xff]  }
 0x187   : > { %3425 = vmatprep.subr.bf16.mxu1 %v5700_v52  ;;  %v5713_v52 = vld [vmem:[%s8411_s4 + $0x7f0] ss:$8 sps:$4 sm:$0xff]  }
 0x188   : > { %3758 = vmatpush1.bf16.msra.mxu0 %v5695_v60  ;;  %v5721_v60 = vld [vmem:[%s8411_s4 + $0x7e4] ss:$8 sps:$4 sm:$0xff]  }
 0x189   : > { %2780 = vmatmul.mubr.bf16.gmra.mxu1 %v6546_v5  ;;  %3759 = vmatprep.subr.bf16.mxu0 %v5703_v34  ;;  %v5716_v34 = vld [vmem:[%s8411_s4 + $0x6c0] ss:$8 sps:$4 sm:$0xff]  }
 0x18a   : > { %3426 = vmatpush2.bf16.msra.mxu1 %v5698_v53  ;;  %2789 = vmatprep.mubr.bf16.mxu1 %v6616_v33  ;;  %v5724_v53 = vld [vmem:[%s8411_s4 + $0x6b4] ss:$8 sps:$4 sm:$0xff]  }
 0x18b   : > { %3108 = vmatmul.mubr.bf16.gmra.mxu0 %v6947_v45  ;;  %3427 = vmatprep.subr.bf16.mxu1 %v5706_v51  ;;  %v5719_v51 = vld [vmem:[%s8411_s4 + $0x7e0] ss:$8 sps:$4 sm:$0xff]  }
 0x18c   : > { %3117 = vmatprep.mubr.bf16.mxu0 %v6966_v61  ;;  %3760 = vmatpush1.bf16.msra.mxu0 %v5701_v9  ;;  %v5727_v9 = vld [vmem:[%s8411_s4 + $0x7d4] ss:$8 sps:$4 sm:$0xff]  }
 0x18d   : > { %3761 = vmatprep.subr.bf16.mxu0 %v5709_v12  ;;  %v5722_v12 = vld [vmem:[%s8411_s4 + $0x6b0] ss:$8 sps:$4 sm:$0xff]  }
 0x18e   : > { %3428 = vmatpush2.bf16.msra.mxu1 %v5704_v2  ;;  %v5730_v2 = vld [vmem:[%s8411_s4 + $0x6a4] ss:$8 sps:$4 sm:$0xff]  }
 0x18f   : > { %3429 = vmatprep.subr.bf16.mxu1 %v5712_v48  ;;  %v5725_v48 = vld [vmem:[%s8411_s4 + $0x7d0] ss:$8 sps:$4 sm:$0xff]  }
 0x190   : > { %3762 = vmatpush1.bf16.msra.mxu0 %v5707_v15  ;;  %v5733_v15 = vld [vmem:[%s8411_s4 + $0x7c4] ss:$8 sps:$4 sm:$0xff]  }
 0x191   : > { %2790 = vmatmul.mubr.bf16.gmra.mxu1 %v6608_v29  ;;  %3763 = vmatprep.subr.bf16.mxu0 %v5715_v24  ;;  %v5728_v24 = vld [vmem:[%s8411_s4 + $0x6a0] ss:$8 sps:$4 sm:$0xff]  }
 0x192   : > { %3430 = vmatpush2.bf16.msra.mxu1 %v5710_v23  ;;  %2799 = vmatprep.mubr.bf16.mxu1 %v6681_v56  ;;  %v7309_v23 = vpop.f32.mrf.mxu1 }
 0x193   : > { %3118 = vmatmul.mubr.bf16.gmra.mxu0 %v6993_v58  ;;  %3431 = vmatprep.subr.bf16.mxu1 %v5718_v36  ;;  %v5736_v36 = vld [vmem:[%s8411_s4 + $0x694] ss:$8 sps:$4 sm:$0xff]  }
 0x194   : > { %3127 = vmatprep.mubr.bf16.mxu0 %v7012_v38  ;;  %3764 = vmatpush2.bf16.msra.mxu0 %v5713_v52  ;;  %v2170_v52 = vrot.slane %v2161_v20, 1 }
 0x195   : > { %3765 = vmatprep.subr.bf16.mxu0 %v5721_v60  ;;  %v5731_v60 = vld [vmem:[%s8411_s4 + $0x7c0] ss:$8 sps:$4 sm:$0xff]  }
 0x196   : > { %3432 = vmatpush2.bf16.msra.mxu1 %v5716_v34  ;;  %v5739_v34 = vld [vmem:[%s8411_s4 + $0x7b4] ss:$8 sps:$4 sm:$0xff]   ;;  %v2171_v20 = vor.u32 %v2170_v52, %v2158_v8  ;;  %v5740_v8 = vld [vmem:[%s8411_s4 + $0x680] ss:$8 sps:$4 sm:$0xff]   ;;  %v5746_v52 = vld [vmem:[%s8411_s4 + $0x870] ss:$8 sps:$4 sm:$0xff]  }
 0x197   : > { %3433 = vmatprep.subr.bf16.mxu1 %v5724_v53  ;;  %v5734_v53 = vld [vmem:[%s8411_s4 + $0x690] ss:$8 sps:$4 sm:$0xff]  }
 0x198   : > { %3766 = vmatpush2.bf16.msra.mxu0 %v5719_v51  ;;  %v7327_v51 = vpop.f32.mrf.mxu1 }
 0x199   : > { %2800 = vmatmul.mubr.bf16.gmra.mxu1 %v6670_v27  ;;  %3767 = vmatprep.subr.bf16.mxu0 %v5727_v9  ;;  %v5742_v9 = vld [vmem:[%s8411_s4 + $0x684] ss:$8 sps:$4 sm:$0xff]  }
 0x19a   : > { %3434 = vmatpush2.bf16.msra.mxu1 %v5722_v12  ;;  %2809 = vmatprep.mubr.bf16.mxu1 %v7007_v63  ;;  %v5737_v12 = vld [vmem:[%s8411_s4 + $0x7b0] ss:$8 sps:$4 sm:$0xff]  }
 0x19b   : > { %3128 = vmatmul.mubr.bf16.gmra.mxu0 %v7040_v1  ;;  %3435 = vmatprep.subr.bf16.mxu1 %v5730_v2  ;;  %v5745_v2 = vld [vmem:[%s8411_s4 + $0x7a4] ss:$8 sps:$4 sm:$0xff]  }
 0x19c   : > { %3137 = vmatprep.mubr.bf16.mxu0 %v7060_v0  ;;  %3768 = vmatpush2.bf16.msra.mxu0 %v5725_v48  ;;  %v7345_v48 = vpop.f32.mrf.mxu1 }
 0x19d   : > { %3769 = vmatprep.subr.bf16.mxu0 %v5733_v15  ;;  %v7350_v15 = vsel %vm6707_vm10, %v2171_v20, 0 }
 0x19e   : > { %3436 = vmatpush2.bf16.msra.mxu1 %v5728_v24  ;;  %v5748_v24 = vld [vmem:[%s8411_s4 + $0x874] ss:$8 sps:$4 sm:$0xff]  }
 0x19f   : > { %3437 = vmatprep.subr.bf16.mxu1 %v5736_v36  ;;  %v5751_v36 = vld [vmem:[%s8411_s4 + $0x794] ss:$8 sps:$4 sm:$0xff]  }
 0x1a0   : > { %3770 = vmatpush2.bf16.msra.mxu0 %v5731_v60  ;;  %v651_v60 = vpop.f32.mrf.mxu1 }
 0x1a1   : > { %2810 = vmatmul.mubr.bf16.gmra.mxu1 %v6745_v22  ;;  %3771 = vmatprep.subr.bf16.mxu0 %v5739_v34  ;;  %v5754_v34 = vld [vmem:[%s8411_s4 + $0x864] ss:$8 sps:$4 sm:$0xff]  }
 0x1a2   : > { %3438 = vmatpush2.bf16.msra.mxu1 %v5734_v53  ;;  %3441 = vmatprep.mubr.bf16.mxu1 %v6446_v21  ;;  %v5743_v21 = vld [vmem:[%s8411_s4 + $0x7a0] ss:$8 sps:$4 sm:$0xff]   ;;  %v5749_v53 = vld [vmem:[%s8411_s4 + $0x790] ss:$8 sps:$4 sm:$0xff]  }
 0x1a3   : > { %3138 = vmatmul.mubr.bf16.gmra.mxu0 %v7090_v18  ;;  %3439 = vmatprep.subr.bf16.mxu1 %v5742_v9  ;;  %v5757_v9 = vld [vmem:[%s8411_s4 + $0x784] ss:$8 sps:$4 sm:$0xff]  }
 0x1a4   : > { %3147 = vmatprep.mubr.bf16.mxu0 %v7350_v15  ;;  %3772 = vmatpush2.bf16.msra.mxu0 %v5737_v12  ;;  %v7378_v12 = vsel %vm6707_vm10, %v6791_v42, 0  ;;  %v5755_v42 = vld [vmem:[%s8411_s4 + $0x780] ss:$8 sps:$4 sm:$0xff]  }
 0x1a5   : > { %3773 = vmatprep.subr.bf16.mxu0 %v5745_v2  ;;  %v5752_v2 = vld [vmem:[%s8411_s4 + $0x860] ss:$8 sps:$4 sm:$0xff]  }
 0x1a6   : > { %3440 = vmatpush2.bf16.msra.mxu1 %v5740_v8  ;;  %v5760_v8 = vld [vmem:[%s8411_s4 + $0x854] ss:$8 sps:$4 sm:$0xff]  }
 0x1a7   : > { %4085 = vmatprep.subr.bf16.mxu1 %v5748_v24  ;;  %v5758_v24 = vld [vmem:[%s8411_s4 + $0x850] ss:$8 sps:$4 sm:$0xff]  }
 0x1a8   : > { %3774 = vmatpush2.bf16.msra.mxu0 %v5743_v21 }
 0x1a9   : > { %v1460_v20 = vpop.f32.mrf.mxu1  ;;  %3442 = vmatmul.mubr.bf16.vlgmr.msra.gmra.mxu1 %v6461_v30  ;;  %3775 = vmatprep.subr.bf16.mxu0 %v5751_v36  ;;  %v5763_v36 = vld [vmem:[%s8411_s4 + $0x844] ss:$8 sps:$4 sm:$0xff]  }
 0x1aa   : > { %4086 = vmatpush1.bf16.msra.mxu1 %v5746_v52  ;;  %3451 = vmatprep.mubr.bf16.mxu1 %v6506_v26 }
 0x1ab   : > { %3148 = vmatmul.mubr.bf16.gmra.mxu0 %v7378_v12  ;;  %v1462_v30 = vpop.f32.mrf.mxu1  ;;  %4087 = vmatprep.subr.bf16.mxu1 %v5754_v34 }
 0x1ac   : > { %3776 = vmatpush2.bf16.msra.mxu0 %v5749_v53  ;;  %3779 = vmatprep.mubr.bf16.mxu0 %v6374_v25  ;;  %v5761_v53 = vld [vmem:[%s8411_s4 + $0x840] ss:$8 sps:$4 sm:$0xff]  }
 0x1ad   : > { %v1464_v26 = vpop.f32.mrf.mxu1  ;;  %3777 = vmatprep.subr.bf16.mxu0 %v5757_v9 }
 0x1ae   : > { %4088 = vmatpush1.bf16.msra.mxu1 %v5752_v2 }
 0x1af   : > { %v1466_v21 = vpop.f32.mrf.mxu1  ;;  %4089 = vmatprep.subr.bf16.mxu1 %v5760_v8  ;;  %v5766_v8 = vld [vmem:[%s8411_s4 + $0x834] ss:$8 sps:$4 sm:$0xff]  }
 0x1b0   : > { %3778 = vmatpush2.bf16.msra.mxu0 %v5755_v42 }
 0x1b1   : > { %v1470_v52 = vpop.f32.mrf.mxu1  ;;  %v1733_v25 = vpop.f32.mrf.mxu0  ;;  %3452 = vmatmul.mubr.bf16.gmra.mxu1 %v6521_v50 }
 0x1b2   : > { %v7399_v34 = vadd.f32 %v1733_v25, %v1460_v20  ;;  %4090 = vmatpush1.bf16.msra.mxu1 %v5758_v24  ;;  %3461 = vmatprep.mubr.bf16.mxu1 %v6566_v7 }
 0x1b3   : > { %3780 = vmatmul.mubr.bf16.vlgmr.msra.gmra.mxu0 %v6366_v17  ;;  %v1472_v9 = vpop.f32.mrf.mxu1  ;;  %v1735_v2 = vpop.f32.mrf.mxu0  ;;  %4091 = vmatprep.subr.bf16.mxu1 %v5763_v36  ;;  %v5764_v17 = vld [vmem:[%s8411_s4 + $0x830] ss:$8 sps:$4 sm:$0xff]   ;;  %v5769_v36 = vld [vmem:[%s8411_s4 + $0x824] ss:$8 sps:$4 sm:$0xff]  }
 0x1b4   : > { %3789 = vmatprep.mubr.bf16.mxu0 %v6434_v14  ;;  %v7410_v50 = vadd.f32 %v1735_v2, %v1462_v30 }
 0x1b5   : > { %v1474_v20 = vpop.f32.mrf.mxu1  ;;  %v1737_v7 = vpop.f32.mrf.mxu0 }
 0x1b6   : > { %v7412_v42 = vadd.f32 %v1737_v7, %v1464_v26  ;;  %4092 = vmatpush1.bf16.msra.mxu1 %v5761_v53  ;;  %v703_v26 = vmul.f32 %v6238_v41, %v7327_v51  ;;  %v705_v53 = vmul.f32 %v6238_v41, %v651_v60 }
 0x1b7   : > { %v1476_v24 = vpop.f32.mrf.mxu1  ;;  %v1739_v25 = vpop.f32.mrf.mxu0  ;;  %4093 = vmatprep.subr.bf16.mxu1 %v5766_v8  ;;  %v5767_v8 = vld [vmem:[%s8411_s4 + $0x820] ss:$8 sps:$4 sm:$0xff]  }
 0x1b8   : > { %v7421_v14 = vadd.f32 %v1739_v25, %v1466_v21  ;;  %v7443_v60 = vadd.f32 %v6242_v44, %v703_v26 }
 0x1b9   : > { %v1480_v30 = vpop.f32.mrf.mxu1  ;;  %v1743_v2 = vpop.f32.mrf.mxu0  ;;  %3462 = vmatmul.mubr.bf16.gmra.mxu1 %v6581_v11  ;;  %v5772_v11 = vld [vmem:[%s8411_s4 + $0x814] ss:$8 sps:$4 sm:$0xff]  }
 0x1ba   : > { %v7427_v7 = vadd.f32 %v1743_v2, %v1470_v52  ;;  %4094 = vmatpush1.bf16.msra.mxu1 %v5764_v17  ;;  %3471 = vmatprep.mubr.bf16.mxu1 %v6629_v10  ;;  %v5770_v17 = vld [vmem:[%s8411_s4 + $0x810] ss:$8 sps:$4 sm:$0xff]  }
 0x1bb   : > { %3790 = vmatmul.mubr.bf16.gmra.mxu0 %v6426_v4  ;;  %v1482_v21 = vpop.f32.mrf.mxu1  ;;  %v1745_v25 = vpop.f32.mrf.mxu0  ;;  %4095 = vmatprep.subr.bf16.mxu1 %v5769_v36  ;;  %v7446_v4 = vadd.f32 %v6242_v44, %v705_v53  ;;  %v702_v44 = vmul.f32 %v6231_v39, %v7309_v23  ;;  %v5773_v23 = vld [vmem:[%s8411_s4 + $0x800] ss:$8 sps:$4 sm:$0xff]  }
 0x1bc   : > { %3799 = vmatprep.mubr.bf16.mxu0 %v6494_v16  ;;  %v7440_v41 = vadd.f32 %v1745_v25, %v1472_v9  ;;  %v5775_v16 = vld [vmem:[%s8411_s4 + $0x804] ss:$8 sps:$4 sm:$0xff]   ;;  %v885_v9 = vstv %s884_s28  ;;  %v8438_v25 = vmax.f32 %v7443_v60, 0.0 }
 0x1bd   : > { %v1484_v10 = vpop.f32.mrf.mxu1  ;;  %v1747_v51 = vpop.f32.mrf.mxu0  ;;  %vm7471_vm11 = vcmp.eq.s32.totalorder %v885_v9, 1 }
 0x1be   : > { %v7448_v52 = vadd.f32 %v1747_v51, %v1474_v20  ;;  %4096 = vmatpush1.bf16.msra.mxu1 %v5767_v8  ;;  %v704_v20 = vmul.f32 %v6231_v39, %v7345_v48  ;;  %v5778_v48 = vld [vmem:[%s8411_s4 + $0x8f4] ss:$8 sps:$4 sm:$0xff]   ;;  %vm5159_vm12 = vmneg %vm7471_vm11 }
 0x1bf   : > { %v1486_v36 = vpop.f32.mrf.mxu1  ;;  %v1749_v2 = vpop.f32.mrf.mxu0  ;;  %4097 = vmatprep.subr.bf16.mxu1 %v5772_v11  ;;  %v8437_v11 = vmax.f32 %v7446_v4, 0.0  ;;  %vm7621_vm13 = vmpackc.low %vm5159_vm12, %vm5159_vm12 }
 0x1c0   : > { %v7456_v26 = vadd.f32 %v1749_v2, %v1476_v24  ;;  %v8487_v24 = vmax.f32 %v7443_v60, 0.0 }
 0x1c1   : > { %v1490_v53 = vpop.f32.mrf.mxu1  ;;  %v1753_v8 = vpop.f32.mrf.mxu0  ;;  %3472 = vmatmul.mubr.bf16.gmra.mxu1 %v6645_v49 }
 0x1c2   : > { %v7465_v51 = vadd.f32 %v1753_v8, %v1480_v30  ;;  %4098 = vmatpush1.bf16.msra.mxu1 %v5770_v17  ;;  %3481 = vmatprep.mubr.bf16.mxu1 %v6685_v54  ;;  %v7483_v30 = vadd.f32 %v6235_v40, %v702_v44  ;;  %v7486_v17 = vadd.f32 %v6235_v40, %v704_v20  ;;  %v5776_v40 = vld [vmem:[%s8411_s4 + $0x8f0] ss:$8 sps:$4 sm:$0xff]   ;;  %v5781_v20 = vld [vmem:[%s8411_s4 + $0x8e4] ss:$8 sps:$4 sm:$0xff]  }
 0x1c3   : > { %3800 = vmatmul.mubr.bf16.gmra.mxu0 %v6486_v3  ;;  %v1492_v39 = vpop.f32.mrf.mxu1  ;;  %v1755_v49 = vpop.f32.mrf.mxu0  ;;  %4099 = vmatprep.subr.bf16.mxu1 %v5775_v16  ;;  %v964_v3 = vsel %vm7471_vm11, 0.0, %v8438_v25 }
 0x1c4   : > { %3809 = vmatprep.mubr.bf16.mxu0 %v6554_v43  ;;  %v7480_v54 = vadd.f32 %v1755_v49, %v1482_v21  ;;  %v966_v43 = vsel %vm7471_vm11, 0.0, %v8437_v11  ;;  %v8440_v49 = vmax.f32 %v7483_v30, 0.0  ;;  %v8439_v11 = vmax.f32 %v7486_v17, 0.0 }
 0x1c5   : > { %v1494_v2 = vpop.f32.mrf.mxu1  ;;  %v1757_v9 = vpop.f32.mrf.mxu0 }
 0x1c6   : > { %v7496_v21 = vadd.f32 %v1757_v9, %v1484_v10  ;;  %4100 = vmatpush1.bf16.msra.mxu1 %v5773_v23  ;;  %v7508_v10 = vpack.c.bf16 %v966_v43, %v964_v3  ;;  %v5784_v3 = vld [vmem:[%s8411_s4 + $0x8d4] ss:$8 sps:$4 sm:$0xff]  }
 0x1c7   : > { %v1496_v16 = vpop.f32.mrf.mxu1  ;;  %v1759_v44 = vpop.f32.mrf.mxu0  ;;  %4101 = vmatprep.subr.bf16.mxu1 %v5778_v48 }
 0x1c8   : > { %v7504_v8 = vadd.f32 %v1759_v44, %v1486_v36  ;;  %v5779_v36 = vld [vmem:[%s8411_s4 + $0x8e0] ss:$8 sps:$4 sm:$0xff]  }
 0x1c9   : > { %v1500_v23 = vpop.f32.mrf.mxu1  ;;  %v1763_v9 = vpop.f32.mrf.mxu0  ;;  %3482 = vmatmul.mubr.bf16.gmra.mxu1 %v6703_v28 }
 0x1ca   : > { %v7511_v25 = vadd.f32 %v1763_v9, %v1490_v53  ;;  %4102 = vmatpush2.bf16.msra.mxu1 %v5776_v40  ;;  %3491 = vmatprep.mubr.bf16.mxu1 %v6751_v13  ;;  %v963_v13 = vsel %vm7471_vm11, 0.0, %v8440_v49 }
 0x1cb   : > { %3810 = vmatmul.mubr.bf16.gmra.mxu0 %v6546_v5  ;;  %v7518_v48 = vpop.f32.mrf.mxu1  ;;  %v1765_v44 = vpop.f32.mrf.mxu0  ;;  %4103 = vmatprep.subr.bf16.mxu1 %v5781_v20  ;;  %v965_v5 = vsel %vm7471_vm11, 0.0, %v8439_v11 }
 0x1cc   : > { %3819 = vmatprep.mubr.bf16.mxu0 %v6616_v33  ;;  %v7524_v28 = vadd.f32 %v1765_v44, %v1492_v39  ;;  %v5782_v33 = vld [vmem:[%s8411_s4 + $0x8d0] ss:$8 sps:$4 sm:$0xff]   ;;  %v5787_v44 = vld [vmem:[%s8411_s4 + $0x8c4] ss:$8 sps:$4 sm:$0xff]   ;;  %v7545_v11 = vpack.c.bf16 %v965_v5, %v963_v13 }
 0x1cd   : > { %v1504_v53 = vpop.f32.mrf.mxu1  ;;  %v1767_v43 = vpop.f32.mrf.mxu0 }
 0x1ce   : > { %v7535_v20 = vadd.f32 %v1767_v43, %v1494_v2  ;;  %4104 = vmatpush2.bf16.msra.mxu1 %v5779_v36  ;;  %v8483_v36 = vshrl.u32 %v7508_v10, 16  ;;  %v8446_v5 = vshrl.u32 %v7545_v11, 16 }
 0x1cf   : > { %v7540_v39 = vpop.f32.mrf.mxu1  ;;  %v1769_v9 = vpop.f32.mrf.mxu0  ;;  %4105 = vmatprep.subr.bf16.mxu1 %v5784_v3  ;;  %v5785_v3 = vld [vmem:[%s8411_s4 + $0x8c0] ss:$8 sps:$4 sm:$0xff]  }
 0x1d0   : > { %v7547_v49 = vadd.f32 %v1769_v9, %v1496_v16  ;;  %v3200_v43 = vrot.slane %v8483_v36, 7  ;;  %v3193_v35 = vrot.slane %v8446_v5, 7 }
 0x1d1   : > { %v1510_v40 = vpop.f32.mrf.mxu1  ;;  %v1773_v2 = vpop.f32.mrf.mxu0  ;;  %3492 = vmatmul.mubr.bf16.gmra.mxu1 %v6768_v59  ;;  %v5790_v59 = vld [vmem:[%s8411_s4 + $0x8b4] ss:$8 sps:$4 sm:$0xff]  }
 0x1d2   : > { %v7552_v37 = vadd.f32 %v1773_v2, %v1500_v23  ;;  %4106 = vmatpush2.bf16.msra.mxu1 %v5782_v33  ;;  %3501 = vmatprep.mubr.bf16.mxu1 %v7101_v46  ;;  %v8445_v23 = vshll.u32 %v7508_v10, 16 }
 0x1d3   : > { %3820 = vmatmul.mubr.bf16.gmra.mxu0 %v6608_v29  ;;  %v7559_v16 = vpop.f32.mrf.mxu1  ;;  %v7561_v13 = vpop.f32.mrf.mxu0  ;;  %4107 = vmatprep.subr.bf16.mxu1 %v5787_v44  ;;  %v5788_v44 = vld [vmem:[%s8411_s4 + $0x8b0] ss:$8 sps:$4 sm:$0xff]  }
 0x1d4   : > { %3829 = vmatprep.mubr.bf16.mxu0 %v6681_v56  ;;  %v3203_v29 = vor.u32 %v8445_v23, %v3200_v43  ;;  %v5793_v56 = vld [vmem:[%s8411_s4 + $0x8a4] ss:$8 sps:$4 sm:$0xff]   ;;  %v8449_v23 = vshll.u32 %v7545_v11, 16 }
 0x1d5   : > { %v1514_v46 = vpop.f32.mrf.mxu1  ;;  %v1777_v33 = vpop.f32.mrf.mxu0 }
 0x1d6   : > { %v7571_v9 = vadd.f32 %v1777_v33, %v1504_v53  ;;  %4108 = vmatpush2.bf16.msra.mxu1 %v5785_v3  ;;  %v3207_v3 = vsel %vm6316_vm7, 0, %v3203_v29 }
 0x1d7   : > { %v7576_v2 = vpop.f32.mrf.mxu1  ;;  %v7578_v36 = vpop.f32.mrf.mxu0  ;;  %4109 = vmatprep.subr.bf16.mxu1 %v5790_v59  ;;  %v5791_v59 = vld [vmem:[%s8411_s4 + $0x8a0] ss:$8 sps:$4 sm:$0xff]  }
 0x1d9   : > { %v1520_v43 = vpop.f32.mrf.mxu1  ;;  %v1783_v53 = vpop.f32.mrf.mxu0  ;;  %3502 = vmatmul.mubr.bf16.gmra.mxu1 %v7125_v31  ;;  %v5796_v31 = vld [vmem:[%s8411_s4 + $0x894] ss:$8 sps:$4 sm:$0xff]  }
 0x1da   : > { %v7588_v33 = vadd.f32 %v1783_v53, %v1510_v40  ;;  %4110 = vmatpush2.bf16.msra.mxu1 %v5788_v44  ;;  %3511 = vmatprep.mubr.bf16.mxu1 %v3207_v3  ;;  %v3196_v40 = vor.u32 %v8449_v23, %v3193_v35  ;;  %v5799_v35 = vld [vmem:[%s8411_s4 + $0x884] ss:$8 sps:$4 sm:$0xff]   ;;  %v8488_v23 = vmax.f32 %v7446_v4, 0.0 }
 0x1db   : > { %3830 = vmatmul.mubr.bf16.gmra.mxu0 %v6670_v27  ;;  %v7595_v5 = vpop.f32.mrf.mxu1  ;;  %v7597_v19 = vpop.f32.mrf.mxu0  ;;  %4111 = vmatprep.subr.bf16.mxu1 %v5793_v56  ;;  %v5794_v27 = vld [vmem:[%s8411_s4 + $0x890] ss:$8 sps:$4 sm:$0xff]  }
 0x1dc   : > { %3839 = vmatprep.mubr.bf16.mxu0 %v7007_v63  ;;  %v3206_v63 = vsel %vm6316_vm7, 0, %v3196_v40 }
 0x1dd   : > { %v1524_v29 = vpop.f32.mrf.mxu1  ;;  %v1787_v44 = vpop.f32.mrf.mxu0 }
 0x1de   : > { %v7605_v53 = vadd.f32 %v1787_v44, %v1514_v46  ;;  %4112 = vmatpush2.bf16.msra.mxu1 %v5791_v59 }
 0x1df   : > { %v7612_v56 = vpop.f32.mrf.mxu1  ;;  %v7614_v3 = vpop.f32.mrf.mxu0  ;;  %4113 = vmatprep.subr.bf16.mxu1 %v5796_v31 }
 0x1e0   : > { %8484 = vst [vmem:[#allocation5_spill] sm:$0xff] %v7612_v56  ;;  %v5162_v56 = vpack.c.bf16 %v8488_v23, %v8487_v24 }
 0x1e1   : > { %v1530_v46 = vpop.f32.mrf.mxu1  ;;  %v1793_v59 = vpop.f32.mrf.mxu0  ;;  %3512 = vmatmul.mubr.bf16.gmra.mxu1 %v3206_v63 }
 0x1e2   : > { %v7629_v31 = vadd.f32 %v1793_v59, %v1520_v43  ;;  %4114 = vmatpush2.bf16.msra.mxu1 %v5794_v27  ;;  %4117 = vmatprep.mubr.bf16.mxu1 %v6829_v55  ;;  %v8490_v27 = vmax.f32 %v7483_v30, 0.0 }
 0x1e3   : > { %3840 = vmatmul.mubr.bf16.gmra.mxu0 %v6745_v22  ;;  %v7636_v40 = vpop.f32.mrf.mxu1  ;;  %v7638_v63 = vpop.f32.mrf.mxu0  ;;  %4115 = vmatprep.subr.bf16.mxu1 %v5799_v35  ;;  %v8491_v22 = vmax.f32 %v7486_v17, 0.0 }
 0x1e4   : > { %8489 = vst [vmem:[#allocation6_spill] sm:$0xff] %v7636_v40  ;;  %5163 = vmatprep.mubr.msk.bf16.mxu0 %vm7621_vm13, %v5162_v56 }
 0x1e5   : > { %v1534_v60 = vpop.f32.mrf.mxu1  ;;  %v1797_v4 = vpop.f32.mrf.mxu0  ;;  %v5167_v59 = vpack.c.bf16 %v8491_v22, %v8490_v27 }
 0x1e6   : > { %v7642_v23 = vadd.f32 %v1797_v4, %v1524_v29  ;;  %4116 = vmatpush2.bf16.msra.mxu1 %v5797_v47 }
 0x1e7   : > { %v7644_v55 = vpop.f32.mrf.mxu1  ;;  %v7646_v43 = vpop.f32.mrf.mxu0 }
 0x1e9   : > { %v1803_v24 = vpop.f32.mrf.mxu0  ;;  %v2039_v40 = vpop.f32.mrf.mxu1  ;;  %4118 = vmatmul.mubr.bf16.vlgmr.msra.gmra.mxu1 %v6856_v57 }
 0x1ea   : > { %v7653_v35 = vadd.f32 %v1803_v24, %v1530_v46  ;;  %v2118_v56 = vadd.f32 %v2039_v40, %v7399_v34  ;;  %4127 = vmatprep.mubr.bf16.mxu1 %v6873_v32 }
 0x1eb   : > { %5168 = vmatmul.mubr.msk.bf16.gmra.mxu0 %vm7621_vm13, %v5167_v59  ;;  %v7659_v29 = vpop.f32.mrf.mxu0  ;;  %v2041_v47 = vpop.f32.mrf.mxu1 }
 0x1ec   : > { %v7662_v30 = vadd.f32 %v2041_v47, %v7410_v50 }
 0x1ed   : > { %v1807_v17 = vpop.f32.mrf.mxu0  ;;  %v2043_v4 = vpop.f32.mrf.mxu1 }
 0x1ee   : > { %v7664_v27 = vadd.f32 %v1807_v17, %v1534_v60  ;;  %v2120_v57 = vadd.f32 %v2043_v4, %v7412_v42 }
 0x1ef   : > { %v7667_v46 = vpop.f32.mrf.mxu0  ;;  %v2045_v34 = vpop.f32.mrf.mxu1 }
 0x1f0   : > { %v7670_v32 = vadd.f32 %v2045_v34, %v7421_v14 }
 0x1f1   : > { %v2049_v44 = vpop.f32.mrf.mxu1  ;;  %4128 = vmatmul.mubr.bf16.gmra.mxu1 %v6900_v6  ;;  %v4381_v6 = vld [vmem:[%s8414_s7 + $0xf8] sm:$0xff] }
 0x1f2   : > { %v2122_v40 = vadd.f32 %v2049_v44, %v7427_v7  ;;  %v2403_v22 = vpop.f32.mrf.mxu0  ;;  %4137 = vmatprep.mubr.bf16.mxu1 %v6917_v62  ;;  %5236 = vmatprep.subr.mxu0 %v4381_v6 }
 0x1f3   : > { %v7675_v50 = vadd.f32 %v2403_v22, %v2118_v56  ;;  %v2051_v60 = vpop.f32.mrf.mxu1 }
 0x1f4   : > { %v7678_v59 = vadd.f32 %v2051_v60, %v7440_v41  ;;  %v7680_v42 = vpop.f32.mrf.mxu0  ;;  %v4365_v41 = vld [vmem:[%s8414_s7 + $0x78] sm:$0xff] }
 0x1f5   : > { %v2053_v24 = vpop.f32.mrf.mxu1  ;;  %5237 = vmatpush3.msra.mxu0 %v4365_v41  ;;  %v4363_v41 = vld [vmem:[%s8414_s7 + $0x68] sm:$0xff] }
 0x1f6   : > { %v2124_v14 = vadd.f32 %v2053_v24, %v7448_v52  ;;  %v2407_v47 = vpop.f32.mrf.mxu0 }
 0x1f7   : > { %v7686_v7 = vadd.f32 %v2407_v47, %v2120_v57  ;;  %v2055_v17 = vpop.f32.mrf.mxu1 }
 0x1f8   : > { %v7689_v62 = vadd.f32 %v2055_v17, %v7456_v26  ;;  %v7691_v56 = vpop.f32.mrf.mxu0  ;;  %v4380_v26 = vld [vmem:[%s8414_s7 + $0xf0] sm:$0xff] }
 0x1f9   : > { %v2059_v4 = vpop.f32.mrf.mxu1  ;;  %4138 = vmatmul.mubr.bf16.gmra.mxu1 %v6947_v45  ;;  %5238 = vmatprep.subr.mxu0 %v4380_v26  ;;  %v4364_v45 = vld [vmem:[%s8414_s7 + $0x70] sm:$0xff] }
 0x1fa   : > { %v2126_v52 = vadd.f32 %v2059_v4, %v7465_v51  ;;  %v2413_v34 = vpop.f32.mrf.mxu0  ;;  %4147 = vmatprep.mubr.bf16.mxu1 %v6966_v61  ;;  %5239 = vmatpush3.msra.mxu0 %v4364_v45 }
 0x1fb   : > { %v7702_v57 = vadd.f32 %v2413_v34, %v2122_v40  ;;  %v2061_v44 = vpop.f32.mrf.mxu1  ;;  %v4379_v40 = vld [vmem:[%s8414_s7 + $0xe8] sm:$0xff] }
 0x1fc   : > { %v7705_v22 = vadd.f32 %v2061_v44, %v7480_v54  ;;  %v7707_v60 = vpop.f32.mrf.mxu0  ;;  %5240 = vmatprep.subr.mxu0 %v4379_v40 }
 0x1fd   : > { %v2063_v51 = vpop.f32.mrf.mxu1  ;;  %5241 = vmatpush3.msra.mxu0 %v4363_v41  ;;  %v4361_v41 = vld [vmem:[%s8414_s7 + $0x58] sm:$0xff] }
 0x1fe   : > { %v2128_v61 = vadd.f32 %v2063_v51, %v7496_v21  ;;  %v2417_v24 = vpop.f32.mrf.mxu0 }
 0x1ff   : > { %v7716_v47 = vadd.f32 %v2417_v24, %v2124_v14  ;;  %v2065_v6 = vpop.f32.mrf.mxu1 }
 0x200   : > { %v7719_v54 = vadd.f32 %v2065_v6, %v7504_v8  ;;  %v7721_v17 = vpop.f32.mrf.mxu0  ;;  %v4378_v8 = vld [vmem:[%s8414_s7 + $0xe0] sm:$0xff] }
 0x201   : > { %v2069_v4 = vpop.f32.mrf.mxu1  ;;  %4148 = vmatmul.mubr.bf16.gmra.mxu1 %v6993_v58  ;;  %5242 = vmatprep.subr.mxu0 %v4378_v8  ;;  %v4362_v58 = vld [vmem:[%s8414_s7 + $0x60] sm:$0xff] }
 0x202   : > { %v2130_v21 = vadd.f32 %v2069_v4, %v7511_v25  ;;  %v2423_v34 = vpop.f32.mrf.mxu0  ;;  %4157 = vmatprep.mubr.bf16.mxu1 %v7012_v38  ;;  %5243 = vmatpush3.msra.mxu0 %v4362_v58 }
 0x203   : > { %v7732_v14 = vadd.f32 %v2423_v34, %v2126_v52  ;;  %v2071_v26 = vpop.f32.mrf.mxu1  ;;  %v4377_v52 = vld [vmem:[%s8414_s7 + $0xd8] sm:$0xff] }
 0x204   : > { %v7735_v44 = vadd.f32 %v2071_v26, %v7524_v28  ;;  %v7737_v45 = vpop.f32.mrf.mxu0  ;;  %5244 = vmatprep.subr.mxu0 %v4377_v52 }
 0x205   : > { %v2073_v25 = vpop.f32.mrf.mxu1  ;;  %5245 = vmatpush3.msra.mxu0 %v4361_v41 }
 0x206   : > { %v2132_v38 = vadd.f32 %v2073_v25, %v7535_v20  ;;  %v2427_v51 = vpop.f32.mrf.mxu0  ;;  %v1776_v20 = vadd.f32 %v7561_v13, %v7518_v48 }
 0x207   : > { %v7746_v24 = vadd.f32 %v2427_v51, %v2128_v61  ;;  %v2075_v40 = vpop.f32.mrf.mxu1 }
 0x208   : > { %v7749_v28 = vadd.f32 %v2075_v40, %v7547_v49  ;;  %v7751_v6 = vpop.f32.mrf.mxu0  ;;  %v4376_v49 = vld [vmem:[%s8414_s7 + $0xd0] sm:$0xff] }
 0x209   : > { %v2079_v4 = vpop.f32.mrf.mxu1  ;;  %4158 = vmatmul.mubr.bf16.gmra.mxu1 %v7040_v1  ;;  %5246 = vmatprep.subr.mxu0 %v4376_v49  ;;  %v4360_v1 = vld [vmem:[%s8414_s7 + $0x50] sm:$0xff]  ;;  %v4374_v49 = vld [vmem:[%s8414_s7 + $0xc0] sm:$0xff] }
 0x20a   : > { %v2134_v61 = vadd.f32 %v2079_v4, %v7552_v37  ;;  %v2433_v34 = vpop.f32.mrf.mxu0  ;;  %4167 = vmatprep.mubr.bf16.mxu1 %v7060_v0  ;;  %5247 = vmatpush3.msra.mxu0 %v4360_v1  ;;  %v1780_v37 = vadd.f32 %v7578_v36, %v7540_v39  ;;  %v4359_v4 = vld [vmem:[%s8414_s7 + $0x48] sm:$0xff]  ;;  %v8492_v39 = vshll.u32 %v7508_v10, 16  ;;  %v1786_v36 = vadd.f32 %v7597_v19, %v7559_v16 }
 0x20b   : > { %v7764_v8 = vadd.f32 %v2433_v34, %v2130_v21  ;;  %v2081_v26 = vpop.f32.mrf.mxu1  ;;  %v4375_v21 = vld [vmem:[%s8414_s7 + $0xc8] sm:$0xff] }
 0x20c   : > { %v2135_v58 = vadd.f32 %v2081_v26, %v1776_v20  ;;  %v7766_v25 = vpop.f32.mrf.mxu0  ;;  %5248 = vmatprep.subr.mxu0 %v4375_v21 }
 0x20d   : > { %v2083_v48 = vpop.f32.mrf.mxu1  ;;  %5249 = vmatpush3.msra.mxu0 %v4359_v4 }
 0x20e   : > { %v2136_v0 = vadd.f32 %v2083_v48, %v7571_v9  ;;  %v2437_v13 = vpop.f32.mrf.mxu0  ;;  %v3210_v9 = vrot.slane %v8492_v39, 1  ;;  %5250 = vmatprep.subr.mxu0 %v4374_v49 }
 0x20f   : > { %v7777_v51 = vadd.f32 %v2437_v13, %v2132_v38  ;;  %v2085_v52 = vpop.f32.mrf.mxu1  ;;  %v1790_v13 = vadd.f32 %v7614_v3, %v7576_v2  ;;  %v4357_v2 = vld [vmem:[%s8414_s7 + $0x38] sm:$0xff] }
 0x210   : > { %v2137_v40 = vadd.f32 %v2085_v52, %v1780_v37  ;;  %v7779_v41 = vpop.f32.mrf.mxu0  ;;  %v4358_v37 = vld [vmem:[%s8414_s7 + $0x40] sm:$0xff]  ;;  %v4373_v52 = vld [vmem:[%s8414_s7 + $0xb8] sm:$0xff] }
 0x211   : > { %v2089_v20 = vpop.f32.mrf.mxu1  ;;  %4168 = vmatmul.mubr.bf16.gmra.mxu1 %v7090_v18  ;;  %5251 = vmatpush3.msra.mxu0 %v4358_v37 }
 0x212   : > { %v2138_v38 = vadd.f32 %v2089_v20, %v7588_v33  ;;  %v2443_v34 = vpop.f32.mrf.mxu0  ;;  %4177 = vmatprep.mubr.bf16.mxu1 %v7350_v15  ;;  %v8493_v33 = vshrl.u32 %v7508_v10, 16  ;;  %5252 = vmatprep.subr.mxu0 %v4373_v52  ;;  %v8494_v10 = vshll.u32 %v7545_v11, 16 }
 0x213   : > { %v7794_v26 = vadd.f32 %v2443_v34, %v2134_v61  ;;  %v2091_v1 = vpop.f32.mrf.mxu1  ;;  %5253 = vmatpush3.msra.mxu0 %v4357_v2  ;;  %v1796_v34 = vadd.f32 %v7638_v63, %v7595_v5  ;;  %v4356_v5 = vld [vmem:[%s8414_s7 + $0x30] sm:$0xff] }
 0x214   : > { %v2139_v18 = vadd.f32 %v2091_v1, %v1786_v36  ;;  %v2445_v48 = vpop.f32.mrf.mxu0  ;;  %v3211_v15 = vor.u32 %v3210_v9, %v8493_v33  ;;  %v3208_v9 = vrot.slane %v8494_v10, 1  ;;  %v8496_v33 = vshrl.u32 %v7545_v11, 16  ;;  %v4370_v36 = vld [vmem:[%s8414_s7 + $0xa0] sm:$0xff] }
 0x215   : > { %v7799_v19 = vadd.f32 %v2445_v48, %v2135_v58  ;;  %v2093_v16 = vpop.f32.mrf.mxu1  ;;  %v4372_v48 = vld [vmem:[%s8414_s7 + $0xb0] sm:$0xff] }
 0x216   : > { %v2140_v61 = vadd.f32 %v2093_v16, %v7605_v53  ;;  %v2447_v21 = vpop.f32.mrf.mxu0  ;;  %5254 = vmatprep.subr.mxu0 %v4372_v48 }
 0x217   : > { %v7809_v4 = vadd.f32 %v2447_v21, %v2136_v0  ;;  %v2095_v20 = vpop.f32.mrf.mxu1  ;;  %v3215_v0 = vsel %vm6707_vm10, %v3211_v15, 0  ;;  %v3209_v15 = vor.u32 %v3208_v9, %v8496_v33  ;;  %5255 = vmatpush3.msra.mxu0 %v4356_v5 }
 0x218   : > { %v2141_v58 = vadd.f32 %v2095_v20, %v1790_v13  ;;  %v2449_v39 = vpop.f32.mrf.mxu0  ;;  %v8497_v13 = vld [vmem:[#allocation5_spill] sm:$0xff]  ;;  %v4371_v20 = vld [vmem:[%s8414_s7 + $0xa8] sm:$0xff] }
 0x219   : > { %v7816_v3 = vadd.f32 %v2449_v39, %v2137_v40  ;;  %v2099_v53 = vpop.f32.mrf.mxu1  ;;  %4178 = vmatmul.mubr.bf16.gmra.mxu1 %v7378_v12  ;;  %v1800_v21 = vadd.f32 %v7646_v43, %v8497_v13  ;;  %5256 = vmatprep.subr.mxu0 %v4371_v20  ;;  %v4355_v43 = vld [vmem:[%s8414_s7 + $0x28] sm:$0xff] }
 0x21a   : > { %v2142_v49 = vadd.f32 %v2099_v53, %v7629_v31  ;;  %v2453_v1 = vpop.f32.mrf.mxu0  ;;  %4187 = vmatprep.mubr.bf16.mxu1 %v3215_v0  ;;  %5257 = vmatpush3.msra.mxu0 %v4355_v43  ;;  %v8498_v53 = vld [vmem:[#allocation6_spill] sm:$0xff] }
 0x21b   : > { %v7827_v40 = vadd.f32 %v2453_v1, %v2138_v38  ;;  %v2101_v37 = vpop.f32.mrf.mxu1  ;;  %5258 = vmatprep.subr.mxu0 %v4370_v36 }
 0x21c   : > { %v2143_v12 = vadd.f32 %v2101_v37, %v1796_v34  ;;  %v2455_v16 = vpop.f32.mrf.mxu0 }
 0x21d   : > { %v7834_v31 = vadd.f32 %v2455_v16, %v2139_v18  ;;  %v2103_v63 = vpop.f32.mrf.mxu1  ;;  %v3214_v18 = vsel %vm6707_vm10, %v3209_v15, 0  ;;  %v4354_v16 = vld [vmem:[%s8414_s7 + $0x20] sm:$0xff] }
 0x21e   : > { %v2144_v38 = vadd.f32 %v2103_v63, %v7642_v23  ;;  %v2457_v52 = vpop.f32.mrf.mxu0  ;;  %5259 = vmatpush3.msra.mxu0 %v4354_v16 }
 0x21f   : > { %v7842_v11 = vadd.f32 %v2457_v52, %v2140_v61  ;;  %v2105_v39 = vpop.f32.mrf.mxu1  ;;  %v1806_v61 = vadd.f32 %v7659_v29, %v8498_v53 }
 0x220   : > { %v2145_v10 = vadd.f32 %v2105_v39, %v1800_v21  ;;  %v2459_v9 = vpop.f32.mrf.mxu0 }
 0x221   : > { %v7849_v2 = vadd.f32 %v2459_v9, %v2141_v58  ;;  %v2109_v23 = vpop.f32.mrf.mxu1  ;;  %4188 = vmatmul.mubr.bf16.gmra.mxu1 %v3214_v18 }
 0x222   : > { %v2146_v0 = vadd.f32 %v2109_v23, %v7653_v35  ;;  %v2463_v34 = vpop.f32.mrf.mxu0  ;;  %v1810_v35 = vadd.f32 %v7667_v46, %v7644_v55 }
 0x223   : > { %v7857_v1 = vadd.f32 %v2463_v34, %v2142_v49  ;;  %v2111_v48 = vpop.f32.mrf.mxu1  ;;  %v4369_v49 = vld [vmem:[%s8414_s7 + $0x98] sm:$0xff] }
 0x224   : > { %v2147_v37 = vadd.f32 %v2111_v48, %v1806_v61  ;;  %v2465_v58 = vpop.f32.mrf.mxu0  ;;  %5260 = vmatprep.subr.mxu0 %v4369_v49  ;;  %v4352_v48 = vld [vmem:[%s8414_s7 + $0x10] sm:$0xff]  ;;  %v4366_v49 = vld [vmem:[%s8414_s7 + $0x80] sm:$0xff] }
 0x225   : > { %v7862_v33 = vadd.f32 %v2465_v58, %v2143_v12  ;;  %v2113_v29 = vpop.f32.mrf.mxu1  ;;  %v4353_v12 = vld [vmem:[%s8414_s7 + $0x18] sm:$0xff] }
 0x226   : > { %v2148_v15 = vadd.f32 %v2113_v29, %v7664_v27  ;;  %v2467_v5 = vpop.f32.mrf.mxu0  ;;  %5261 = vmatpush3.msra.mxu0 %v4353_v12  ;;  %v2483_v27 = vadd.f32 %v7680_v42, %v7662_v30  ;;  %v2485_v30 = vadd.f32 %v7691_v56, %v7670_v32  ;;  %v4350_v12 = vld [vmem:[%s8414_s7] sm:$0xff] }
 0x227   : > { %v7870_v63 = vadd.f32 %v2467_v5, %v2144_v38  ;;  %v2115_v13 = vpop.f32.mrf.mxu1  ;;  %v4368_v38 = vld [vmem:[%s8414_s7 + $0x90] sm:$0xff]  ;;  %v4351_v5 = vld [vmem:[%s8414_s7 + $0x8] sm:$0xff] }
 0x228   : > { %v2149_v21 = vadd.f32 %v2115_v13, %v1810_v35  ;;  %v2469_v52 = vpop.f32.mrf.mxu0  ;;  %5262 = vmatprep.subr.mxu0 %v4368_v38 }
 0x229   : > { %v7875_v20 = vadd.f32 %v2469_v52, %v2145_v10  ;;  %v2741_v55 = vpop.f32.mrf.mxu1  ;;  %5263 = vmatpush3.msra.mxu0 %v4352_v48 }
 0x22a   : > { %v2473_v46 = vpop.f32.mrf.mxu0  ;;  %v2820_v39 = vadd.f32 %v2741_v55, %v7675_v50 }
 0x22b   : > { %v7883_v9 = vadd.f32 %v2473_v46, %v2146_v0  ;;  %v2743_v18 = vpop.f32.mrf.mxu1 }
 0x22c   : > { %v2475_v43 = vpop.f32.mrf.mxu0  ;;  %v7885_v23 = vadd.f32 %v2743_v18, %v2483_v27 }
 0x22d   : > { %v7887_v10 = vadd.f32 %v2475_v43, %v2147_v37  ;;  %v2745_v53 = vpop.f32.mrf.mxu1  ;;  %v4367_v37 = vld [vmem:[%s8414_s7 + $0x88] sm:$0xff] }
 0x22e   : > { %v2477_v42 = vpop.f32.mrf.mxu0  ;;  %v2822_v50 = vadd.f32 %v2745_v53, %v7686_v7  ;;  %v2487_v7 = vadd.f32 %v7707_v60, %v7678_v59  ;;  %5264 = vmatprep.subr.mxu0 %v4367_v37  ;;  %v2495_v37 = vadd.f32 %v7766_v25, %v7735_v44 }
 0x22f   : > { %v7892_v61 = vadd.f32 %v2477_v42, %v2148_v15  ;;  %v2747_v34 = vpop.f32.mrf.mxu1  ;;  %5265 = vmatpush3.msra.mxu0 %v4351_v5  ;;  %v2493_v42 = vadd.f32 %v7751_v6, %v7719_v54 }
 0x230   : > { %v2479_v36 = vpop.f32.mrf.mxu0  ;;  %v7894_v0 = vadd.f32 %v2747_v34, %v2485_v30  ;;  %5266 = vmatprep.subr.mxu0 %v4366_v49 }
 0x231   : > { %v7902_v58 = vadd.f32 %v2479_v36, %v2149_v21  ;;  %v2751_v32 = vpop.f32.mrf.mxu1  ;;  %5267 = vmatpush3.msra.mxu0 %v4350_v12 }
 0x232   : > { %v2824_v56 = vadd.f32 %v2751_v32, %v7702_v57  ;;  %v2489_v57 = vadd.f32 %v7721_v17, %v7689_v62  ;;  %v2491_v62 = vadd.f32 %v7737_v45, %v7705_v22 }
 0x233   : > { %v3079_v16 = vpop.f32.mrf.mxu0  ;;  %v2753_v29 = vpop.f32.mrf.mxu1 }
 0x234   : > { %v7907_v35 = vadd.f32 %v3079_v16, %v2820_v39  ;;  %v7909_v15 = vadd.f32 %v2753_v29, %v2487_v7  ;;  %v2497_v29 = vadd.f32 %v7779_v41, %v7749_v28 }
 0x235   : > { %v7917_v13 = vpop.f32.mrf.mxu0  ;;  %v2755_v59 = vpop.f32.mrf.mxu1 }
 0x236   : > { %v2826_v60 = vadd.f32 %v2755_v59, %v7716_v47 }
 0x237   : > { %v3083_v21 = vpop.f32.mrf.mxu0  ;;  %v2757_v52 = vpop.f32.mrf.mxu1 }
 0x238   : > { %v7925_v55 = vadd.f32 %v3083_v21, %v2822_v50  ;;  %v7927_v27 = vadd.f32 %v2757_v52, %v2489_v57 }
 0x239   : > { %v7929_v46 = vpop.f32.mrf.mxu0  ;;  %v2761_v39 = vpop.f32.mrf.mxu1 }
 0x23a   : > { %v2828_v47 = vadd.f32 %v2761_v39, %v7732_v14 }
 0x23b   : > { %v3089_v17 = vpop.f32.mrf.mxu0  ;;  %v2763_v38 = vpop.f32.mrf.mxu1 }
 0x23c   : > { %v7934_v18 = vadd.f32 %v3089_v17, %v2824_v56  ;;  %v7936_v43 = vadd.f32 %v2763_v38, %v2491_v62 }
 0x23d   : > { %v7938_v53 = vpop.f32.mrf.mxu0  ;;  %v2765_v30 = vpop.f32.mrf.mxu1 }
 0x23e   : > { %v2830_v50 = vadd.f32 %v2765_v30, %v7746_v24 }
 0x23f   : > { %v3093_v34 = vpop.f32.mrf.mxu0  ;;  %v2767_v36 = vpop.f32.mrf.mxu1 }
 0x240   : > { %v7943_v48 = vadd.f32 %v3093_v34, %v2826_v60  ;;  %v7945_v22 = vadd.f32 %v2767_v36, %v2493_v42 }
 0x241   : > { %v7947_v14 = vpop.f32.mrf.mxu0  ;;  %v2771_v45 = vpop.f32.mrf.mxu1 }
 0x242   : > { %v2832_v32 = vadd.f32 %v2771_v45, %v7764_v8 }
 0x243   : > { %v3099_v7 = vpop.f32.mrf.mxu0  ;;  %v2773_v56 = vpop.f32.mrf.mxu1 }
 0x244   : > { %v7952_v16 = vadd.f32 %v3099_v7, %v2828_v47  ;;  %v7954_v54 = vadd.f32 %v2773_v56, %v2495_v37 }
 0x245   : > { %v7956_v24 = vpop.f32.mrf.mxu0  ;;  %v2775_v6 = vpop.f32.mrf.mxu1 }
 0x246   : > { %v2834_v5 = vadd.f32 %v2775_v6, %v7777_v51 }
 0x247   : > { %v3103_v49 = vpop.f32.mrf.mxu0  ;;  %v2777_v59 = vpop.f32.mrf.mxu1 }
 0x248   : > { %v7961_v57 = vadd.f32 %v3103_v49, %v2830_v50  ;;  %v7963_v44 = vadd.f32 %v2777_v59, %v2497_v29 }
 0x249   : > { %v7965_v8 = vpop.f32.mrf.mxu0  ;;  %v2781_v25 = vpop.f32.mrf.mxu1 }
 0x24a   : > { %v2836_v60 = vadd.f32 %v2781_v25, %v7794_v26 }
 0x24b   : > { %v3109_v21 = vpop.f32.mrf.mxu0  ;;  %v2783_v52 = vpop.f32.mrf.mxu1 }
 0x24c   : > { %v7968_v12 = vadd.f32 %v3109_v21, %v2832_v32  ;;  %v7971_v39 = vadd.f32 %v2783_v52, %v7799_v19 }
 0x24d   : > { %v7973_v28 = vpop.f32.mrf.mxu0  ;;  %v2785_v51 = vpop.f32.mrf.mxu1 }
 0x24e   : > { %v2838_v41 = vadd.f32 %v2785_v51, %v7809_v4 }
 0x24f   : > { %v3113_v62 = vpop.f32.mrf.mxu0  ;;  %v2787_v47 = vpop.f32.mrf.mxu1 }
 0x250   : > { %v7976_v17 = vadd.f32 %v3113_v62, %v2834_v5  ;;  %v7979_v38 = vadd.f32 %v2787_v47, %v7816_v3 }
 0x251   : > { %v7981_v26 = vpop.f32.mrf.mxu0  ;;  %v2791_v30 = vpop.f32.mrf.mxu1 }
 0x252   : > { %8499 = vst [vmem:[#allocation4_spill] sm:$0xff] %v7979_v38  ;;  %v2840_v42 = vadd.f32 %v2791_v30, %v7827_v40 }
 0x253   : > { %v3119_v50 = vpop.f32.mrf.mxu0  ;;  %v2793_v19 = vpop.f32.mrf.mxu1 }
 0x254   : > { %v7984_v34 = vadd.f32 %v3119_v50, %v2836_v60  ;;  %v7987_v36 = vadd.f32 %v2793_v19, %v7834_v31 }
 0x255   : > { %v7989_v4 = vpop.f32.mrf.mxu0  ;;  %v2795_v45 = vpop.f32.mrf.mxu1 }
 0x256   : > { %8500 = vst [vmem:[#allocation5_spill] sm:$0xff] %v7987_v36  ;;  %v2842_v37 = vadd.f32 %v2795_v45, %v7842_v11 }
 0x257   : > { %v3123_v32 = vpop.f32.mrf.mxu0  ;;  %v2797_v3 = vpop.f32.mrf.mxu1 }
 0x258   : > { %v7992_v7 = vadd.f32 %v3123_v32, %v2838_v41  ;;  %v7995_v56 = vadd.f32 %v2797_v3, %v7849_v2 }
 0x259   : > { %v7997_v40 = vpop.f32.mrf.mxu0  ;;  %v2801_v6 = vpop.f32.mrf.mxu1 }
 0x25a   : > { %8501 = vst [vmem:[#allocation6_spill] sm:$0xff] %v7995_v56  ;;  %8502 = vst [vmem:[#allocation7_spill] sm:$0xff] %v7997_v40  ;;  %v2844_v29 = vadd.f32 %v2801_v6, %v7857_v1 }
 0x25b   : > { %v3129_v5 = vpop.f32.mrf.mxu0  ;;  %v2803_v31 = vpop.f32.mrf.mxu1 }
 0x25c   : > { %v8000_v49 = vadd.f32 %v3129_v5, %v2840_v42  ;;  %v8003_v59 = vadd.f32 %v2803_v31, %v7862_v33 }
 0x25d   : > { %v8005_v11 = vpop.f32.mrf.mxu0  ;;  %v2805_v25 = vpop.f32.mrf.mxu1 }
 0x25e   : > { %8503 = vst [vmem:[#allocation8_spill] sm:$0xff] %v8003_v59  ;;  %8504 = vst [vmem:[#allocation9_spill] sm:$0xff] %v8005_v11  ;;  %v2846_v60 = vadd.f32 %v2805_v25, %v7870_v63 }
 0x25f   : > { %v3133_v21 = vpop.f32.mrf.mxu0  ;;  %v2807_v2 = vpop.f32.mrf.mxu1 }
 0x260   : > { %v8008_v52 = vadd.f32 %v3133_v21, %v2842_v37  ;;  %v8011_v51 = vadd.f32 %v2807_v2, %v7875_v20 }
 0x261   : > { %v8013_v1 = vpop.f32.mrf.mxu0  ;;  %v2811_v41 = vpop.f32.mrf.mxu1 }
 0x262   : > { %8505 = vst [vmem:[#allocation10_spill] sm:$0xff] %v8011_v51  ;;  %8506 = vst [vmem:[#allocation11_spill] sm:$0xff] %v8013_v1  ;;  %v2848_v62 = vadd.f32 %v2811_v41, %v7883_v9 }
 0x263   : > { %v3139_v47 = vpop.f32.mrf.mxu0  ;;  %v2813_v33 = vpop.f32.mrf.mxu1 }
 0x264   : > { %v8016_v30 = vadd.f32 %v3139_v47, %v2844_v29  ;;  %v8019_v42 = vadd.f32 %v2813_v33, %v7887_v10 }
 0x265   : > { %v8021_v63 = vpop.f32.mrf.mxu0  ;;  %v2815_v50 = vpop.f32.mrf.mxu1 }
 0x266   : > { %8507 = vst [vmem:[#allocation12_spill] sm:$0xff] %v8019_v42  ;;  %8508 = vst [vmem:[#allocation13_spill] sm:$0xff] %v8021_v63  ;;  %v2850_v19 = vadd.f32 %v2815_v50, %v7892_v61 }
 0x267   : > { %v3143_v45 = vpop.f32.mrf.mxu0  ;;  %v2817_v20 = vpop.f32.mrf.mxu1 }
 0x268   : > { %v8024_v37 = vadd.f32 %v3143_v45, %v2846_v60  ;;  %v8027_v32 = vadd.f32 %v2817_v20, %v7902_v58 }
 0x269   : > { %v8029_v9 = vpop.f32.mrf.mxu0  ;;  %v3443_v3 = vpop.f32.mrf.mxu1 }
 0x26a   : > { %8509 = vst [vmem:[#allocation14_spill] sm:$0xff] %v8027_v32  ;;  %8510 = vst [vmem:[#allocation15_spill] sm:$0xff] %v8029_v9  ;;  %v8032_v6 = vadd.f32 %v3443_v3, %v7907_v35 }
 0x26b   : > { %v3149_v10 = vpop.f32.mrf.mxu0  ;;  %v8034_v29 = vpop.f32.mrf.mxu1 }
 0x26c   : > { %v3186_v5 = vadd.f32 %v3149_v10, %v2848_v62 }
 0x26d   : > { %v8036_v31 = vpop.f32.mrf.mxu0  ;;  %v3447_v61 = vpop.f32.mrf.mxu1 }
 0x26e   : > { %8511 = vst [vmem:[#allocation16_spill] sm:$0xff] %v8036_v31  ;;  %v8039_v25 = vadd.f32 %v3447_v61, %v7925_v55 }
 0x26f   : > { %v3153_v60 = vpop.f32.mrf.mxu0  ;;  %v8041_v21 = vpop.f32.mrf.mxu1 }
 0x270   : > { %v3188_v58 = vadd.f32 %v3153_v60, %v2850_v19 }
 0x271   : > { %v8043_v2 = vpop.f32.mrf.mxu0  ;;  %v3453_v41 = vpop.f32.mrf.mxu1 }
 0x272   : > { %8512 = vst [vmem:[#allocation17_spill] sm:$0xff] %v8043_v2  ;;  %v8046_v35 = vadd.f32 %v3453_v41, %v7934_v18 }
 0x273   : > { %v3781_v47 = vpop.f32.mrf.mxu0  ;;  %v8048_v33 = vpop.f32.mrf.mxu1 }
 0x275   : > { %v8050_v62 = vpop.f32.mrf.mxu0  ;;  %v3457_v50 = vpop.f32.mrf.mxu1 }
 0x276   : > { %v8053_v45 = vadd.f32 %v3457_v50, %v7943_v48 }
 0x277   : > { %v8055_v55 = vpop.f32.mrf.mxu0  ;;  %v8057_v20 = vpop.f32.mrf.mxu1 }
 0x279   : > { %v8059_v19 = vpop.f32.mrf.mxu0  ;;  %v3463_v3 = vpop.f32.mrf.mxu1 }
 0x27a   : > { %v8062_v10 = vadd.f32 %v3463_v3, %v7952_v16 }
 0x27b   : > { %v8064_v18 = vpop.f32.mrf.mxu0  ;;  %v8066_v61 = vpop.f32.mrf.mxu1 }
 0x27d   : > { %v8068_v60 = vpop.f32.mrf.mxu0  ;;  %v3467_v41 = vpop.f32.mrf.mxu1 }
 0x27e   : > { %v8071_v48 = vadd.f32 %v3467_v41, %v7961_v57 }
 0x27f   : > { %v8073_v50 = vpop.f32.mrf.mxu0  ;;  %v8075_v2 = vpop.f32.mrf.mxu1 }
 0x281   : > { %v3473_v32 = vpop.f32.mrf.mxu1  ;;  %v8080_v16 = vpop.f32.mrf.mxu0 }
 0x282   : > { %v8078_v31 = vadd.f32 %v3473_v32, %v7968_v12 }
 0x283   : > { %v8082_v3 = vpop.f32.mrf.mxu1  ;;  %v8087_v51 = vpop.f32.mrf.mxu0 }
 0x285   : > { %v3477_v42 = vpop.f32.mrf.mxu1  ;;  %v8094_v59 = vpop.f32.mrf.mxu0 }
 0x286   : > { %v8085_v9 = vadd.f32 %v3477_v42, %v7976_v17 }
 0x287   : > { %v8089_v57 = vpop.f32.mrf.mxu1  ;;  %v8101_v56 = vpop.f32.mrf.mxu0 }
 0x289   : > { %v3483_v41 = vpop.f32.mrf.mxu1  ;;  %v8108_v36 = vpop.f32.mrf.mxu0 }
 0x28a   : > { %v8092_v63 = vadd.f32 %v3483_v41, %v7984_v34 }
 0x28b   : > { %v8096_v12 = vpop.f32.mrf.mxu1  ;;  %v8115_v38 = vpop.f32.mrf.mxu0 }
 0x28c   : > { %8513 = vst [vmem:[#allocation18_spill] sm:$0xff] %v8092_v63 }
 0x28d   : > { %v3487_v32 = vpop.f32.mrf.mxu1 }
 0x28e   : > { %v8099_v1 = vadd.f32 %v3487_v32, %v7992_v7 }
 0x28f   : > { %v8103_v17 = vpop.f32.mrf.mxu1 }
 0x290   : > { %8514 = vst [vmem:[#allocation19_spill] sm:$0xff] %v8099_v1  ;;  %8515 = vst [vmem:[#allocation20_spill] sm:$0xff] %v8103_v17  ;;  %v8122_v17 = vpop.f32.mrf.mxu0 }
 0x291   : > { %v3493_v42 = vpop.f32.mrf.mxu1 }
 0x292   : > { %v8106_v11 = vadd.f32 %v3493_v42, %v8000_v49 }
 0x293   : > { %v8110_v34 = vpop.f32.mrf.mxu1 }
 0x294   : > { %8516 = vst [vmem:[#allocation21_spill] sm:$0xff] %v8106_v11  ;;  %8517 = vst [vmem:[#allocation22_spill] sm:$0xff] %v8110_v34  ;;  %v8129_v34 = vpop.f32.mrf.mxu0 }
 0x295   : > { %v3497_v41 = vpop.f32.mrf.mxu1 }
 0x296   : > { %v8113_v40 = vadd.f32 %v3497_v41, %v8008_v52 }
 0x297   : > { %v8117_v7 = vpop.f32.mrf.mxu1 }
 0x298   : > { %8518 = vst [vmem:[#allocation23_spill] sm:$0xff] %v8113_v40  ;;  %8519 = vst [vmem:[#allocation24_spill] sm:$0xff] %v8117_v7  ;;  %v8135_v7 = vpop.f32.mrf.mxu0 }
 0x299   : > { %v3503_v32 = vpop.f32.mrf.mxu1 }
 0x29a   : > { %v8120_v1 = vadd.f32 %v3503_v32, %v8016_v30  ;;  %v4230_v32 = vld [vmem:[%s8412_s5] sm:$0x3] }
 0x29b   : > { %v8124_v49 = vpop.f32.mrf.mxu1 }
 0x29c   : > { %8520 = vst [vmem:[#allocation25_spill] sm:$0xff] %v8120_v1  ;;  %8521 = vst [vmem:[#allocation26_spill] sm:$0xff] %v8124_v49  ;;  %v4274_v1 = vld [vmem:[%s8413_s6] sm:$0x3] }
 0x29d   : > { %v3507_v42 = vpop.f32.mrf.mxu1 }
 0x29e   : > { %v8127_v11 = vadd.f32 %v3507_v42, %v8024_v37  ;;  %v3159_v37 = vadd.f32 %v7917_v13, %v7885_v23  ;;  %v3161_v23 = vadd.f32 %v7929_v46, %v7894_v0  ;;  %v3163_v46 = vadd.f32 %v7938_v53, %v7909_v15 }
 0x29f   : > { %v8131_v52 = vpop.f32.mrf.mxu1 }
 0x2a0   : > { %8522 = vst [vmem:[#allocation27_spill] sm:$0xff] %v8127_v11  ;;  %8523 = vst [vmem:[#allocation28_spill] sm:$0xff] %v8131_v52  ;;  %v8146_v11 = vpop.f32.mrf.mxu0 }
 0x2a1   : > { %v3513_v41 = vpop.f32.mrf.mxu1  ;;  %8527 = vst [vmem:[#allocation32_spill] sm:$0xff] %v8146_v11 }
 0x2a2   : > { %v8133_v40 = vadd.f32 %v3513_v41, %v3186_v5  ;;  %v3523_v5 = vadd.f32 %v8034_v29, %v3159_v37  ;;  %v3860_v41 = vadd.f32 %v3781_v47, %v8032_v6  ;;  %v8164_v29 = vpop.f32.mrf.mxu0  ;;  %v3525_v37 = vadd.f32 %v8041_v21, %v3161_v23 }
 0x2a3   : > { %v8137_v63 = vpop.f32.mrf.mxu1  ;;  %v3527_v21 = vadd.f32 %v8048_v33, %v3163_v46  ;;  %v3167_v46 = vadd.f32 %v7956_v24, %v7936_v43 }
 0x2a4   : > { %8524 = vst [vmem:[#allocation29_spill] sm:$0xff] %v8133_v40  ;;  %8525 = vst [vmem:[#allocation30_spill] sm:$0xff] %v8137_v63  ;;  %v8529_v40 = vld [vmem:[#allocation2_spill] sm:$0xff]  ;;  %v3861_v13 = vadd.f32 %v8050_v62, %v3523_v5 }
 0x2a5   : > { %v3517_v30 = vpop.f32.mrf.mxu1  ;;  %v8153_v63 = vrot.slane %v4230_v32, %v8529_v40  ;;  %v8167_v6 = vrot.slane %v4274_v1, %v8529_v40 }
 0x2a6   : > { %v8144_v42 = vadd.f32 %v3517_v30, %v3188_v58  ;;  %v8530_v30 = vld [vmem:[#allocation3_spill] sm:$0xff] }
 0x2a7   : > { %v8148_v52 = vpop.f32.mrf.mxu1 }
 0x2a8   : > { %8526 = vst [vmem:[#allocation31_spill] sm:$0xff] %v8144_v42  ;;  %8528 = vst [vmem:[#allocation33_spill] sm:$0xff] %v8148_v52  ;;  %v8162_v42 = vrot.slane %v4230_v32, %v8530_v30  ;;  %v3862_v52 = vadd.f32 %v8055_v55, %v8039_v25  ;;  %v3863_v32 = vadd.f32 %v8059_v19, %v3525_v37 }
 0x2a9   : > { %v4119_v49 = vpop.f32.mrf.mxu1  ;;  %v3864_v55 = vadd.f32 %v8064_v18, %v8046_v35  ;;  %v3866_v35 = vadd.f32 %v8073_v50, %v8053_v45 }
 0x2aa   : > { %v4198_v58 = vadd.f32 %v4119_v49, %v3860_v41  ;;  %v8176_v49 = vrot.slane %v4274_v1, %v8530_v30  ;;  %v8181_v41 = vpop.f32.mrf.mxu0  ;;  %v3165_v1 = vadd.f32 %v7947_v14, %v7927_v27 }
 0x2ab   : > { %v4121_v47 = vpop.f32.mrf.mxu1 }
 0x2ac   : > { %v4242_v11 = vmul.f32 %v8153_v63, %v4198_v58  ;;  %v4199_v0 = vadd.f32 %v4121_v47, %v3861_v13  ;;  %v3529_v30 = vadd.f32 %v8057_v20, %v3165_v1 }
 0x2ad   : > { %v4123_v62 = vpop.f32.mrf.mxu1 }
 0x2ae   : > { %v4243_v40 = vmul.f32 %v8162_v42, %v4199_v0  ;;  %v4200_v5 = vadd.f32 %v4123_v62, %v3862_v52  ;;  %v4286_v23 = vadd.f32 %v8167_v6, %v4242_v11  ;;  %v3865_v52 = vadd.f32 %v8068_v60, %v3527_v21  ;;  %v8195_v11 = vpop.f32.mrf.mxu0 }
 0x2af   : > { %v4125_v25 = vpop.f32.mrf.mxu1  ;;  %v3867_v62 = vadd.f32 %v8080_v16, %v3529_v30 }
 0x2b0   : > { %v4244_v15 = vmul.f32 %v8153_v63, %v4200_v5  ;;  %v4201_v53 = vadd.f32 %v4125_v25, %v3863_v32  ;;  %v4287_v13 = vadd.f32 %v8176_v49, %v4243_v40  ;;  %v4318_v27 = vmax.f32 %v4286_v23, 0.0  ;;  %v8207_v21 = vpop.f32.mrf.mxu0 }
 0x2b1   : > { %v4129_v19 = vpop.f32.mrf.mxu1  ;;  %v3531_v40 = vadd.f32 %v8066_v61, %v3167_v46  ;;  %v3868_v5 = vadd.f32 %v8087_v51, %v8062_v10 }
 0x2b2   : > { %v4245_v33 = vmul.f32 %v8162_v42, %v4201_v53  ;;  %v4202_v58 = vadd.f32 %v4129_v19, %v3864_v55  ;;  %v4288_v18 = vadd.f32 %v8167_v6, %v4244_v15  ;;  %v4319_v37 = vmax.f32 %v4287_v13, 0.0 }
 0x2b3   : > { %v4131_v47 = vpop.f32.mrf.mxu1  ;;  %v3169_v15 = vadd.f32 %v7965_v8, %v7945_v22  ;;  %v3869_v61 = vadd.f32 %v8094_v59, %v3531_v40  ;;  %v3870_v13 = vadd.f32 %v8101_v56, %v8071_v48 }
 0x2b4   : > { %v4246_v14 = vmul.f32 %v8153_v63, %v4202_v58  ;;  %v4203_v0 = vadd.f32 %v4131_v47, %v3865_v52  ;;  %v4289_v60 = vadd.f32 %v8176_v49, %v4245_v33  ;;  %4453 = vmatprep.mubr.f32.mxu0 %v4319_v37  ;;  %v4320_v25 = vmax.f32 %v4288_v18, 0.0  ;;  %v8219_v52 = vpop.f32.mrf.mxu0 }
 0x2b5   : > { %v4133_v20 = vpop.f32.mrf.mxu1  ;;  %4454 = vmatmul.mubr.f32.vlgmr.msra.gmra.mxu0 %v4318_v27  ;;  %v3533_v19 = vadd.f32 %v8075_v2, %v3169_v15  ;;  %v3872_v27 = vadd.f32 %v8115_v38, %v8078_v31  ;;  %v8531_v15 = vld [vmem:[#allocation18_spill] sm:$0xff] }
 0x2b6   : > { %v4247_v45 = vmul.f32 %v8162_v42, %v4203_v0  ;;  %v4204_v50 = vadd.f32 %v4133_v20, %v3866_v35  ;;  %v4321_v32 = vmax.f32 %v4289_v60, 0.0  ;;  %v4290_v43 = vadd.f32 %v8167_v6, %v4246_v14  ;;  %v8231_v14 = vpop.f32.mrf.mxu0 }
 0x2b7   : > { %v4135_v55 = vpop.f32.mrf.mxu1  ;;  %v3171_v35 = vadd.f32 %v7973_v28, %v7954_v54  ;;  %v3871_v2 = vadd.f32 %v8108_v36, %v3533_v19  ;;  %v3173_v20 = vadd.f32 %v7981_v26, %v7963_v44 }
 0x2b8   : > { %v4248_v24 = vmul.f32 %v8153_v63, %v4204_v50  ;;  %v4205_v23 = vadd.f32 %v4135_v55, %v3867_v62  ;;  %4458 = vmatprep.mubr.f32.mxu0 %v4321_v32  ;;  %v4291_v16 = vadd.f32 %v8176_v49, %v4247_v45  ;;  %v4322_v30 = vmax.f32 %v4290_v43, 0.0  ;;  %v8243_v40 = vpop.f32.mrf.mxu0 }
 0x2b9   : > { %v4139_v53 = vpop.f32.mrf.mxu1  ;;  %4459 = vmatmul.mubr.f32.gmra.mxu0 %v4320_v25  ;;  %v3535_v37 = vadd.f32 %v8082_v3, %v3171_v35  ;;  %v3537_v50 = vadd.f32 %v8089_v57, %v3173_v20  ;;  %v3874_v32 = vadd.f32 %v8129_v34, %v8085_v9  ;;  %v3175_v43 = vadd.f32 %v7989_v4, %v7971_v39  ;;  %v8535_v35 = vld [vmem:[#allocation20_spill] sm:$0xff] }
 0x2ba   : > { %v4249_v51 = vmul.f32 %v8162_v42, %v4205_v23  ;;  %v4206_v10 = vadd.f32 %v4139_v53, %v3868_v5  ;;  %v4323_v1 = vmax.f32 %v4291_v16, 0.0  ;;  %v4292_v33 = vadd.f32 %v8167_v6, %v4248_v24  ;;  %v8532_v53 = vld [vmem:[#allocation32_spill] sm:$0xff] }
 0x2bb   : > { %v4141_v58 = vpop.f32.mrf.mxu1  ;;  %v3873_v3 = vadd.f32 %v8122_v17, %v3535_v37  ;;  %v3875_v57 = vadd.f32 %v8135_v7, %v3537_v50  ;;  %v3539_v16 = vadd.f32 %v8096_v12, %v3175_v43  ;;  %v8542_v43 = vld [vmem:[#allocation11_spill] sm:$0xff] }
 0x2bc   : > { %v4250_v22 = vmul.f32 %v8153_v63, %v4206_v10  ;;  %v4207_v8 = vadd.f32 %v4141_v58, %v3869_v61  ;;  %4463 = vmatprep.mubr.f32.mxu0 %v4323_v1  ;;  %v4293_v59 = vadd.f32 %v8176_v49, %v4249_v51  ;;  %v4324_v0 = vmax.f32 %v4292_v33, 0.0  ;;  %v8255_v51 = vpop.f32.mrf.mxu0  ;;  %v8534_v33 = vld [vmem:[#allocation7_spill] sm:$0xff] }
 0x2bd   : > { %v4143_v18 = vpop.f32.mrf.mxu1  ;;  %4464 = vmatmul.mubr.f32.gmra.mxu0 %v4322_v30  ;;  %v3876_v61 = vadd.f32 %v8532_v53, %v8531_v15  ;;  %v3877_v12 = vadd.f32 %v8164_v29, %v3539_v16  ;;  %v8543_v16 = vld [vmem:[#allocation24_spill] sm:$0xff]  ;;  %v8544_v53 = vld [vmem:[#allocation23_spill] sm:$0xff] }
 0x2be   : > { %v4251_v56 = vmul.f32 %v8162_v42, %v4207_v8  ;;  %v4208_v48 = vadd.f32 %v4143_v18, %v3870_v13  ;;  %v4325_v47 = vmax.f32 %v4293_v59, 0.0  ;;  %v4294_v46 = vadd.f32 %v8167_v6, %v4250_v22  ;;  %v8533_v13 = vld [vmem:[#allocation4_spill] sm:$0xff] }
 0x2bf   : > { %v4145_v60 = vpop.f32.mrf.mxu1  ;;  %v3177_v58 = vadd.f32 %v8534_v33, %v8533_v13  ;;  %v8545_v13 = vld [vmem:[#allocation8_spill] sm:$0xff]  ;;  %v8546_v33 = vld [vmem:[#allocation13_spill] sm:$0xff] }
 0x2c0   : > { %v4252_v54 = vmul.f32 %v8153_v63, %v4208_v48  ;;  %v4209_v28 = vadd.f32 %v4145_v60, %v3871_v2  ;;  %4468 = vmatprep.mubr.f32.mxu0 %v4325_v47  ;;  %v4295_v36 = vadd.f32 %v8176_v49, %v4251_v56  ;;  %v4326_v55 = vmax.f32 %v4294_v46, 0.0  ;;  %v8536_v2 = vld [vmem:[#allocation19_spill] sm:$0xff]  ;;  %v3843_v48 = vpop.f32.mrf.mxu0  ;;  %v8537_v46 = vld [vmem:[#allocation5_spill] sm:$0xff] }
 0x2c1   : > { %v4149_v62 = vpop.f32.mrf.mxu1  ;;  %4469 = vmatmul.mubr.f32.gmra.mxu0 %v4324_v0  ;;  %v3541_v18 = vadd.f32 %v8535_v35, %v3177_v58  ;;  %v3878_v56 = vadd.f32 %v8181_v41, %v8536_v2  ;;  %v3183_v58 = vadd.f32 %v8546_v33, %v8545_v13 }
 0x2c2   : > { %v4253_v38 = vmul.f32 %v8162_v42, %v4209_v28  ;;  %v4210_v31 = vadd.f32 %v4149_v62, %v3872_v27  ;;  %v4327_v45 = vmax.f32 %v4295_v36, 0.0  ;;  %v4296_v5 = vadd.f32 %v8167_v6, %v4252_v54  ;;  %v8538_v54 = vld [vmem:[#allocation9_spill] sm:$0xff] }
 0x2c3   : > { %v4151_v25 = vpop.f32.mrf.mxu1  ;;  %v3179_v28 = vadd.f32 %v8538_v54, %v8537_v46  ;;  %v3879_v20 = vadd.f32 %v8195_v11, %v3541_v18  ;;  %v8548_v18 = vld [vmem:[#allocation25_spill] sm:$0xff]  ;;  %v8550_v46 = vld [vmem:[#allocation15_spill] sm:$0xff] }
 0x2c4   : > { %v4254_v44 = vmul.f32 %v8153_v63, %v4210_v31  ;;  %v4211_v26 = vadd.f32 %v4151_v25, %v3873_v3  ;;  %4473 = vmatprep.mubr.f32.mxu0 %v4327_v45  ;;  %v4297_v17 = vadd.f32 %v8176_v49, %v4253_v38  ;;  %v4328_v10 = vmax.f32 %v4296_v5, 0.0  ;;  %v8539_v38 = vld [vmem:[#allocation22_spill] sm:$0xff]  ;;  %v8540_v45 = vld [vmem:[#allocation21_spill] sm:$0xff] }
 0x2c5   : > { %v4153_v24 = vpop.f32.mrf.mxu1  ;;  %4474 = vmatmul.mubr.f32.gmra.mxu0 %v4326_v55  ;;  %v3543_v31 = vadd.f32 %v8539_v38, %v3179_v28  ;;  %v3880_v50 = vadd.f32 %v8207_v21, %v8540_v45  ;;  %v3884_v2 = vadd.f32 %v8255_v51, %v8548_v18  ;;  %v8552_v38 = vld [vmem:[#allocation27_spill] sm:$0xff] }
 0x2c6   : > { %v4255_v9 = vmul.f32 %v8162_v42, %v4211_v26  ;;  %v4212_v34 = vadd.f32 %v4153_v24, %v3874_v32  ;;  %v4329_v23 = vmax.f32 %v4297_v17, 0.0  ;;  %v4298_v19 = vadd.f32 %v8167_v6, %v4254_v44  ;;  %v3845_v32 = vpop.f32.mrf.mxu0  ;;  %v8541_v17 = vld [vmem:[#allocation6_spill] sm:$0xff] }
 0x2c7   : > { %v4155_v1 = vpop.f32.mrf.mxu1  ;;  %v3181_v24 = vadd.f32 %v8542_v43, %v8541_v17 }
 0x2c8   : > { %v4256_v39 = vmul.f32 %v8153_v63, %v4212_v34  ;;  %v4213_v4 = vadd.f32 %v4155_v1, %v3875_v57  ;;  %4478 = vmatprep.mubr.f32.mxu0 %v4329_v23  ;;  %v4299_v7 = vadd.f32 %v8176_v49, %v4255_v9  ;;  %v4330_v27 = vmax.f32 %v4298_v19, 0.0 }
 0x2c9   : > { %v4159_v30 = vpop.f32.mrf.mxu1  ;;  %4479 = vmatmul.mubr.f32.gmra.mxu0 %v4328_v10  ;;  %v3881_v9 = vadd.f32 %v8219_v52, %v3543_v31  ;;  %v3545_v15 = vadd.f32 %v8543_v16, %v3181_v24  ;;  %v3847_v10 = vpop.f32.mrf.mxu0  ;;  %v3886_v31 = vadd.f32 %v3845_v32, %v8552_v38 }
 0x2ca   : > { %v4257_v22 = vmul.f32 %v8162_v42, %v4213_v4  ;;  %v4214_v8 = vadd.f32 %v4159_v30, %v3876_v61  ;;  %v4331_v59 = vmax.f32 %v4299_v7, 0.0  ;;  %v4300_v47 = vadd.f32 %v8167_v6, %v4256_v39 }
 0x2cb   : > { %v4161_v37 = vpop.f32.mrf.mxu1  ;;  %v3882_v61 = vadd.f32 %v8231_v14, %v8544_v53 }
 0x2cc   : > { %v4258_v0 = vmul.f32 %v8153_v63, %v4214_v8  ;;  %v4215_v60 = vadd.f32 %v4161_v37, %v3877_v12  ;;  %4483 = vmatprep.mubr.f32.mxu0 %v4331_v59  ;;  %v4301_v29 = vadd.f32 %v8176_v49, %v4257_v22  ;;  %v4332_v5 = vmax.f32 %v4300_v47, 0.0  ;;  %v8547_v59 = vld [vmem:[#allocation26_spill] sm:$0xff] }
 0x2cd   : > { %v4163_v36 = vpop.f32.mrf.mxu1  ;;  %4484 = vmatmul.mubr.f32.gmra.mxu0 %v4330_v27  ;;  %v3883_v12 = vadd.f32 %v8243_v40, %v3545_v15  ;;  %v3547_v35 = vadd.f32 %v8547_v59, %v3183_v58 }
 0x2ce   : > { %v4259_v62 = vmul.f32 %v8162_v42, %v4215_v60  ;;  %v4216_v41 = vadd.f32 %v4163_v36, %v3878_v56  ;;  %v4333_v3 = vmax.f32 %v4301_v29, 0.0  ;;  %v4302_v55 = vadd.f32 %v8167_v6, %v4258_v0  ;;  %v3851_v56 = vpop.f32.mrf.mxu0  ;;  %v8549_v29 = vld [vmem:[#allocation10_spill] sm:$0xff] }
 0x2cf   : > { %v4165_v25 = vpop.f32.mrf.mxu1  ;;  %v3185_v54 = vadd.f32 %v8550_v46, %v8549_v29  ;;  %v3885_v36 = vadd.f32 %v3843_v48, %v3547_v35 }
 0x2d0   : > { %v4260_v44 = vmul.f32 %v8153_v63, %v4216_v41  ;;  %v4217_v26 = vadd.f32 %v4165_v25, %v3879_v20  ;;  %4488 = vmatprep.mubr.f32.mxu0 %v4333_v3  ;;  %v4303_v11 = vadd.f32 %v8176_v49, %v4259_v62  ;;  %v4334_v39 = vmax.f32 %v4302_v55, 0.0  ;;  %v8551_v41 = vld [vmem:[#allocation28_spill] sm:$0xff]  ;;  %v3853_v45 = vpop.f32.mrf.mxu0 }
 0x2d1   : > { %v4169_v57 = vpop.f32.mrf.mxu1  ;;  %4489 = vmatmul.mubr.f32.gmra.mxu0 %v4332_v5  ;;  %v3549_v3 = vadd.f32 %v8551_v41, %v3185_v54 }
 0x2d2   : > { %v4261_v34 = vmul.f32 %v8162_v42, %v4217_v26  ;;  %v4218_v21 = vadd.f32 %v4169_v57, %v3880_v50  ;;  %v4335_v23 = vmax.f32 %v4303_v11, 0.0  ;;  %v4304_v1 = vadd.f32 %v8167_v6, %v4260_v44  ;;  %v8553_v26 = vld [vmem:[#allocation12_spill] sm:$0xff]  ;;  %v3855_v15 = vpop.f32.mrf.mxu0 }
 0x2d3   : > { %v4171_v19 = vpop.f32.mrf.mxu1  ;;  %v8554_v11 = vld [vmem:[#allocation16_spill] sm:$0xff]  ;;  %v3887_v24 = vadd.f32 %v3847_v10, %v3549_v3 }
 0x2d4   : > { %v4262_v4 = vmul.f32 %v8153_v63, %v4218_v21  ;;  %v4219_v7 = vadd.f32 %v4171_v19, %v3881_v9  ;;  %4493 = vmatprep.mubr.f32.mxu0 %v4335_v23  ;;  %v4305_v52 = vadd.f32 %v8176_v49, %v4261_v34  ;;  %v4336_v47 = vmax.f32 %v4304_v1, 0.0  ;;  %v8555_v34 = vld [vmem:[#allocation30_spill] sm:$0xff]  ;;  %v8556_v23 = vld [vmem:[#allocation29_spill] sm:$0xff]  ;;  %v3857_v35 = vpop.f32.mrf.mxu0 }
 0x2d5   : > { %v4173_v30 = vpop.f32.mrf.mxu1  ;;  %4494 = vmatmul.mubr.f32.gmra.mxu0 %v4334_v39  ;;  %v3187_v17 = vadd.f32 %v8554_v11, %v8553_v26  ;;  %v3888_v16 = vadd.f32 %v3851_v56, %v8556_v23 }
 0x2d6   : > { %v4263_v22 = vmul.f32 %v8162_v42, %v4219_v7  ;;  %v4220_v14 = vadd.f32 %v4173_v30, %v3882_v61  ;;  %v4337_v8 = vmax.f32 %v4305_v52, 0.0  ;;  %v4306_v27 = vadd.f32 %v8167_v6, %v4262_v4  ;;  %v8557_v4 = vld [vmem:[#allocation14_spill] sm:$0xff]  ;;  %v8558_v7 = vld [vmem:[#allocation17_spill] sm:$0xff] }
 0x2d7   : > { %v4175_v37 = vpop.f32.mrf.mxu1  ;;  %v3551_v21 = vadd.f32 %v8555_v34, %v3187_v17  ;;  %v3189_v52 = vadd.f32 %v8558_v7, %v8557_v4 }
 0x2d8   : > { %v4264_v0 = vmul.f32 %v8153_v63, %v4220_v14  ;;  %v4221_v60 = vadd.f32 %v4175_v37, %v3883_v12  ;;  %4498 = vmatprep.mubr.f32.mxu0 %v4337_v8  ;;  %v4307_v40 = vadd.f32 %v8176_v49, %v4263_v22  ;;  %v4338_v25 = vmax.f32 %v4306_v27, 0.0  ;;  %v8559_v22 = vld [vmem:[#allocation33_spill] sm:$0xff]  ;;  %v8560_v8 = vld [vmem:[#allocation31_spill] sm:$0xff] }
 0x2d9   : > { %v4179_v28 = vpop.f32.mrf.mxu1  ;;  %4499 = vmatmul.mubr.f32.gmra.mxu0 %v4336_v47  ;;  %v3889_v33 = vadd.f32 %v3853_v45, %v3551_v21  ;;  %v3553_v14 = vadd.f32 %v8559_v22, %v3189_v52  ;;  %v3890_v59 = vadd.f32 %v3855_v15, %v8560_v8 }
 0x2da   : > { %v4265_v20 = vmul.f32 %v8162_v42, %v4221_v60  ;;  %v4222_v62 = vadd.f32 %v4179_v28, %v3884_v2  ;;  %v4339_v51 = vmax.f32 %v4307_v40, 0.0  ;;  %v4308_v50 = vadd.f32 %v8167_v6, %v4264_v0 }
 0x2db   : > { %v4181_v5 = vpop.f32.mrf.mxu1  ;;  %v3891_v60 = vadd.f32 %v3857_v35, %v3553_v14 }
 0x2dc   : > { %v4266_v55 = vmul.f32 %v8153_v63, %v4222_v62  ;;  %v4223_v44 = vadd.f32 %v4181_v5, %v3885_v36  ;;  %4503 = vmatprep.mubr.f32.mxu0 %v4339_v51  ;;  %v4309_v48 = vadd.f32 %v8176_v49, %v4265_v20  ;;  %v4340_v53 = vmax.f32 %v4308_v50, 0.0 }
 0x2dd   : > { %v4183_v43 = vpop.f32.mrf.mxu1  ;;  %4504 = vmatmul.mubr.f32.gmra.mxu0 %v4338_v25 }
 0x2de   : > { %v4267_v57 = vmul.f32 %v8162_v42, %v4223_v44  ;;  %v4224_v9 = vadd.f32 %v4183_v43, %v3886_v31  ;;  %v4341_v32 = vmax.f32 %v4309_v48, 0.0  ;;  %v4310_v1 = vadd.f32 %v8167_v6, %v4266_v55 }
 0x2df   : > { %v4185_v61 = vpop.f32.mrf.mxu1 }
 0x2e0   : > { %v4268_v19 = vmul.f32 %v8153_v63, %v4224_v9  ;;  %v4225_v39 = vadd.f32 %v4185_v61, %v3887_v24  ;;  %4508 = vmatprep.mubr.f32.mxu0 %v4341_v32  ;;  %v4311_v10 = vadd.f32 %v8176_v49, %v4267_v57  ;;  %v4342_v56 = vmax.f32 %v4310_v1, 0.0 }
 0x2e1   : > { %v4189_v13 = vpop.f32.mrf.mxu1  ;;  %4509 = vmatmul.mubr.f32.gmra.mxu0 %v4340_v53 }
 0x2e2   : > { %v4269_v58 = vmul.f32 %v8162_v42, %v4225_v39  ;;  %v4226_v30 = vadd.f32 %v4189_v13, %v3888_v16  ;;  %v4343_v12 = vmax.f32 %v4311_v10, 0.0  ;;  %v4312_v18 = vadd.f32 %v8167_v6, %v4268_v19 }
 0x2e3   : > { %v4191_v2 = vpop.f32.mrf.mxu1 }
 0x2e4   : > { %v4270_v47 = vmul.f32 %v8153_v63, %v4226_v30  ;;  %v4227_v37 = vadd.f32 %v4191_v2, %v3889_v33  ;;  %4513 = vmatprep.mubr.f32.mxu0 %v4343_v12  ;;  %v4313_v27 = vadd.f32 %v8176_v49, %v4269_v58  ;;  %v4344_v54 = vmax.f32 %v4312_v18, 0.0 }
 0x2e5   : > { %v4193_v0 = vpop.f32.mrf.mxu1  ;;  %4514 = vmatmul.mubr.f32.gmra.mxu0 %v4342_v56 }
 0x2e6   : > { %v4271_v40 = vmul.f32 %v8162_v42, %v4227_v37  ;;  %v4228_v29 = vadd.f32 %v4193_v0, %v3890_v59  ;;  %v4345_v46 = vmax.f32 %v4313_v27, 0.0  ;;  %v4314_v36 = vadd.f32 %v8167_v6, %v4270_v47 }
 0x2e7   : > { %v4195_v28 = vpop.f32.mrf.mxu1 }
 0x2e8   : > { %v4272_v20 = vmul.f32 %v8153_v63, %v4228_v29  ;;  %v4229_v62 = vadd.f32 %v4195_v28, %v3891_v60  ;;  %4518 = vmatprep.mubr.f32.mxu0 %v4345_v46  ;;  %v4315_v51 = vadd.f32 %v8176_v49, %v4271_v40  ;;  %v4346_v38 = vmax.f32 %v4314_v36, 0.0 }
 0x2e9   : > { %4519 = vmatmul.mubr.f32.gmra.mxu0 %v4344_v54 }
 0x2ea   : > { %v4273_v41 = vmul.f32 %v8162_v42, %v4229_v62  ;;  %v4347_v3 = vmax.f32 %v4315_v51, 0.0  ;;  %v4316_v31 = vadd.f32 %v8167_v6, %v4272_v20  ;;  %v8337_v6 = vld [vmem:[%s8415_s8] ss:$0 sm:$0xff] }
 0x2ec   : > { %4523 = vmatprep.mubr.f32.mxu0 %v4347_v3  ;;  %v4317_v45 = vadd.f32 %v8176_v49, %v4273_v41  ;;  %v4348_v63 = vmax.f32 %v4316_v31, 0.0 }
 0x2ed   : > { %4524 = vmatmul.mubr.f32.gmra.mxu0 %v4346_v38 }
 0x2ee   : > { %v4349_v50 = vmax.f32 %v4317_v45, 0.0 }
 0x2f0   : > { %4528 = vmatprep.mubr.f32.mxu0 %v4349_v50 }
 0x2f1   : > { %4529 = vmatmul.mubr.f32.gmra.mxu0 %v4348_v63 }
 0x375   : > { %v5268_v42 = vpop.f32.mrf.mxu0 }
 0x377   : > { %v5269_v49 = vpop.f32.mrf.mxu0 }
 0x378   : > { %v5270_v5 = vadd.f32 %v5269_v49, %v5268_v42 }
 0x379   : > { %v5271_v25 = vpop.f32.mrf.mxu0 }
 0x37a   : > { %v4456_v55 = vadd.f32 %v5270_v5, %v8337_v6 }
 0x37b   : > { %v5272_v44 = vpop.f32.mrf.mxu0 }
 0x37c   : > { %4535 = vst.msk [vmem:[%s8342_s21] sm:$0xff] %vm4534_vm14, %v4456_v55  ;;  %v5273_v48 = vadd.f32 %v5272_v44, %v5271_v25 }
 0x37d   : > { %v5274_v26 = vpop.f32.mrf.mxu0 }
 0x37e   : > { %v4461_v11 = vadd.f32 %v5273_v48, %v8337_v6 }
 0x37f   : > { %v5275_v17 = vpop.f32.mrf.mxu0 }
 0x380   : > { %4536 = vst.msk [vmem:[%s8342_s21 + $0x8] sm:$0xff] %vm4534_vm14, %v4461_v11  ;;  %v5276_v43 = vadd.f32 %v5275_v17, %v5274_v26 }
 0x381   : > { %v5277_v24 = vpop.f32.mrf.mxu0 }
 0x382   : > { %v4466_v57 = vadd.f32 %v5276_v43, %v8337_v6 }
 0x383   : > { %v5278_v9 = vpop.f32.mrf.mxu0 }
 0x384   : > { %4537 = vst.msk [vmem:[%s8342_s21 + $0x10] sm:$0xff] %vm4534_vm14, %v4466_v57  ;;  %v5279_v32 = vadd.f32 %v5278_v9, %v5277_v24 }
 0x385   : > { %v5280_v34 = vpop.f32.mrf.mxu0 }
 0x386   : > { %v4471_v21 = vadd.f32 %v5279_v32, %v8337_v6 }
 0x387   : > { %v5281_v23 = vpop.f32.mrf.mxu0 }
 0x388   : > { %4538 = vst.msk [vmem:[%s8342_s21 + $0x18] sm:$0xff] %vm4534_vm14, %v4471_v21  ;;  %v5282_v16 = vadd.f32 %v5281_v23, %v5280_v34 }
 0x389   : > { %v5283_v15 = vpop.f32.mrf.mxu0 }
 0x38a   : > { %v4476_v53 = vadd.f32 %v5282_v16, %v8337_v6 }
 0x38b   : > { %v5284_v61 = vpop.f32.mrf.mxu0 }
 0x38c   : > { %4539 = vst.msk [vmem:[%s8342_s21 + $0x20] sm:$0xff] %vm4534_vm14, %v4476_v53  ;;  %v5285_v1 = vadd.f32 %v5284_v61, %v5283_v15 }
 0x38d   : > { %v5286_v19 = vpop.f32.mrf.mxu0 }
 0x38e   : > { %v4481_v39 = vadd.f32 %v5285_v1, %v8337_v6 }
 0x38f   : > { %v5287_v10 = vpop.f32.mrf.mxu0 }
 0x390   : > { %4540 = vst.msk [vmem:[%s8342_s21 + $0x28] sm:$0xff] %vm4534_vm14, %v4481_v39  ;;  %v5288_v4 = vadd.f32 %v5287_v10, %v5286_v19 }
 0x391   : > { %v5289_v7 = vpop.f32.mrf.mxu0 }
 0x392   : > { %v4486_v52 = vadd.f32 %v5288_v4, %v8337_v6 }
 0x393   : > { %v5290_v13 = vpop.f32.mrf.mxu0 }
 0x394   : > { %4541 = vst.msk [vmem:[%s8342_s21 + $0x30] sm:$0xff] %vm4534_vm14, %v4486_v52  ;;  %v5291_v33 = vadd.f32 %v5290_v13, %v5289_v7 }
 0x395   : > { %v5292_v58 = vpop.f32.mrf.mxu0 }
 0x396   : > { %v4491_v30 = vadd.f32 %v5291_v33, %v8337_v6 }
 0x397   : > { %v5293_v12 = vpop.f32.mrf.mxu0 }
 0x398   : > { %4542 = vst.msk [vmem:[%s8342_s21 + $0x38] sm:$0xff] %vm4534_vm14, %v4491_v30  ;;  %v5294_v22 = vadd.f32 %v5293_v12, %v5292_v58 }
 0x399   : > { %v5295_v14 = vpop.f32.mrf.mxu0 }
 0x39a   : > { %v4496_v8 = vadd.f32 %v5294_v22, %v8337_v6 }
 0x39b   : > { %v5296_v59 = vpop.f32.mrf.mxu0 }
 0x39c   : > { %4543 = vst.msk [vmem:[%s8342_s21 + $0x40] sm:$0xff] %vm4534_vm14, %v4496_v8  ;;  %v5297_v35 = vadd.f32 %v5296_v59, %v5295_v14 }
 0x39d   : > { %v5298_v18 = vpop.f32.mrf.mxu0 }
 0x39e   : > { %v4501_v2 = vadd.f32 %v5297_v35, %v8337_v6 }
 0x39f   : > { %v5299_v56 = vpop.f32.mrf.mxu0 }
 0x3a0   : > { %4544 = vst.msk [vmem:[%s8342_s21 + $0x48] sm:$0xff] %vm4534_vm14, %v4501_v2  ;;  %v5300_v47 = vadd.f32 %v5299_v56, %v5298_v18 }
 0x3a1   : > { %v5301_v37 = vpop.f32.mrf.mxu0 }
 0x3a2   : > { %v4506_v27 = vadd.f32 %v5300_v47, %v8337_v6 }
 0x3a3   : > { %v5302_v0 = vpop.f32.mrf.mxu0 }
 0x3a4   : > { %4545 = vst.msk [vmem:[%s8342_s21 + $0x50] sm:$0xff] %vm4534_vm14, %v4506_v27  ;;  %v5303_v60 = vadd.f32 %v5302_v0, %v5301_v37 }
 0x3a5   : > { %v5304_v40 = vpop.f32.mrf.mxu0 }
 0x3a6   : > { %v4511_v29 = vadd.f32 %v5303_v60, %v8337_v6 }
 0x3a7   : > { %v5305_v46 = vpop.f32.mrf.mxu0 }
 0x3a8   : > { %4546 = vst.msk [vmem:[%s8342_s21 + $0x58] sm:$0xff] %vm4534_vm14, %v4511_v29  ;;  %v5306_v54 = vadd.f32 %v5305_v46, %v5304_v40 }
 0x3a9   : > { %v5307_v28 = vpop.f32.mrf.mxu0 }
 0x3aa   : > { %v4516_v36 = vadd.f32 %v5306_v54, %v8337_v6 }
 0x3ab   : > { %v5308_v20 = vpop.f32.mrf.mxu0 }
 0x3ac   : > { %4547 = vst.msk [vmem:[%s8342_s21 + $0x60] sm:$0xff] %vm4534_vm14, %v4516_v36  ;;  %v5309_v62 = vadd.f32 %v5308_v20, %v5307_v28 }
 0x3ad   : > { %v5310_v51 = vpop.f32.mrf.mxu0 }
 0x3ae   : > { %v4521_v41 = vadd.f32 %v5309_v62, %v8337_v6 }
 0x3af   : > { %v5311_v3 = vpop.f32.mrf.mxu0 }
 0x3b0   : > { %4548 = vst.msk [vmem:[%s8342_s21 + $0x68] sm:$0xff] %vm4534_vm14, %v4521_v41  ;;  %v5312_v38 = vadd.f32 %v5311_v3, %v5310_v51 }
 0x3b1   : > { %v5313_v31 = vpop.f32.mrf.mxu0 }
 0x3b2   : > { %v4526_v45 = vadd.f32 %v5312_v38, %v8337_v6 }
 0x3b3   : > { %v5314_v50 = vpop.f32.mrf.mxu0 }
 0x3b4   : > { %4549 = vst.msk [vmem:[%s8342_s21 + $0x70] sm:$0xff] %vm4534_vm14, %v4526_v45  ;;  %v5315_v63 = vadd.f32 %v5314_v50, %v5313_v31 }
 0x3b6   : > { %v4531_v42 = vadd.f32 %v5315_v63, %v8337_v6 }
 0x3b8   : > { %4550 = vst.msk [vmem:[%s8342_s21 + $0x78] sm:$0xff] %vm4534_vm14, %v4531_v42 }
 0x3b9 PF: > { %s19_s13 = sadd.s32 1, %s5838_s13   ;;  %s8561_s30 = smov %s5830_s11 }
 0x3ba   : > { %p16_p10 = scmp.ge.s32.totalorder %s19_s13, 6   ;;  %s8562_s10 = smov %s5834_s12 }
 0x3bb   : > { %s8563_s11 = smov %s8566_s14  ;;  %s8564_s12 = smov %s8570_s15 }
 0x3bc   :  { %18 = sbr.rel (!%p16_p10) target bundleno = 3 (0x3), region = 94 }

</bundles_post_ra>
